<compile_context>
chip_gen: v6e
topology: v6e:2x2x1
jax: 0.10.0
libtpu: 0.0.40
codegen_flags: <defaults>
</compile_context>

<pallas_src>
import functools
import math

import jax
import jax.numpy as jnp
from jax.experimental import pallas as pl
from jax.experimental.pallas import tpu as pltpu


_NEG_SLOPE = 0.01                 # nn.LeakyReLU(0.01)
_MAX_TILE_ROWS = 512              # ~HBM-roofline sweet spot for row tiles
_MAX_TILE_BYTES = 1 << 20         # per-input-block byte cap (v7x VMEM safe)
_VMEM_LIMIT = 32 * 1024 * 1024    # explicit scoped-VMEM budget (all gens)


def _shift_rows_up(y, k):
    """result[m] = y[m + k].  Rows that wrap at the bottom only ever land in the
    discarded halo columns of the flattened (image-row, padded-col) layout."""
    if k == 0:
        return y
    return jnp.concatenate([y[k:, :], y[:k, :]], axis=0)


# ---------------------------------------------------------------------------
# Kernels
# ---------------------------------------------------------------------------
def _conv4x4s2_lrelu_kernel(a0_ref, a1_ref, w_ref, b_ref, o_ref, *, neg_slope):
    """Fused Conv2d(k=4, s=2, p=1) + bias + LeakyReLU on space-to-depth tiles.

    a0/a1: (tm, 4*Cin) -- s2d row-phases p=0 / p=1 for the same output rows.
    w:     (2, 2, 4*Cin, Cout) -- (p, q) taps of the rearranged conv kernel.
    out[m] = LeakyReLU( sum_q sum_p a_p[m + q] @ w[p, q] + bias )
    """
    a0 = a0_ref[...]
    a1 = a1_ref[...]
    y0 = (jnp.dot(a0, w_ref[0, 0], preferred_element_type=jnp.float32) +
          jnp.dot(a1, w_ref[1, 0], preferred_element_type=jnp.float32))
    y1 = (jnp.dot(a0, w_ref[0, 1], preferred_element_type=jnp.float32) +
          jnp.dot(a1, w_ref[1, 1], preferred_element_type=jnp.float32))
    y = y0 + _shift_rows_up(y1, 1) + b_ref[...]
    o_ref[...] = jnp.where(y >= 0.0, y, y * neg_slope)


def _conv3x3s1_kernel(a0_ref, a1_ref, a2_ref, w_ref, o_ref):
    """Conv2d(k=3, s=1, p=1, bias=False): 3 row-phase inputs x 3 column shifts."""
    a = (a0_ref[...], a1_ref[...], a2_ref[...])
    acc = None
    for kw in range(3):
        y = jnp.dot(a[0], w_ref[0, kw], preferred_element_type=jnp.float32)
        y = y + jnp.dot(a[1], w_ref[1, kw], preferred_element_type=jnp.float32)
        y = y + jnp.dot(a[2], w_ref[2, kw], preferred_element_type=jnp.float32)
        y = _shift_rows_up(y, kw)
        acc = y if acc is None else acc + y
    o_ref[...] = acc


# ---------------------------------------------------------------------------
# Tiling policy
# ---------------------------------------------------------------------------
def _pick_tile(m_rows, row_len, n_cols):
    """Rows per block: whole flattened image-rows (multiple of row_len) and
    8-sublane aligned, capped at ~512 rows / ~1 MiB per input block; use the
    full M as a single block when it already fits comfortably."""
    base = (8 * row_len) // math.gcd(8, row_len)
    cap = min(_MAX_TILE_ROWS, _MAX_TILE_BYTES // max(4 * n_cols, 1))
    cap = max(base, (cap // base) * base)
    if cap >= m_rows:
        return m_rows, 1
    tm = base
    t = base
    while t <= cap:                      # prefer a tile that divides M exactly
        if m_rows % t == 0:
            tm = t
        t += base
    return tm, pl.cdiv(m_rows, tm)


# ---------------------------------------------------------------------------
# Layer wrappers
# ---------------------------------------------------------------------------
def conv4x4s2_lrelu(x_nhwc, w2, b2, neg_slope=_NEG_SLOPE):
    """x_nhwc: (N, H, W, Cin), H/W even. w2: (2, 2, 4*Cin, Cout). b2: (1, Cout)."""
    n, h, w, cin = x_nhwc.shape
    assert h % 2 == 0 and w % 2 == 0
    cout = w2.shape[-1]
    hout, wout = h // 2, w // 2
    hs, ws = hout + 1, wout + 1
    k4 = 4 * cin

    xp = jnp.pad(x_nhwc, ((0, 0), (1, 1), (1, 1), (0, 0)))
    xs = (xp.reshape(n, hs, 2, ws, 2, cin)          # 2x2 space-to-depth
            .transpose(0, 1, 3, 2, 4, 5)
            .reshape(n, hs, ws, k4))
    m = n * hout * ws
    a0 = xs[:, :hout].reshape(m, k4)                # row phase p = 0
    a1 = xs[:, 1:].reshape(m, k4)                   # row phase p = 1

    tm, grid = _pick_tile(m, ws, k4)
    y = pl.pallas_call(
        functools.partial(_conv4x4s2_lrelu_kernel, neg_slope=neg_slope),
        out_shape=jax.ShapeDtypeStruct((m, cout), jnp.float32),
        grid=(grid,),
        in_specs=[
            pl.BlockSpec((tm, k4), lambda i: (i, 0)),
            pl.BlockSpec((tm, k4), lambda i: (i, 0)),
            pl.BlockSpec((2, 2, k4, cout), lambda i: (0, 0, 0, 0)),
            pl.BlockSpec((1, cout), lambda i: (0, 0)),
        ],
        out_specs=pl.BlockSpec((tm, cout), lambda i: (i, 0)),
        compiler_params=pltpu.CompilerParams(
            dimension_semantics=("parallel",),
            vmem_limit_bytes=_VMEM_LIMIT),
    )(a0, a1, w2, b2)
    return y.reshape(n, hout, ws, cout)[:, :, :wout, :]


def conv3x3s1(x_nhwc, wt):
    """x_nhwc: (N, H, W, Cin). wt: (3, 3, Cin, Cout). Stride 1, pad 1, no bias."""
    n, h, w, cin = x_nhwc.shape
    cout = wt.shape[-1]
    wp = w + 2
    xp = jnp.pad(x_nhwc, ((0, 0), (1, 1), (1, 1), (0, 0)))
    m = n * h * wp
    a = [xp[:, kh:kh + h].reshape(m, cin) for kh in range(3)]

    tm, grid = _pick_tile(m, wp, cin)
    y = pl.pallas_call(
        _conv3x3s1_kernel,
        out_shape=jax.ShapeDtypeStruct((m, cout), jnp.float32),
        grid=(grid,),
        in_specs=[pl.BlockSpec((tm, cin), lambda i: (i, 0)) for _ in range(3)]
        + [pl.BlockSpec((3, 3, cin, cout), lambda i: (0, 0, 0, 0))],
        out_specs=pl.BlockSpec((tm, cout), lambda i: (i, 0)),
        compiler_params=pltpu.CompilerParams(
            dimension_semantics=("parallel",),
            vmem_limit_bytes=_VMEM_LIMIT),
    )(*a, wt)
    return y.reshape(n, h, wp, cout)[:, :, :w, :]


# ---------------------------------------------------------------------------
# Parameter re-layout (hoisted out of the per-forward path) and forward pass
# ---------------------------------------------------------------------------
def prepare_params(torch_params):
    main = []
    for w, b in torch_params["main"]:
        cout, cin = w.shape[0], w.shape[1]
        w2 = (w.reshape(cout, cin, 2, 2, 2, 2)      # (co, ci, p, a, q, b)
                .transpose(2, 4, 3, 5, 1, 0)        # (p, q, a, b, ci, co)
                .reshape(2, 2, 4 * cin, cout))
        main.append((w2, b.reshape(1, cout)))
    wt = jnp.transpose(torch_params["conv1"], (2, 3, 1, 0))  # (kh, kw, ci, co)
    return {"main": main, "conv1": wt}


def discriminator_forward(x_nchw, prepared):
    x = jnp.transpose(x_nchw, (0, 2, 3, 1))          # NCHW -> NHWC (lane = C)
    for w2, b2 in prepared["main"]:
        x = conv4x4s2_lrelu(x, w2, b2)
    y = conv3x3s1(x, prepared["conv1"])
    return jnp.transpose(y, (0, 3, 1, 2))            # NHWC -> NCHW


# ---------------------------------------------------------------------------
# Pure-JAX reference (for a numerical sanity check)
# ---------------------------------------------------------------------------
def reference_forward(x, torch_params, neg_slope=_NEG_SLOPE):
    h = x
    for w, b in torch_params["main"]:
        h = jax.lax.conv_general_dilated(
            h, w, window_strides=(2, 2), padding=((1, 1), (1, 1)),
            dimension_numbers=("NCHW", "OIHW", "NCHW"),
            precision=jax.lax.Precision.HIGHEST)
        h = h + b.reshape(1, -1, 1, 1)
        h = jnp.where(h >= 0.0, h, neg_slope * h)
    return jax.lax.conv_general_dilated(
        h, torch_params["conv1"], window_strides=(1, 1), padding=((1, 1), (1, 1)),
        dimension_numbers=("NCHW", "OIHW", "NCHW"),
        precision=jax.lax.Precision.HIGHEST)


# ---------------------------------------------------------------------------
if __name__ == "__main__":
    key = jax.random.PRNGKey(0)

    # Small config consistent with the module (defaults are image_size=128,
    # conv_dim=64, repeat_num=6; scaled down for the smoke test).
    batch, image_size, conv_dim, repeat_num = 2, 32, 8, 3

    keys = jax.random.split(key, 2 * repeat_num + 2)
    x = jax.random.normal(keys[0], (batch, 3, image_size, image_size), jnp.float32)

    torch_params = {"main": [], "conv1": None}
    cin, cdim = 3, conv_dim
    for i in range(repeat_num):
        w = 0.1 * jax.random.normal(keys[1 + 2 * i], (cdim, cin, 4, 4), jnp.float32)
        b = 0.1 * jax.random.normal(keys[2 + 2 * i], (cdim,), jnp.float32)
        torch_params["main"].append((w, b))
        cin, cdim = cdim, cdim * 2
    torch_params["conv1"] = 0.1 * jax.random.normal(
        keys[-1], (1, cin, 3, 3), jnp.float32)

    prepared = prepare_params(torch_params)
    fwd = jax.jit(discriminator_forward)
    out = jax.block_until_ready(fwd(x, prepared))

    out_spatial = image_size // (2 ** repeat_num)
    assert out.shape == (batch, 1, out_spatial, out_spatial), out.shape
    assert out.dtype == jnp.float32

    ref = jax.block_until_ready(reference_forward(x, torch_params))
    max_err = float(jnp.max(jnp.abs(out - ref)))
    assert max_err < 5e-2, f"mismatch vs reference conv: max abs err = {max_err}"

    print("KERNEL_OK")
</pallas_src>

<mosaic_0001>
module attributes {stable_mosaic.version = 11 : i64} {
  func.func @_conv4x4s2_lrelu_kernel(%arg0: i32, %arg1: memref<272x12xf32, #tpu.memory_space<vmem>>, %arg2: memref<272x12xf32, #tpu.memory_space<vmem>>, %arg3: memref<2x2x12x8xf32, #tpu.memory_space<vmem>>, %arg4: memref<1x8xf32, #tpu.memory_space<vmem>>, %arg5: memref<272x8xf32, #tpu.memory_space<vmem>>) attributes {dimension_semantics = [#tpu.dimension_semantics<parallel>], iteration_bounds = array<i64: 2>, scalar_prefetch = 0 : i64, scratch_operands = 0 : i64, tpu.core_type = #tpu.core_type<tc>, window_params = [{transform_indices = @transform_0, window_bounds = array<i64: 272, 12>}, {transform_indices = @transform_1, window_bounds = array<i64: 272, 12>}, {pipeline_mode = #tpu.pipeline_mode<synchronous>, transform_indices = @transform_2, window_bounds = array<i64: 2, 2, 12, 8>}, {pipeline_mode = #tpu.pipeline_mode<synchronous>, transform_indices = @transform_3, window_bounds = array<i64: 1, 8>}, {transform_indices = @transform_4, window_bounds = array<i64: 272, 8>}]} {
    %c0 = arith.constant 0 : index
    %c0_0 = arith.constant 0 : index
    %0 = vector.load %arg1[%c0, %c0_0] : memref<272x12xf32, #tpu.memory_space<vmem>>, vector<272x12xf32>
    %c0_1 = arith.constant 0 : index
    %c0_2 = arith.constant 0 : index
    %1 = vector.load %arg2[%c0_1, %c0_2] : memref<272x12xf32, #tpu.memory_space<vmem>>, vector<272x12xf32>
    %c0_3 = arith.constant 0 : index
    %c0_4 = arith.constant 0 : index
    %c0_5 = arith.constant 0 : index
    %c0_6 = arith.constant 0 : index
    %2 = vector.load %arg3[%c0_3, %c0_4, %c0_5, %c0_6] : memref<2x2x12x8xf32, #tpu.memory_space<vmem>>, vector<1x1x12x8xf32>
    %3 = vector.shape_cast %2 : vector<1x1x12x8xf32> to vector<12x8xf32>
    %cst = arith.constant dense<0.000000e+00> : vector<272x8xf32>
    %4 = tpu.matmul %0, %3, %cst {dimension_numbers = #tpu.dot_dimension_numbers<[1], [0], [0], [1], [0, 0, 1, 1], [], []>} : vector<272x12xf32>, vector<12x8xf32>, vector<272x8xf32> -> vector<272x8xf32>
    %c1 = arith.constant 1 : index
    %c0_7 = arith.constant 0 : index
    %c0_8 = arith.constant 0 : index
    %c0_9 = arith.constant 0 : index
    %5 = vector.load %arg3[%c1, %c0_7, %c0_8, %c0_9] : memref<2x2x12x8xf32, #tpu.memory_space<vmem>>, vector<1x1x12x8xf32>
    %6 = vector.shape_cast %5 : vector<1x1x12x8xf32> to vector<12x8xf32>
    %cst_10 = arith.constant dense<0.000000e+00> : vector<272x8xf32>
    %7 = tpu.matmul %1, %6, %cst_10 {dimension_numbers = #tpu.dot_dimension_numbers<[1], [0], [0], [1], [0, 0, 1, 1], [], []>} : vector<272x12xf32>, vector<12x8xf32>, vector<272x8xf32> -> vector<272x8xf32>
    %8 = arith.addf %4, %7 : vector<272x8xf32>
    %c0_11 = arith.constant 0 : index
    %c1_12 = arith.constant 1 : index
    %c0_13 = arith.constant 0 : index
    %c0_14 = arith.constant 0 : index
    %9 = vector.load %arg3[%c0_11, %c1_12, %c0_13, %c0_14] : memref<2x2x12x8xf32, #tpu.memory_space<vmem>>, vector<1x1x12x8xf32>
    %10 = vector.shape_cast %9 : vector<1x1x12x8xf32> to vector<12x8xf32>
    %cst_15 = arith.constant dense<0.000000e+00> : vector<272x8xf32>
    %11 = tpu.matmul %0, %10, %cst_15 {dimension_numbers = #tpu.dot_dimension_numbers<[1], [0], [0], [1], [0, 0, 1, 1], [], []>} : vector<272x12xf32>, vector<12x8xf32>, vector<272x8xf32> -> vector<272x8xf32>
    %c1_16 = arith.constant 1 : index
    %c1_17 = arith.constant 1 : index
    %c0_18 = arith.constant 0 : index
    %c0_19 = arith.constant 0 : index
    %12 = vector.load %arg3[%c1_16, %c1_17, %c0_18, %c0_19] : memref<2x2x12x8xf32, #tpu.memory_space<vmem>>, vector<1x1x12x8xf32>
    %13 = vector.shape_cast %12 : vector<1x1x12x8xf32> to vector<12x8xf32>
    %cst_20 = arith.constant dense<0.000000e+00> : vector<272x8xf32>
    %14 = tpu.matmul %1, %13, %cst_20 {dimension_numbers = #tpu.dot_dimension_numbers<[1], [0], [0], [1], [0, 0, 1, 1], [], []>} : vector<272x12xf32>, vector<12x8xf32>, vector<272x8xf32> -> vector<272x8xf32>
    %15 = arith.addf %11, %14 : vector<272x8xf32>
    %16 = vector.extract_strided_slice %15 {offsets = [1, 0], sizes = [271, 8], strides = [1, 1]} : vector<272x8xf32> to vector<271x8xf32>
    %17 = vector.extract_strided_slice %15 {offsets = [0, 0], sizes = [1, 8], strides = [1, 1]} : vector<272x8xf32> to vector<1x8xf32>
    %18 = tpu.concatenate %16, %17 in 0 : vector<271x8xf32>, vector<1x8xf32> -> vector<272x8xf32>
    %19 = arith.addf %8, %18 : vector<272x8xf32>
    %c0_21 = arith.constant 0 : index
    %c0_22 = arith.constant 0 : index
    %20 = vector.load %arg4[%c0_21, %c0_22] : memref<1x8xf32, #tpu.memory_space<vmem>>, vector<1x8xf32>
    %21 = vector.broadcast %20 : vector<1x8xf32> to vector<272x8xf32>
    %22 = arith.addf %19, %21 : vector<272x8xf32>
    %cst_23 = arith.constant 0.000000e+00 : f32
    %23 = vector.broadcast %cst_23 : f32 to vector<272x8xf32>
    %24 = arith.cmpf oge, %22, %23 : vector<272x8xf32>
    %cst_24 = arith.constant 0.00999999977 : f32
    %25 = vector.broadcast %cst_24 : f32 to vector<272x8xf32>
    %26 = arith.mulf %22, %25 : vector<272x8xf32>
    %27 = arith.select %24, %22, %26 : vector<272x8xi1>, vector<272x8xf32>
    %c0_25 = arith.constant 0 : index
    %c0_26 = arith.constant 0 : index
    %28 = vector.load %arg5[%c0_25, %c0_26] : memref<272x8xf32, #tpu.memory_space<vmem>>, vector<272x8xf32>
    tpu.vector_store %arg5[%c0_25, %c0_26], %27 {strides = array<i32>} : memref<272x8xf32, #tpu.memory_space<vmem>>, vector<272x8xf32>,
    return
  }
  func.func @transform_0(%arg0: i32) -> (i32, i32) {
    %c0_i32 = arith.constant 0 : i32
    %c0_i32_0 = arith.constant 0 : i32
    return %arg0, %c0_i32 : i32, i32
  }
  func.func @transform_1(%arg0: i32) -> (i32, i32) {
    %c0_i32 = arith.constant 0 : i32
    %c0_i32_0 = arith.constant 0 : i32
    return %arg0, %c0_i32 : i32, i32
  }
  func.func @transform_2(%arg0: i32) -> (i32, i32, i32, i32) {
    %c0_i32 = arith.constant 0 : i32
    %c0_i32_0 = arith.constant 0 : i32
    %c0_i32_1 = arith.constant 0 : i32
    %c0_i32_2 = arith.constant 0 : i32
    %c0_i32_3 = arith.constant 0 : i32
    return %c0_i32, %c0_i32_0, %c0_i32_1, %c0_i32_2 : i32, i32, i32, i32
  }
  func.func @transform_3(%arg0: i32) -> (i32, i32) {
    %c0_i32 = arith.constant 0 : i32
    %c0_i32_0 = arith.constant 0 : i32
    %c0_i32_1 = arith.constant 0 : i32
    return %c0_i32, %c0_i32_0 : i32, i32
  }
  func.func @transform_4(%arg0: i32) -> (i32, i32) {
    %c0_i32 = arith.constant 0 : i32
    %c0_i32_0 = arith.constant 0 : i32
    return %arg0, %c0_i32 : i32, i32
  }
}

module attributes {stable_mosaic.version = 11 : i64} {
  func.func @_conv4x4s2_lrelu_kernel(%arg0: i32, %arg1: memref<144x32xf32, #tpu.memory_space<vmem>>, %arg2: memref<144x32xf32, #tpu.memory_space<vmem>>, %arg3: memref<2x2x32x16xf32, #tpu.memory_space<vmem>>, %arg4: memref<1x16xf32, #tpu.memory_space<vmem>>, %arg5: memref<144x16xf32, #tpu.memory_space<vmem>>) attributes {dimension_semantics = [#tpu.dimension_semantics<parallel>], iteration_bounds = array<i64: 1>, scalar_prefetch = 0 : i64, scratch_operands = 0 : i64, tpu.core_type = #tpu.core_type<tc>, window_params = [{transform_indices = @transform_0, window_bounds = array<i64: 144, 32>}, {transform_indices = @transform_1, window_bounds = array<i64: 144, 32>}, {pipeline_mode = #tpu.pipeline_mode<synchronous>, transform_indices = @transform_2, window_bounds = array<i64: 2, 2, 32, 16>}, {pipeline_mode = #tpu.pipeline_mode<synchronous>, transform_indices = @transform_3, window_bounds = array<i64: 1, 16>}, {transform_indices = @transform_4, window_bounds = array<i64: 144, 16>}]} {
    %c0 = arith.constant 0 : index
    %c0_0 = arith.constant 0 : index
    %0 = vector.load %arg1[%c0, %c0_0] : memref<144x32xf32, #tpu.memory_space<vmem>>, vector<144x32xf32>
    %c0_1 = arith.constant 0 : index
    %c0_2 = arith.constant 0 : index
    %1 = vector.load %arg2[%c0_1, %c0_2] : memref<144x32xf32, #tpu.memory_space<vmem>>, vector<144x32xf32>
    %c0_3 = arith.constant 0 : index
    %c0_4 = arith.constant 0 : index
    %c0_5 = arith.constant 0 : index
    %c0_6 = arith.constant 0 : index
    %2 = vector.load %arg3[%c0_3, %c0_4, %c0_5, %c0_6] : memref<2x2x32x16xf32, #tpu.memory_space<vmem>>, vector<1x1x32x16xf32>
    %3 = vector.shape_cast %2 : vector<1x1x32x16xf32> to vector<32x16xf32>
    %cst = arith.constant dense<0.000000e+00> : vector<144x16xf32>
    %4 = tpu.matmul %0, %3, %cst {dimension_numbers = #tpu.dot_dimension_numbers<[1], [0], [0], [1], [0, 0, 1, 1], [], []>} : vector<144x32xf32>, vector<32x16xf32>, vector<144x16xf32> -> vector<144x16xf32>
    %c1 = arith.constant 1 : index
    %c0_7 = arith.constant 0 : index
    %c0_8 = arith.constant 0 : index
    %c0_9 = arith.constant 0 : index
    %5 = vector.load %arg3[%c1, %c0_7, %c0_8, %c0_9] : memref<2x2x32x16xf32, #tpu.memory_space<vmem>>, vector<1x1x32x16xf32>
    %6 = vector.shape_cast %5 : vector<1x1x32x16xf32> to vector<32x16xf32>
    %cst_10 = arith.constant dense<0.000000e+00> : vector<144x16xf32>
    %7 = tpu.matmul %1, %6, %cst_10 {dimension_numbers = #tpu.dot_dimension_numbers<[1], [0], [0], [1], [0, 0, 1, 1], [], []>} : vector<144x32xf32>, vector<32x16xf32>, vector<144x16xf32> -> vector<144x16xf32>
    %8 = arith.addf %4, %7 : vector<144x16xf32>
    %c0_11 = arith.constant 0 : index
    %c1_12 = arith.constant 1 : index
    %c0_13 = arith.constant 0 : index
    %c0_14 = arith.constant 0 : index
    %9 = vector.load %arg3[%c0_11, %c1_12, %c0_13, %c0_14] : memref<2x2x32x16xf32, #tpu.memory_space<vmem>>, vector<1x1x32x16xf32>
    %10 = vector.shape_cast %9 : vector<1x1x32x16xf32> to vector<32x16xf32>
    %cst_15 = arith.constant dense<0.000000e+00> : vector<144x16xf32>
    %11 = tpu.matmul %0, %10, %cst_15 {dimension_numbers = #tpu.dot_dimension_numbers<[1], [0], [0], [1], [0, 0, 1, 1], [], []>} : vector<144x32xf32>, vector<32x16xf32>, vector<144x16xf32> -> vector<144x16xf32>
    %c1_16 = arith.constant 1 : index
    %c1_17 = arith.constant 1 : index
    %c0_18 = arith.constant 0 : index
    %c0_19 = arith.constant 0 : index
    %12 = vector.load %arg3[%c1_16, %c1_17, %c0_18, %c0_19] : memref<2x2x32x16xf32, #tpu.memory_space<vmem>>, vector<1x1x32x16xf32>
    %13 = vector.shape_cast %12 : vector<1x1x32x16xf32> to vector<32x16xf32>
    %cst_20 = arith.constant dense<0.000000e+00> : vector<144x16xf32>
    %14 = tpu.matmul %1, %13, %cst_20 {dimension_numbers = #tpu.dot_dimension_numbers<[1], [0], [0], [1], [0, 0, 1, 1], [], []>} : vector<144x32xf32>, vector<32x16xf32>, vector<144x16xf32> -> vector<144x16xf32>
    %15 = arith.addf %11, %14 : vector<144x16xf32>
    %16 = vector.extract_strided_slice %15 {offsets = [1, 0], sizes = [143, 16], strides = [1, 1]} : vector<144x16xf32> to vector<143x16xf32>
    %17 = vector.extract_strided_slice %15 {offsets = [0, 0], sizes = [1, 16], strides = [1, 1]} : vector<144x16xf32> to vector<1x16xf32>
    %18 = tpu.concatenate %16, %17 in 0 : vector<143x16xf32>, vector<1x16xf32> -> vector<144x16xf32>
    %19 = arith.addf %8, %18 : vector<144x16xf32>
    %c0_21 = arith.constant 0 : index
    %c0_22 = arith.constant 0 : index
    %20 = vector.load %arg4[%c0_21, %c0_22] : memref<1x16xf32, #tpu.memory_space<vmem>>, vector<1x16xf32>
    %21 = vector.broadcast %20 : vector<1x16xf32> to vector<144x16xf32>
    %22 = arith.addf %19, %21 : vector<144x16xf32>
    %cst_23 = arith.constant 0.000000e+00 : f32
    %23 = vector.broadcast %cst_23 : f32 to vector<144x16xf32>
    %24 = arith.cmpf oge, %22, %23 : vector<144x16xf32>
    %cst_24 = arith.constant 0.00999999977 : f32
    %25 = vector.broadcast %cst_24 : f32 to vector<144x16xf32>
    %26 = arith.mulf %22, %25 : vector<144x16xf32>
    %27 = arith.select %24, %22, %26 : vector<144x16xi1>, vector<144x16xf32>
    %c0_25 = arith.constant 0 : index
    %c0_26 = arith.constant 0 : index
    %28 = vector.load %arg5[%c0_25, %c0_26] : memref<144x16xf32, #tpu.memory_space<vmem>>, vector<144x16xf32>
    tpu.vector_store %arg5[%c0_25, %c0_26], %27 {strides = array<i32>} : memref<144x16xf32, #tpu.memory_space<vmem>>, vector<144x16xf32>,
    return
  }
  func.func @transform_0(%arg0: i32) -> (i32, i32) {
    %c0_i32 = arith.constant 0 : i32
    %c0_i32_0 = arith.constant 0 : i32
    return %arg0, %c0_i32 : i32, i32
  }
  func.func @transform_1(%arg0: i32) -> (i32, i32) {
    %c0_i32 = arith.constant 0 : i32
    %c0_i32_0 = arith.constant 0 : i32
    return %arg0, %c0_i32 : i32, i32
  }
  func.func @transform_2(%arg0: i32) -> (i32, i32, i32, i32) {
    %c0_i32 = arith.constant 0 : i32
    %c0_i32_0 = arith.constant 0 : i32
    %c0_i32_1 = arith.constant 0 : i32
    %c0_i32_2 = arith.constant 0 : i32
    %c0_i32_3 = arith.constant 0 : i32
    return %c0_i32, %c0_i32_0, %c0_i32_1, %c0_i32_2 : i32, i32, i32, i32
  }
  func.func @transform_3(%arg0: i32) -> (i32, i32) {
    %c0_i32 = arith.constant 0 : i32
    %c0_i32_0 = arith.constant 0 : i32
    %c0_i32_1 = arith.constant 0 : i32
    return %c0_i32, %c0_i32_0 : i32, i32
  }
  func.func @transform_4(%arg0: i32) -> (i32, i32) {
    %c0_i32 = arith.constant 0 : i32
    %c0_i32_0 = arith.constant 0 : i32
    return %arg0, %c0_i32 : i32, i32
  }
}

module attributes {stable_mosaic.version = 11 : i64} {
  func.func @_conv4x4s2_lrelu_kernel(%arg0: i32, %arg1: memref<40x64xf32, #tpu.memory_space<vmem>>, %arg2: memref<40x64xf32, #tpu.memory_space<vmem>>, %arg3: memref<2x2x64x32xf32, #tpu.memory_space<vmem>>, %arg4: memref<1x32xf32, #tpu.memory_space<vmem>>, %arg5: memref<40x32xf32, #tpu.memory_space<vmem>>) attributes {dimension_semantics = [#tpu.dimension_semantics<parallel>], iteration_bounds = array<i64: 1>, scalar_prefetch = 0 : i64, scratch_operands = 0 : i64, tpu.core_type = #tpu.core_type<tc>, window_params = [{transform_indices = @transform_0, window_bounds = array<i64: 40, 64>}, {transform_indices = @transform_1, window_bounds = array<i64: 40, 64>}, {pipeline_mode = #tpu.pipeline_mode<synchronous>, transform_indices = @transform_2, window_bounds = array<i64: 2, 2, 64, 32>}, {pipeline_mode = #tpu.pipeline_mode<synchronous>, transform_indices = @transform_3, window_bounds = array<i64: 1, 32>}, {transform_indices = @transform_4, window_bounds = array<i64: 40, 32>}]} {
    %c0 = arith.constant 0 : index
    %c0_0 = arith.constant 0 : index
    %0 = vector.load %arg1[%c0, %c0_0] : memref<40x64xf32, #tpu.memory_space<vmem>>, vector<40x64xf32>
    %c0_1 = arith.constant 0 : index
    %c0_2 = arith.constant 0 : index
    %1 = vector.load %arg2[%c0_1, %c0_2] : memref<40x64xf32, #tpu.memory_space<vmem>>, vector<40x64xf32>
    %c0_3 = arith.constant 0 : index
    %c0_4 = arith.constant 0 : index
    %c0_5 = arith.constant 0 : index
    %c0_6 = arith.constant 0 : index
    %2 = vector.load %arg3[%c0_3, %c0_4, %c0_5, %c0_6] : memref<2x2x64x32xf32, #tpu.memory_space<vmem>>, vector<1x1x64x32xf32>
    %3 = vector.shape_cast %2 : vector<1x1x64x32xf32> to vector<64x32xf32>
    %cst = arith.constant dense<0.000000e+00> : vector<40x32xf32>
    %4 = tpu.matmul %0, %3, %cst {dimension_numbers = #tpu.dot_dimension_numbers<[1], [0], [0], [1], [0, 0, 1, 1], [], []>} : vector<40x64xf32>, vector<64x32xf32>, vector<40x32xf32> -> vector<40x32xf32>
    %c1 = arith.constant 1 : index
    %c0_7 = arith.constant 0 : index
    %c0_8 = arith.constant 0 : index
    %c0_9 = arith.constant 0 : index
    %5 = vector.load %arg3[%c1, %c0_7, %c0_8, %c0_9] : memref<2x2x64x32xf32, #tpu.memory_space<vmem>>, vector<1x1x64x32xf32>
    %6 = vector.shape_cast %5 : vector<1x1x64x32xf32> to vector<64x32xf32>
    %cst_10 = arith.constant dense<0.000000e+00> : vector<40x32xf32>
    %7 = tpu.matmul %1, %6, %cst_10 {dimension_numbers = #tpu.dot_dimension_numbers<[1], [0], [0], [1], [0, 0, 1, 1], [], []>} : vector<40x64xf32>, vector<64x32xf32>, vector<40x32xf32> -> vector<40x32xf32>
    %8 = arith.addf %4, %7 : vector<40x32xf32>
    %c0_11 = arith.constant 0 : index
    %c1_12 = arith.constant 1 : index
    %c0_13 = arith.constant 0 : index
    %c0_14 = arith.constant 0 : index
    %9 = vector.load %arg3[%c0_11, %c1_12, %c0_13, %c0_14] : memref<2x2x64x32xf32, #tpu.memory_space<vmem>>, vector<1x1x64x32xf32>
    %10 = vector.shape_cast %9 : vector<1x1x64x32xf32> to vector<64x32xf32>
    %cst_15 = arith.constant dense<0.000000e+00> : vector<40x32xf32>
    %11 = tpu.matmul %0, %10, %cst_15 {dimension_numbers = #tpu.dot_dimension_numbers<[1], [0], [0], [1], [0, 0, 1, 1], [], []>} : vector<40x64xf32>, vector<64x32xf32>, vector<40x32xf32> -> vector<40x32xf32>
    %c1_16 = arith.constant 1 : index
    %c1_17 = arith.constant 1 : index
    %c0_18 = arith.constant 0 : index
    %c0_19 = arith.constant 0 : index
    %12 = vector.load %arg3[%c1_16, %c1_17, %c0_18, %c0_19] : memref<2x2x64x32xf32, #tpu.memory_space<vmem>>, vector<1x1x64x32xf32>
    %13 = vector.shape_cast %12 : vector<1x1x64x32xf32> to vector<64x32xf32>
    %cst_20 = arith.constant dense<0.000000e+00> : vector<40x32xf32>
    %14 = tpu.matmul %1, %13, %cst_20 {dimension_numbers = #tpu.dot_dimension_numbers<[1], [0], [0], [1], [0, 0, 1, 1], [], []>} : vector<40x64xf32>, vector<64x32xf32>, vector<40x32xf32> -> vector<40x32xf32>
    %15 = arith.addf %11, %14 : vector<40x32xf32>
    %16 = vector.extract_strided_slice %15 {offsets = [1, 0], sizes = [39, 32], strides = [1, 1]} : vector<40x32xf32> to vector<39x32xf32>
    %17 = vector.extract_strided_slice %15 {offsets = [0, 0], sizes = [1, 32], strides = [1, 1]} : vector<40x32xf32> to vector<1x32xf32>
    %18 = tpu.concatenate %16, %17 in 0 : vector<39x32xf32>, vector<1x32xf32> -> vector<40x32xf32>
    %19 = arith.addf %8, %18 : vector<40x32xf32>
    %c0_21 = arith.constant 0 : index
    %c0_22 = arith.constant 0 : index
    %20 = vector.load %arg4[%c0_21, %c0_22] : memref<1x32xf32, #tpu.memory_space<vmem>>, vector<1x32xf32>
    %21 = vector.broadcast %20 : vector<1x32xf32> to vector<40x32xf32>
    %22 = arith.addf %19, %21 : vector<40x32xf32>
    %cst_23 = arith.constant 0.000000e+00 : f32
    %23 = vector.broadcast %cst_23 : f32 to vector<40x32xf32>
    %24 = arith.cmpf oge, %22, %23 : vector<40x32xf32>
    %cst_24 = arith.constant 0.00999999977 : f32
    %25 = vector.broadcast %cst_24 : f32 to vector<40x32xf32>
    %26 = arith.mulf %22, %25 : vector<40x32xf32>
    %27 = arith.select %24, %22, %26 : vector<40x32xi1>, vector<40x32xf32>
    %c0_25 = arith.constant 0 : index
    %c0_26 = arith.constant 0 : index
    %28 = vector.load %arg5[%c0_25, %c0_26] : memref<40x32xf32, #tpu.memory_space<vmem>>, vector<40x32xf32>
    tpu.vector_store %arg5[%c0_25, %c0_26], %27 {strides = array<i32>} : memref<40x32xf32, #tpu.memory_space<vmem>>, vector<40x32xf32>,
    return
  }
  func.func @transform_0(%arg0: i32) -> (i32, i32) {
    %c0_i32 = arith.constant 0 : i32
    %c0_i32_0 = arith.constant 0 : i32
    return %arg0, %c0_i32 : i32, i32
  }
  func.func @transform_1(%arg0: i32) -> (i32, i32) {
    %c0_i32 = arith.constant 0 : i32
    %c0_i32_0 = arith.constant 0 : i32
    return %arg0, %c0_i32 : i32, i32
  }
  func.func @transform_2(%arg0: i32) -> (i32, i32, i32, i32) {
    %c0_i32 = arith.constant 0 : i32
    %c0_i32_0 = arith.constant 0 : i32
    %c0_i32_1 = arith.constant 0 : i32
    %c0_i32_2 = arith.constant 0 : i32
    %c0_i32_3 = arith.constant 0 : i32
    return %c0_i32, %c0_i32_0, %c0_i32_1, %c0_i32_2 : i32, i32, i32, i32
  }
  func.func @transform_3(%arg0: i32) -> (i32, i32) {
    %c0_i32 = arith.constant 0 : i32
    %c0_i32_0 = arith.constant 0 : i32
    %c0_i32_1 = arith.constant 0 : i32
    return %c0_i32, %c0_i32_0 : i32, i32
  }
  func.func @transform_4(%arg0: i32) -> (i32, i32) {
    %c0_i32 = arith.constant 0 : i32
    %c0_i32_0 = arith.constant 0 : i32
    return %arg0, %c0_i32 : i32, i32
  }
}

module attributes {stable_mosaic.version = 11 : i64} {
  func.func @_conv3x3s1_kernel(%arg0: i32, %arg1: memref<48x32xf32, #tpu.memory_space<vmem>>, %arg2: memref<48x32xf32, #tpu.memory_space<vmem>>, %arg3: memref<48x32xf32, #tpu.memory_space<vmem>>, %arg4: memref<3x3x32x1xf32, #tpu.memory_space<vmem>>, %arg5: memref<48x1xf32, #tpu.memory_space<vmem>>) attributes {dimension_semantics = [#tpu.dimension_semantics<parallel>], iteration_bounds = array<i64: 1>, scalar_prefetch = 0 : i64, scratch_operands = 0 : i64, tpu.core_type = #tpu.core_type<tc>, window_params = [{transform_indices = @transform_0, window_bounds = array<i64: 48, 32>}, {transform_indices = @transform_1, window_bounds = array<i64: 48, 32>}, {transform_indices = @transform_2, window_bounds = array<i64: 48, 32>}, {pipeline_mode = #tpu.pipeline_mode<synchronous>, transform_indices = @transform_3, window_bounds = array<i64: 3, 3, 32, 1>}, {transform_indices = @transform_4, window_bounds = array<i64: 48, 1>}]} {
    %c0 = arith.constant 0 : index
    %c0_0 = arith.constant 0 : index
    %0 = vector.load %arg1[%c0, %c0_0] : memref<48x32xf32, #tpu.memory_space<vmem>>, vector<48x32xf32>
    %c0_1 = arith.constant 0 : index
    %c0_2 = arith.constant 0 : index
    %1 = vector.load %arg2[%c0_1, %c0_2] : memref<48x32xf32, #tpu.memory_space<vmem>>, vector<48x32xf32>
    %c0_3 = arith.constant 0 : index
    %c0_4 = arith.constant 0 : index
    %2 = vector.load %arg3[%c0_3, %c0_4] : memref<48x32xf32, #tpu.memory_space<vmem>>, vector<48x32xf32>
    %c0_5 = arith.constant 0 : index
    %c0_6 = arith.constant 0 : index
    %c0_7 = arith.constant 0 : index
    %c0_8 = arith.constant 0 : index
    %3 = vector.load %arg4[%c0_5, %c0_6, %c0_7, %c0_8] : memref<3x3x32x1xf32, #tpu.memory_space<vmem>>, vector<1x1x32x1xf32>
    %4 = vector.shape_cast %3 : vector<1x1x32x1xf32> to vector<32x1xf32>
    %cst = arith.constant dense<0.000000e+00> : vector<48x1xf32>
    %5 = tpu.matmul %0, %4, %cst {dimension_numbers = #tpu.dot_dimension_numbers<[1], [0], [0], [1], [0, 0, 1, 1], [], []>} : vector<48x32xf32>, vector<32x1xf32>, vector<48x1xf32> -> vector<48x1xf32>
    %c1 = arith.constant 1 : index
    %c0_9 = arith.constant 0 : index
    %c0_10 = arith.constant 0 : index
    %c0_11 = arith.constant 0 : index
    %6 = vector.load %arg4[%c1, %c0_9, %c0_10, %c0_11] : memref<3x3x32x1xf32, #tpu.memory_space<vmem>>, vector<1x1x32x1xf32>
    %7 = vector.shape_cast %6 : vector<1x1x32x1xf32> to vector<32x1xf32>
    %cst_12 = arith.constant dense<0.000000e+00> : vector<48x1xf32>
    %8 = tpu.matmul %1, %7, %cst_12 {dimension_numbers = #tpu.dot_dimension_numbers<[1], [0], [0], [1], [0, 0, 1, 1], [], []>} : vector<48x32xf32>, vector<32x1xf32>, vector<48x1xf32> -> vector<48x1xf32>
    %9 = arith.addf %5, %8 : vector<48x1xf32>
    %c2 = arith.constant 2 : index
    %c0_13 = arith.constant 0 : index
    %c0_14 = arith.constant 0 : index
    %c0_15 = arith.constant 0 : index
    %10 = vector.load %arg4[%c2, %c0_13, %c0_14, %c0_15] : memref<3x3x32x1xf32, #tpu.memory_space<vmem>>, vector<1x1x32x1xf32>
    %11 = vector.shape_cast %10 : vector<1x1x32x1xf32> to vector<32x1xf32>
    %cst_16 = arith.constant dense<0.000000e+00> : vector<48x1xf32>
    %12 = tpu.matmul %2, %11, %cst_16 {dimension_numbers = #tpu.dot_dimension_numbers<[1], [0], [0], [1], [0, 0, 1, 1], [], []>} : vector<48x32xf32>, vector<32x1xf32>, vector<48x1xf32> -> vector<48x1xf32>
    %13 = arith.addf %9, %12 : vector<48x1xf32>
    %c0_17 = arith.constant 0 : index
    %c1_18 = arith.constant 1 : index
    %c0_19 = arith.constant 0 : index
    %c0_20 = arith.constant 0 : index
    %14 = vector.load %arg4[%c0_17, %c1_18, %c0_19, %c0_20] : memref<3x3x32x1xf32, #tpu.memory_space<vmem>>, vector<1x1x32x1xf32>
    %15 = vector.shape_cast %14 : vector<1x1x32x1xf32> to vector<32x1xf32>
    %cst_21 = arith.constant dense<0.000000e+00> : vector<48x1xf32>
    %16 = tpu.matmul %0, %15, %cst_21 {dimension_numbers = #tpu.dot_dimension_numbers<[1], [0], [0], [1], [0, 0, 1, 1], [], []>} : vector<48x32xf32>, vector<32x1xf32>, vector<48x1xf32> -> vector<48x1xf32>
    %c1_22 = arith.constant 1 : index
    %c1_23 = arith.constant 1 : index
    %c0_24 = arith.constant 0 : index
    %c0_25 = arith.constant 0 : index
    %17 = vector.load %arg4[%c1_22, %c1_23, %c0_24, %c0_25] : memref<3x3x32x1xf32, #tpu.memory_space<vmem>>, vector<1x1x32x1xf32>
    %18 = vector.shape_cast %17 : vector<1x1x32x1xf32> to vector<32x1xf32>
    %cst_26 = arith.constant dense<0.000000e+00> : vector<48x1xf32>
    %19 = tpu.matmul %1, %18, %cst_26 {dimension_numbers = #tpu.dot_dimension_numbers<[1], [0], [0], [1], [0, 0, 1, 1], [], []>} : vector<48x32xf32>, vector<32x1xf32>, vector<48x1xf32> -> vector<48x1xf32>
    %20 = arith.addf %16, %19 : vector<48x1xf32>
    %c2_27 = arith.constant 2 : index
    %c1_28 = arith.constant 1 : index
    %c0_29 = arith.constant 0 : index
    %c0_30 = arith.constant 0 : index
    %21 = vector.load %arg4[%c2_27, %c1_28, %c0_29, %c0_30] : memref<3x3x32x1xf32, #tpu.memory_space<vmem>>, vector<1x1x32x1xf32>
    %22 = vector.shape_cast %21 : vector<1x1x32x1xf32> to vector<32x1xf32>
    %cst_31 = arith.constant dense<0.000000e+00> : vector<48x1xf32>
    %23 = tpu.matmul %2, %22, %cst_31 {dimension_numbers = #tpu.dot_dimension_numbers<[1], [0], [0], [1], [0, 0, 1, 1], [], []>} : vector<48x32xf32>, vector<32x1xf32>, vector<48x1xf32> -> vector<48x1xf32>
    %24 = arith.addf %20, %23 : vector<48x1xf32>
    %25 = vector.extract_strided_slice %24 {offsets = [1, 0], sizes = [47, 1], strides = [1, 1]} : vector<48x1xf32> to vector<47x1xf32>
    %26 = vector.extract_strided_slice %24 {offsets = [0, 0], sizes = [1, 1], strides = [1, 1]} : vector<48x1xf32> to vector<1x1xf32>
    %27 = tpu.concatenate %25, %26 in 0 : vector<47x1xf32>, vector<1x1xf32> -> vector<48x1xf32>
    %28 = arith.addf %13, %27 : vector<48x1xf32>
    %c0_32 = arith.constant 0 : index
    %c2_33 = arith.constant 2 : index
    %c0_34 = arith.constant 0 : index
    %c0_35 = arith.constant 0 : index
    %29 = vector.load %arg4[%c0_32, %c2_33, %c0_34, %c0_35] : memref<3x3x32x1xf32, #tpu.memory_space<vmem>>, vector<1x1x32x1xf32>
    %30 = vector.shape_cast %29 : vector<1x1x32x1xf32> to vector<32x1xf32>
    %cst_36 = arith.constant dense<0.000000e+00> : vector<48x1xf32>
    %31 = tpu.matmul %0, %30, %cst_36 {dimension_numbers = #tpu.dot_dimension_numbers<[1], [0], [0], [1], [0, 0, 1, 1], [], []>} : vector<48x32xf32>, vector<32x1xf32>, vector<48x1xf32> -> vector<48x1xf32>
    %c1_37 = arith.constant 1 : index
    %c2_38 = arith.constant 2 : index
    %c0_39 = arith.constant 0 : index
    %c0_40 = arith.constant 0 : index
    %32 = vector.load %arg4[%c1_37, %c2_38, %c0_39, %c0_40] : memref<3x3x32x1xf32, #tpu.memory_space<vmem>>, vector<1x1x32x1xf32>
    %33 = vector.shape_cast %32 : vector<1x1x32x1xf32> to vector<32x1xf32>
    %cst_41 = arith.constant dense<0.000000e+00> : vector<48x1xf32>
    %34 = tpu.matmul %1, %33, %cst_41 {dimension_numbers = #tpu.dot_dimension_numbers<[1], [0], [0], [1], [0, 0, 1, 1], [], []>} : vector<48x32xf32>, vector<32x1xf32>, vector<48x1xf32> -> vector<48x1xf32>
    %35 = arith.addf %31, %34 : vector<48x1xf32>
    %c2_42 = arith.constant 2 : index
    %c2_43 = arith.constant 2 : index
    %c0_44 = arith.constant 0 : index
    %c0_45 = arith.constant 0 : index
    %36 = vector.load %arg4[%c2_42, %c2_43, %c0_44, %c0_45] : memref<3x3x32x1xf32, #tpu.memory_space<vmem>>, vector<1x1x32x1xf32>
    %37 = vector.shape_cast %36 : vector<1x1x32x1xf32> to vector<32x1xf32>
    %cst_46 = arith.constant dense<0.000000e+00> : vector<48x1xf32>
    %38 = tpu.matmul %2, %37, %cst_46 {dimension_numbers = #tpu.dot_dimension_numbers<[1], [0], [0], [1], [0, 0, 1, 1], [], []>} : vector<48x32xf32>, vector<32x1xf32>, vector<48x1xf32> -> vector<48x1xf32>
    %39 = arith.addf %35, %38 : vector<48x1xf32>
    %40 = vector.extract_strided_slice %39 {offsets = [2, 0], sizes = [46, 1], strides = [1, 1]} : vector<48x1xf32> to vector<46x1xf32>
    %41 = vector.extract_strided_slice %39 {offsets = [0, 0], sizes = [2, 1], strides = [1, 1]} : vector<48x1xf32> to vector<2x1xf32>
    %42 = tpu.concatenate %40, %41 in 0 : vector<46x1xf32>, vector<2x1xf32> -> vector<48x1xf32>
    %43 = arith.addf %28, %42 : vector<48x1xf32>
    %c0_47 = arith.constant 0 : index
    %c0_48 = arith.constant 0 : index
    %44 = vector.load %arg5[%c0_47, %c0_48] : memref<48x1xf32, #tpu.memory_space<vmem>>, vector<48x1xf32>
    tpu.vector_store %arg5[%c0_47, %c0_48], %43 {strides = array<i32>} : memref<48x1xf32, #tpu.memory_space<vmem>>, vector<48x1xf32>,
    return
  }
  func.func @transform_0(%arg0: i32) -> (i32, i32) {
    %c0_i32 = arith.constant 0 : i32
    %c0_i32_0 = arith.constant 0 : i32
    return %arg0, %c0_i32 : i32, i32
  }
  func.func @transform_1(%arg0: i32) -> (i32, i32) {
    %c0_i32 = arith.constant 0 : i32
    %c0_i32_0 = arith.constant 0 : i32
    return %arg0, %c0_i32 : i32, i32
  }
  func.func @transform_2(%arg0: i32) -> (i32, i32) {
    %c0_i32 = arith.constant 0 : i32
    %c0_i32_0 = arith.constant 0 : i32
    return %arg0, %c0_i32 : i32, i32
  }
  func.func @transform_3(%arg0: i32) -> (i32, i32, i32, i32) {
    %c0_i32 = arith.constant 0 : i32
    %c0_i32_0 = arith.constant 0 : i32
    %c0_i32_1 = arith.constant 0 : i32
    %c0_i32_2 = arith.constant 0 : i32
    %c0_i32_3 = arith.constant 0 : i32
    return %c0_i32, %c0_i32_0, %c0_i32_1, %c0_i32_2 : i32, i32, i32, i32
  }
  func.func @transform_4(%arg0: i32) -> (i32, i32) {
    %c0_i32 = arith.constant 0 : i32
    %c0_i32_0 = arith.constant 0 : i32
    return %arg0, %c0_i32 : i32, i32
  }
}

</mosaic_0001>

<bundles_post_ra>
// kernel: discriminator_forward.4
= control target key start
LH: loop header
LB: loop body
LE: loop exit
PB: predicated region body
PF: predicated region fallthrough
CT: control target
= control target key end

     0   :  { %s2440_s15 = smov 0   ;;  %s3238_s0 = inlined_call_operand.vmem [shape: f32[544,12], index: 0, kind: input, shape index: {}]   ;;  %s3239_s1 = inlined_call_operand.vmem [shape: f32[544,12], index: 1, kind: input, shape index: {}]   ;;  %s3240_s2 = inlined_call_operand.vmem [shape: f32[2,2,12,8], index: 2, kind: input, shape index: {}]   ;;  %s3241_s3 = inlined_call_operand.vmem [shape: f32[1,8], index: 3, kind: input, shape index: {}]   ;;  %s3242_s4 = inlined_call_operand.vmem [shape: f32[544,8], index: 4, kind: output, shape index: {}]  }
   0x1 LB: > { %s1878_s16 = sadd.s32 4294967295, %s2413_s15   ;;  %p1882_p0 = scmp.ge.s32.totalorder %s2413_s15, 1  ;;  %s2413_s15 = sphi %s2440_s15, %s14_s15  }
   0x2   : > { %p174_p1 = scmp.lt.s32.totalorder %s2413_s15, 3 }
   0x4   : > { %p175_p2 = pnand %p1882_p0, %p174_p1 }
   0x6   : > { %178 = sbr.rel (%p175_p2) target bundleno = 366 (0x16e), region = 36 }
   0xb   : > { %v1887_v0 = vld [vmem:[%s3240_s2 + $0x28] sm:$0xf]  ;;  %vm399_vm0 = vcmask 1043456   ;;  %v1886_v2 = vld [vmem:[%s3240_s2 + $0x20] sm:$0xff]  ;;  %s205_s25 = smul.u32 34, %s1878_s16  ;;  %vm296_vm1 = vcmask 97280  }
   0xc   : > { %v292_v1 = vld [vmem:[%s3240_s2 + $0x8] sm:$0xf]  ;;  %2179 = vmatprep.subr.msk.mxu0 %vm399_vm0, %v1887_v0  ;;  %v291_v3 = vld [vmem:[%s3240_s2] sm:$0xff]  ;;  %v1961_v4 = vld [vmem:[%s3240_s2 + $0x38] sm:$0xf]  ;;  %vm1494_vm2 = vcmask 1046528  }
   0xd   : > { %2234 = vmatprep.subr.msk.mxu1 %vm399_vm0, %v292_v1  ;;  %2180 = vmatpush3.msk.msra.mxu0 %vm399_vm0, %v1887_v0  ;;  %v1959_v5 = vld [vmem:[%s3240_s2 + $0x18] sm:$0xf]  ;;  %p206_p3 = scmp.lt.s32.totalorder %s205_s25, 67  ;;  %v1960_v12 = vld [vmem:[%s3240_s2 + $0x30] sm:$0xff]  ;;  %vm1775_vm3 = vcmask 64512  }
   0xe   : > { %2235 = vmatpush3.msk.msra.mxu1 %vm399_vm0, %v292_v1  ;;  %2181 = vmatprep.subr.mxu0 %v1886_v2  ;;  %v1958_v14 = vld [vmem:[%s3240_s2 + $0x10] sm:$0xff] }
   0xf   : > { %2236 = vmatprep.subr.mxu1 %v291_v3  ;;  %2182 = vmatpush3.msra.mxu0 %v1886_v2  ;;  %s3256_s25 = smov (!%p206_p3, %s205_s25), 67 }
  0x10   : > { %2237 = vmatpush3.msra.mxu1 %v291_v3  ;;  %2289 = vmatprep.subr.msk.mxu0 %vm399_vm0, %v1961_v4  ;;  %s2472_s30 = sshll.u32 %s3256_s25, 3 }
  0x11   : > { %2344 = vmatprep.subr.msk.mxu1 %vm399_vm0, %v1959_v5  ;;  %s2478_s7 = scalar_lea.vmem %s3239_s1, %s2472_s30  ;;  %s2487_s10 = scalar_lea.vmem %s3238_s0, %s2472_s30 }
  0x12   : > { %v2481_v6 = vld [vmem:[%s2478_s7] sm:$0xff]  ;;  %v2490_v7 = vld [vmem:[%s2478_s7 + $0x8] sm:$0xff]  ;;  %v2501_v10 = vld [vmem:[%s2478_s7 + $0x10] sm:$0xff]  ;;  %s3057_s20 = scalar_lea.vmem %s3242_s4, %s2472_s30 }
  0x13   : > { %2183 = vmatprep.mubr.msk.f32.mxu0 %vm296_vm1, %v2481_v6  ;;  %v2495_v8 = vld [vmem:[%s2487_s10] sm:$0xff]  ;;  %v2498_v9 = vld [vmem:[%s2487_s10 + $0x8] sm:$0xff]  ;;  %v2508_v11 = vld [vmem:[%s2487_s10 + $0x10] sm:$0xff] }
  0x14   : > { %2238 = vmatprep.mubr.msk.f32.mxu1 %vm296_vm1, %v2495_v8  ;;  %2184 = vmatmul.mubr.msk.f32.vlgmr.msra.gmra.mxu0 %vm296_vm1, %v2490_v7  ;;  %v2517_v13 = vld [vmem:[%s2478_s7 + $0x18] sm:$0xff]  ;;  %v2529_v16 = vld [vmem:[%s2478_s7 + $0x20] sm:$0xff]  ;;  %v2543_v18 = vld [vmem:[%s2478_s7 + $0x28] sm:$0xff] }
  0x15   : > { %2239 = vmatmul.mubr.msk.f32.vlgmr.msra.gmra.mxu1 %vm296_vm1, %v2498_v9  ;;  %2290 = vmatpush3.msk.msra.mxu0 %vm399_vm0, %v1961_v4  ;;  %v2526_v15 = vld [vmem:[%s2487_s10 + $0x18] sm:$0xff]  ;;  %v2534_v17 = vld [vmem:[%s2487_s10 + $0x20] sm:$0xff]  ;;  %v2548_v19 = vld [vmem:[%s2487_s10 + $0x28] sm:$0xff] }
  0x16   : > { %2345 = vmatpush3.msk.msra.mxu1 %vm399_vm0, %v1959_v5  ;;  %2186 = vmatprep.mubr.msk.f32.mxu0 %vm296_vm1, %v2501_v10  ;;  %v2551_v20 = vld [vmem:[%s2478_s7 + $0x30] sm:$0xff]  ;;  %v2563_v22 = vld [vmem:[%s2478_s7 + $0x38] sm:$0xff]  ;;  %v2571_v24 = vld [vmem:[%s2478_s7 + $0x40] sm:$0xff] }
  0x17   : > { %2241 = vmatprep.mubr.msk.f32.mxu1 %vm296_vm1, %v2508_v11  ;;  %2291 = vmatprep.subr.mxu0 %v1960_v12  ;;  %v2554_v21 = vld [vmem:[%s2487_s10 + $0x30] sm:$0xff]  ;;  %v2568_v23 = vld [vmem:[%s2487_s10 + $0x38] sm:$0xff]  ;;  %v2574_v25 = vld [vmem:[%s2487_s10 + $0x40] sm:$0xff] }
  0x18   : > { %2187 = vmatmul.mubr.msk.f32.gmra.mxu0 %vm296_vm1, %v2517_v13  ;;  %2346 = vmatprep.subr.mxu1 %v1958_v14  ;;  %v2583_v26 = vld [vmem:[%s2478_s7 + $0x48] sm:$0xff]  ;;  %v2591_v28 = vld [vmem:[%s2478_s7 + $0x50] sm:$0xff]  ;;  %v2603_v30 = vld [vmem:[%s2478_s7 + $0x58] sm:$0xff] }
  0x19   : > { %2242 = vmatmul.mubr.msk.f32.gmra.mxu1 %vm296_vm1, %v2526_v15  ;;  %2189 = vmatprep.mubr.msk.f32.mxu0 %vm296_vm1, %v2529_v16  ;;  %v2588_v27 = vld [vmem:[%s2487_s10 + $0x48] sm:$0xff]  ;;  %v2594_v29 = vld [vmem:[%s2487_s10 + $0x50] sm:$0xff]  ;;  %v2608_v31 = vld [vmem:[%s2487_s10 + $0x58] sm:$0xff] }
  0x1a   : > { %2244 = vmatprep.mubr.msk.f32.mxu1 %vm296_vm1, %v2534_v17  ;;  %2292 = vmatpush3.msra.mxu0 %v1960_v12  ;;  %v2611_v32 = vld [vmem:[%s2478_s7 + $0x60] sm:$0xff]  ;;  %v2623_v34 = vld [vmem:[%s2478_s7 + $0x68] sm:$0xff]  ;;  %v2631_v36 = vld [vmem:[%s2478_s7 + $0x70] sm:$0xff] }
  0x1b   : > { %2347 = vmatpush3.msra.mxu1 %v1958_v14  ;;  %v2614_v33 = vld [vmem:[%s2487_s10 + $0x60] sm:$0xff]  ;;  %v2628_v35 = vld [vmem:[%s2487_s10 + $0x68] sm:$0xff]  ;;  %v2634_v37 = vld [vmem:[%s2487_s10 + $0x70] sm:$0xff] }
  0x1c   : > { %2190 = vmatmul.mubr.msk.f32.gmra.mxu0 %vm296_vm1, %v2543_v18  ;;  %v2643_v38 = vld [vmem:[%s2478_s7 + $0x78] sm:$0xff]  ;;  %v2651_v40 = vld [vmem:[%s2478_s7 + $0x80] sm:$0xff]  ;;  %v2663_v42 = vld [vmem:[%s2478_s7 + $0x88] sm:$0xff] }
  0x1d   : > { %2245 = vmatmul.mubr.msk.f32.gmra.mxu1 %vm296_vm1, %v2548_v19  ;;  %2192 = vmatprep.mubr.msk.f32.mxu0 %vm296_vm1, %v2551_v20  ;;  %v2648_v39 = vld [vmem:[%s2487_s10 + $0x78] sm:$0xff]  ;;  %v2654_v41 = vld [vmem:[%s2487_s10 + $0x80] sm:$0xff]  ;;  %v2668_v43 = vld [vmem:[%s2487_s10 + $0x88] sm:$0xff] }
  0x1e   : > { %2247 = vmatprep.mubr.msk.f32.mxu1 %vm296_vm1, %v2554_v21  ;;  %v2671_v44 = vld [vmem:[%s2478_s7 + $0x90] sm:$0xff]  ;;  %v2683_v46 = vld [vmem:[%s2478_s7 + $0x98] sm:$0xff]  ;;  %v2691_v48 = vld [vmem:[%s2478_s7 + $0xa0] sm:$0xff] }
  0x1f   : > { %v2674_v45 = vld [vmem:[%s2487_s10 + $0x90] sm:$0xff]  ;;  %v2688_v47 = vld [vmem:[%s2487_s10 + $0x98] sm:$0xff]  ;;  %v2694_v49 = vld [vmem:[%s2487_s10 + $0xa0] sm:$0xff] }
  0x20   : > { %2193 = vmatmul.mubr.msk.f32.gmra.mxu0 %vm296_vm1, %v2563_v22  ;;  %v2703_v50 = vld [vmem:[%s2478_s7 + $0xa8] sm:$0xff]  ;;  %v2711_v52 = vld [vmem:[%s2478_s7 + $0xb0] sm:$0xff]  ;;  %v2723_v54 = vld [vmem:[%s2478_s7 + $0xb8] sm:$0xff] }
  0x21   : > { %2248 = vmatmul.mubr.msk.f32.gmra.mxu1 %vm296_vm1, %v2568_v23  ;;  %2195 = vmatprep.mubr.msk.f32.mxu0 %vm296_vm1, %v2571_v24  ;;  %v2708_v51 = vld [vmem:[%s2487_s10 + $0xa8] sm:$0xff]  ;;  %v2714_v53 = vld [vmem:[%s2487_s10 + $0xb0] sm:$0xff]  ;;  %v2728_v55 = vld [vmem:[%s2487_s10 + $0xb8] sm:$0xff] }
  0x22   : > { %2250 = vmatprep.mubr.msk.f32.mxu1 %vm296_vm1, %v2574_v25  ;;  %v2731_v56 = vld [vmem:[%s2478_s7 + $0xc0] sm:$0xff]  ;;  %v2743_v58 = vld [vmem:[%s2478_s7 + $0xc8] sm:$0xff]  ;;  %v2751_v60 = vld [vmem:[%s2478_s7 + $0xd0] sm:$0xff] }
  0x23   : > { %v2734_v57 = vld [vmem:[%s2487_s10 + $0xc0] sm:$0xff]  ;;  %v2748_v59 = vld [vmem:[%s2487_s10 + $0xc8] sm:$0xff]  ;;  %v2754_v61 = vld [vmem:[%s2487_s10 + $0xd0] sm:$0xff] }
  0x24   : > { %2196 = vmatmul.mubr.msk.f32.gmra.mxu0 %vm296_vm1, %v2583_v26  ;;  %v2763_v62 = vld [vmem:[%s2478_s7 + $0xd8] sm:$0xff]  ;;  %v2771_v0 = vld [vmem:[%s2478_s7 + $0xe0] sm:$0xff]  ;;  %v2783_v2 = vld [vmem:[%s2478_s7 + $0xe8] sm:$0xff] }
  0x25   : > { %2251 = vmatmul.mubr.msk.f32.gmra.mxu1 %vm296_vm1, %v2588_v27  ;;  %2198 = vmatprep.mubr.msk.f32.mxu0 %vm296_vm1, %v2591_v28  ;;  %v2768_v63 = vld [vmem:[%s2487_s10 + $0xd8] sm:$0xff]  ;;  %3247 = vst [vmem:[#allocation2_spill] sm:$0xff] %v2771_v0  ;;  %v2774_v1 = vld [vmem:[%s2487_s10 + $0xe0] sm:$0xff]  ;;  %v2788_v3 = vld [vmem:[%s2487_s10 + $0xe8] sm:$0xff] }
  0x26   : > { %2253 = vmatprep.mubr.msk.f32.mxu1 %vm296_vm1, %v2594_v29  ;;  %3248 = vst [vmem:[#allocation3_spill] sm:$0xff] %v2774_v1  ;;  %v2791_v4 = vld [vmem:[%s2478_s7 + $0xf0] sm:$0xff]  ;;  %v2803_v12 = vld [vmem:[%s2478_s7 + $0xf8] sm:$0xff] }
  0x27   : > { %3249 = vst [vmem:[#allocation4_spill] sm:$0xff] %v2791_v4  ;;  %v2794_v5 = vld [vmem:[%s2487_s10 + $0xf0] sm:$0xff]  ;;  %v2808_v14 = vld [vmem:[%s2487_s10 + $0xf8] sm:$0xff] }
  0x28   : > { %2199 = vmatmul.mubr.msk.f32.gmra.mxu0 %vm296_vm1, %v2603_v30  ;;  %3250 = vst [vmem:[#allocation5_spill] sm:$0xff] %v2794_v5 }
  0x29   : > { %2254 = vmatmul.mubr.msk.f32.gmra.mxu1 %vm296_vm1, %v2608_v31  ;;  %2201 = vmatprep.mubr.msk.f32.mxu0 %vm296_vm1, %v2611_v32 }
  0x2a   : > { %2256 = vmatprep.mubr.msk.f32.mxu1 %vm296_vm1, %v2614_v33 }
  0x2c   : > { %2202 = vmatmul.mubr.msk.f32.gmra.mxu0 %vm296_vm1, %v2623_v34 }
  0x2d   : > { %2257 = vmatmul.mubr.msk.f32.gmra.mxu1 %vm296_vm1, %v2628_v35  ;;  %2204 = vmatprep.mubr.msk.f32.mxu0 %vm296_vm1, %v2631_v36 }
  0x2e   : > { %2259 = vmatprep.mubr.msk.f32.mxu1 %vm296_vm1, %v2634_v37 }
  0x30   : > { %2205 = vmatmul.mubr.msk.f32.gmra.mxu0 %vm296_vm1, %v2643_v38 }
  0x31   : > { %2260 = vmatmul.mubr.msk.f32.gmra.mxu1 %vm296_vm1, %v2648_v39  ;;  %2207 = vmatprep.mubr.msk.f32.mxu0 %vm296_vm1, %v2651_v40 }
  0x32   : > { %2262 = vmatprep.mubr.msk.f32.mxu1 %vm296_vm1, %v2654_v41 }
  0x34   : > { %2208 = vmatmul.mubr.msk.f32.gmra.mxu0 %vm296_vm1, %v2663_v42 }
  0x35   : > { %2263 = vmatmul.mubr.msk.f32.gmra.mxu1 %vm296_vm1, %v2668_v43  ;;  %2210 = vmatprep.mubr.msk.f32.mxu0 %vm296_vm1, %v2671_v44 }
  0x36   : > { %2265 = vmatprep.mubr.msk.f32.mxu1 %vm296_vm1, %v2674_v45 }
  0x38   : > { %2211 = vmatmul.mubr.msk.f32.gmra.mxu0 %vm296_vm1, %v2683_v46 }
  0x39   : > { %2266 = vmatmul.mubr.msk.f32.gmra.mxu1 %vm296_vm1, %v2688_v47  ;;  %2213 = vmatprep.mubr.msk.f32.mxu0 %vm296_vm1, %v2691_v48 }
  0x3a   : > { %2268 = vmatprep.mubr.msk.f32.mxu1 %vm296_vm1, %v2694_v49 }
  0x3c   : > { %2214 = vmatmul.mubr.msk.f32.gmra.mxu0 %vm296_vm1, %v2703_v50 }
  0x3d   : > { %2269 = vmatmul.mubr.msk.f32.gmra.mxu1 %vm296_vm1, %v2708_v51  ;;  %2216 = vmatprep.mubr.msk.f32.mxu0 %vm296_vm1, %v2711_v52 }
  0x3e   : > { %2271 = vmatprep.mubr.msk.f32.mxu1 %vm296_vm1, %v2714_v53 }
  0x40   : > { %2217 = vmatmul.mubr.msk.f32.gmra.mxu0 %vm296_vm1, %v2723_v54 }
  0x41   : > { %2272 = vmatmul.mubr.msk.f32.gmra.mxu1 %vm296_vm1, %v2728_v55  ;;  %2219 = vmatprep.mubr.msk.f32.mxu0 %vm296_vm1, %v2731_v56 }
  0x42   : > { %2274 = vmatprep.mubr.msk.f32.mxu1 %vm296_vm1, %v2734_v57 }
  0x44   : > { %2220 = vmatmul.mubr.msk.f32.gmra.mxu0 %vm296_vm1, %v2743_v58 }
  0x45   : > { %2275 = vmatmul.mubr.msk.f32.gmra.mxu1 %vm296_vm1, %v2748_v59  ;;  %2222 = vmatprep.mubr.msk.f32.mxu0 %vm296_vm1, %v2751_v60 }
  0x46   : > { %2277 = vmatprep.mubr.msk.f32.mxu1 %vm296_vm1, %v2754_v61 }
  0x48   : > { %2223 = vmatmul.mubr.msk.f32.gmra.mxu0 %vm296_vm1, %v2763_v62 }
  0x49   : > { %2278 = vmatmul.mubr.msk.f32.gmra.mxu1 %vm296_vm1, %v2768_v63  ;;  %2225 = vmatprep.mubr.msk.f32.mxu0 %vm296_vm1, %v2771_v0  ;;  %v2814_v0 = vld [vmem:[%s2487_s10 + $0x100] sm:$0xff] }
  0x4a   : > { %2280 = vmatprep.mubr.msk.f32.mxu1 %vm296_vm1, %v2774_v1  ;;  %v2811_v1 = vld [vmem:[%s2478_s7 + $0x100] sm:$0xff] }
  0x4c   : > { %2226 = vmatmul.mubr.msk.f32.gmra.mxu0 %vm296_vm1, %v2783_v2 }
  0x4d   : > { %2281 = vmatmul.mubr.msk.f32.gmra.mxu1 %vm296_vm1, %v2788_v3  ;;  %2228 = vmatprep.mubr.msk.f32.mxu0 %vm296_vm1, %v2791_v4  ;;  %v2823_v4 = vld [vmem:[%s2478_s7 + $0x108] sm:$0xff] }
  0x4e   : > { %2283 = vmatprep.mubr.msk.f32.mxu1 %vm296_vm1, %v2794_v5  ;;  %v2828_v5 = vld [vmem:[%s2487_s10 + $0x108] sm:$0xff] }
  0x50   : > { %2229 = vmatmul.mubr.msk.f32.gmra.mxu0 %vm296_vm1, %v2803_v12 }
  0x51   : > { %2284 = vmatmul.mubr.msk.f32.gmra.mxu1 %vm296_vm1, %v2808_v14  ;;  %2231 = vmatprep.mubr.msk.f32.mxu0 %vm296_vm1, %v2811_v1 }
  0x52   : > { %2286 = vmatprep.mubr.msk.f32.mxu1 %vm296_vm1, %v2814_v0 }
  0x54   : > { %2232 = vmatmul.mubr.msk.f32.gmra.mxu0 %vm296_vm1, %v2823_v4 }
  0x55   : > { %2287 = vmatmul.mubr.msk.f32.gmra.mxu1 %vm296_vm1, %v2828_v5  ;;  %2293 = vmatprep.mubr.msk.f32.mxu0 %vm296_vm1, %v2481_v6  ;;  %v3251_v6 = vld [vmem:[#allocation2_spill] sm:$0xff] }
  0x56   : > { %2348 = vmatprep.mubr.msk.f32.mxu1 %vm296_vm1, %v2495_v8  ;;  %v3253_v8 = vld [vmem:[#allocation4_spill] sm:$0xff] }
  0x58   : > { %2294 = vmatmul.mubr.msk.f32.vlgmr.msra.gmra.mxu0 %vm296_vm1, %v2490_v7  ;;  %v3252_v7 = vld [vmem:[#allocation3_spill] sm:$0xff] }
  0x59   : > { %2349 = vmatmul.mubr.msk.f32.vlgmr.msra.gmra.mxu1 %vm296_vm1, %v2498_v9  ;;  %2296 = vmatprep.mubr.msk.f32.mxu0 %vm296_vm1, %v2501_v10  ;;  %v3254_v9 = vld [vmem:[#allocation5_spill] sm:$0xff] }
  0x5a   : > { %2351 = vmatprep.mubr.msk.f32.mxu1 %vm296_vm1, %v2508_v11 }
  0x5c   : > { %2297 = vmatmul.mubr.msk.f32.gmra.mxu0 %vm296_vm1, %v2517_v13 }
  0x5d   : > { %2352 = vmatmul.mubr.msk.f32.gmra.mxu1 %vm296_vm1, %v2526_v15  ;;  %2299 = vmatprep.mubr.msk.f32.mxu0 %vm296_vm1, %v2529_v16 }
  0x5e   : > { %2354 = vmatprep.mubr.msk.f32.mxu1 %vm296_vm1, %v2534_v17 }
  0x60   : > { %2300 = vmatmul.mubr.msk.f32.gmra.mxu0 %vm296_vm1, %v2543_v18 }
  0x61   : > { %2355 = vmatmul.mubr.msk.f32.gmra.mxu1 %vm296_vm1, %v2548_v19  ;;  %2302 = vmatprep.mubr.msk.f32.mxu0 %vm296_vm1, %v2551_v20 }
  0x62   : > { %2357 = vmatprep.mubr.msk.f32.mxu1 %vm296_vm1, %v2554_v21 }
  0x64   : > { %2303 = vmatmul.mubr.msk.f32.gmra.mxu0 %vm296_vm1, %v2563_v22 }
  0x65   : > { %2358 = vmatmul.mubr.msk.f32.gmra.mxu1 %vm296_vm1, %v2568_v23  ;;  %2305 = vmatprep.mubr.msk.f32.mxu0 %vm296_vm1, %v2571_v24 }
  0x66   : > { %2360 = vmatprep.mubr.msk.f32.mxu1 %vm296_vm1, %v2574_v25 }
  0x68   : > { %2306 = vmatmul.mubr.msk.f32.gmra.mxu0 %vm296_vm1, %v2583_v26 }
  0x69   : > { %2361 = vmatmul.mubr.msk.f32.gmra.mxu1 %vm296_vm1, %v2588_v27  ;;  %2308 = vmatprep.mubr.msk.f32.mxu0 %vm296_vm1, %v2591_v28 }
  0x6a   : > { %2363 = vmatprep.mubr.msk.f32.mxu1 %vm296_vm1, %v2594_v29 }
  0x6c   : > { %2309 = vmatmul.mubr.msk.f32.gmra.mxu0 %vm296_vm1, %v2603_v30 }
  0x6d   : > { %2364 = vmatmul.mubr.msk.f32.gmra.mxu1 %vm296_vm1, %v2608_v31  ;;  %2311 = vmatprep.mubr.msk.f32.mxu0 %vm296_vm1, %v2611_v32 }
  0x6e   : > { %2366 = vmatprep.mubr.msk.f32.mxu1 %vm296_vm1, %v2614_v33 }
  0x70   : > { %2312 = vmatmul.mubr.msk.f32.gmra.mxu0 %vm296_vm1, %v2623_v34 }
  0x71   : > { %2367 = vmatmul.mubr.msk.f32.gmra.mxu1 %vm296_vm1, %v2628_v35  ;;  %2314 = vmatprep.mubr.msk.f32.mxu0 %vm296_vm1, %v2631_v36 }
  0x72   : > { %2369 = vmatprep.mubr.msk.f32.mxu1 %vm296_vm1, %v2634_v37 }
  0x74   : > { %2315 = vmatmul.mubr.msk.f32.gmra.mxu0 %vm296_vm1, %v2643_v38 }
  0x75   : > { %2370 = vmatmul.mubr.msk.f32.gmra.mxu1 %vm296_vm1, %v2648_v39  ;;  %2317 = vmatprep.mubr.msk.f32.mxu0 %vm296_vm1, %v2651_v40 }
  0x76   : > { %2372 = vmatprep.mubr.msk.f32.mxu1 %vm296_vm1, %v2654_v41 }
  0x78   : > { %2318 = vmatmul.mubr.msk.f32.gmra.mxu0 %vm296_vm1, %v2663_v42 }
  0x79   : > { %2373 = vmatmul.mubr.msk.f32.gmra.mxu1 %vm296_vm1, %v2668_v43  ;;  %2320 = vmatprep.mubr.msk.f32.mxu0 %vm296_vm1, %v2671_v44 }
  0x7a   : > { %2375 = vmatprep.mubr.msk.f32.mxu1 %vm296_vm1, %v2674_v45 }
  0x7c   : > { %2321 = vmatmul.mubr.msk.f32.gmra.mxu0 %vm296_vm1, %v2683_v46 }
  0x7d   : > { %2376 = vmatmul.mubr.msk.f32.gmra.mxu1 %vm296_vm1, %v2688_v47  ;;  %2323 = vmatprep.mubr.msk.f32.mxu0 %vm296_vm1, %v2691_v48 }
  0x7e   : > { %2378 = vmatprep.mubr.msk.f32.mxu1 %vm296_vm1, %v2694_v49 }
  0x80   : > { %2324 = vmatmul.mubr.msk.f32.gmra.mxu0 %vm296_vm1, %v2703_v50 }
  0x81   : > { %2379 = vmatmul.mubr.msk.f32.gmra.mxu1 %vm296_vm1, %v2708_v51  ;;  %2326 = vmatprep.mubr.msk.f32.mxu0 %vm296_vm1, %v2711_v52 }
  0x82   : > { %2381 = vmatprep.mubr.msk.f32.mxu1 %vm296_vm1, %v2714_v53 }
  0x84   : > { %2327 = vmatmul.mubr.msk.f32.gmra.mxu0 %vm296_vm1, %v2723_v54 }
  0x85   : > { %2382 = vmatmul.mubr.msk.f32.gmra.mxu1 %vm296_vm1, %v2728_v55  ;;  %2329 = vmatprep.mubr.msk.f32.mxu0 %vm296_vm1, %v2731_v56 }
  0x86   : > { %2384 = vmatprep.mubr.msk.f32.mxu1 %vm296_vm1, %v2734_v57 }
  0x88   : > { %2330 = vmatmul.mubr.msk.f32.gmra.mxu0 %vm296_vm1, %v2743_v58 }
  0x89   : > { %2385 = vmatmul.mubr.msk.f32.gmra.mxu1 %vm296_vm1, %v2748_v59  ;;  %2332 = vmatprep.mubr.msk.f32.mxu0 %vm296_vm1, %v2751_v60 }
  0x8a   : > { %2387 = vmatprep.mubr.msk.f32.mxu1 %vm296_vm1, %v2754_v61 }
  0x8c   : > { %2333 = vmatmul.mubr.msk.f32.gmra.mxu0 %vm296_vm1, %v2763_v62 }
  0x8d   : > { %2388 = vmatmul.mubr.msk.f32.gmra.mxu1 %vm296_vm1, %v2768_v63  ;;  %2335 = vmatprep.mubr.msk.f32.mxu0 %vm296_vm1, %v3251_v6 }
  0x8e   : > { %2390 = vmatprep.mubr.msk.f32.mxu1 %vm296_vm1, %v3252_v7 }
  0x90   : > { %2336 = vmatmul.mubr.msk.f32.gmra.mxu0 %vm296_vm1, %v2783_v2 }
  0x91   : > { %2391 = vmatmul.mubr.msk.f32.gmra.mxu1 %vm296_vm1, %v2788_v3  ;;  %2338 = vmatprep.mubr.msk.f32.mxu0 %vm296_vm1, %v3253_v8 }
  0x92   : > { %2393 = vmatprep.mubr.msk.f32.mxu1 %vm296_vm1, %v3254_v9 }
  0x94   : > { %2339 = vmatmul.mubr.msk.f32.gmra.mxu0 %vm296_vm1, %v2803_v12 }
  0x95   : > { %2394 = vmatmul.mubr.msk.f32.gmra.mxu1 %vm296_vm1, %v2808_v14  ;;  %2341 = vmatprep.mubr.msk.f32.mxu0 %vm296_vm1, %v2811_v1 }
  0x96   : > { %2396 = vmatprep.mubr.msk.f32.mxu1 %vm296_vm1, %v2814_v0 }
  0x98   : > { %2342 = vmatmul.mubr.msk.f32.gmra.mxu0 %vm296_vm1, %v2823_v4 }
  0x99   : > { %2397 = vmatmul.mubr.msk.f32.gmra.mxu1 %vm296_vm1, %v2828_v5 }
  0xd4   : > { %v2185_v10 = vpop.f32.mrf.mxu0 }
  0xd5   : > { %v2240_v11 = vpop.f32.mrf.mxu1 }
  0xd6   : > { %v2970_v13 = vadd.f32 %v2240_v11, %v2185_v10  ;;  %v469_v15 = vpop.f32.mrf.mxu0 }
  0xd7   : > { %v809_v16 = vpop.f32.mrf.mxu1 }
  0xd8   : > { %v2972_v17 = vadd.f32 %v809_v16, %v469_v15  ;;  %v2188_v18 = vpop.f32.mrf.mxu0 }
  0xd9   : > { %v2243_v19 = vpop.f32.mrf.mxu1 }
  0xda   : > { %v2974_v20 = vadd.f32 %v2243_v19, %v2188_v18  ;;  %v479_v21 = vpop.f32.mrf.mxu0 }
  0xdb   : > { %v819_v22 = vpop.f32.mrf.mxu1 }
  0xdc   : > { %v2976_v23 = vadd.f32 %v819_v22, %v479_v21  ;;  %v2191_v24 = vpop.f32.mrf.mxu0 }
  0xdd   : > { %v2246_v25 = vpop.f32.mrf.mxu1 }
  0xde   : > { %v2978_v26 = vadd.f32 %v2246_v25, %v2191_v24  ;;  %v489_v27 = vpop.f32.mrf.mxu0 }
  0xdf   : > { %v829_v28 = vpop.f32.mrf.mxu1 }
  0xe0   : > { %v2980_v29 = vadd.f32 %v829_v28, %v489_v27  ;;  %v2194_v30 = vpop.f32.mrf.mxu0 }
  0xe1   : > { %v2249_v31 = vpop.f32.mrf.mxu1 }
  0xe2   : > { %v2982_v32 = vadd.f32 %v2249_v31, %v2194_v30  ;;  %v499_v33 = vpop.f32.mrf.mxu0 }
  0xe3   : > { %v839_v34 = vpop.f32.mrf.mxu1 }
  0xe4   : > { %v2984_v35 = vadd.f32 %v839_v34, %v499_v33  ;;  %v2197_v36 = vpop.f32.mrf.mxu0 }
  0xe5   : > { %v2252_v37 = vpop.f32.mrf.mxu1 }
  0xe6   : > { %v2986_v38 = vadd.f32 %v2252_v37, %v2197_v36  ;;  %v509_v39 = vpop.f32.mrf.mxu0 }
  0xe7   : > { %v849_v40 = vpop.f32.mrf.mxu1 }
  0xe8   : > { %v2988_v41 = vadd.f32 %v849_v40, %v509_v39  ;;  %v2200_v42 = vpop.f32.mrf.mxu0 }
  0xe9   : > { %v2255_v43 = vpop.f32.mrf.mxu1 }
  0xea   : > { %v2990_v44 = vadd.f32 %v2255_v43, %v2200_v42  ;;  %v519_v45 = vpop.f32.mrf.mxu0 }
  0xeb   : > { %v859_v46 = vpop.f32.mrf.mxu1 }
  0xec   : > { %v2992_v47 = vadd.f32 %v859_v46, %v519_v45  ;;  %v2203_v48 = vpop.f32.mrf.mxu0 }
  0xed   : > { %v2258_v49 = vpop.f32.mrf.mxu1 }
  0xee   : > { %v2994_v50 = vadd.f32 %v2258_v49, %v2203_v48  ;;  %v529_v51 = vpop.f32.mrf.mxu0 }
  0xef   : > { %v869_v52 = vpop.f32.mrf.mxu1 }
  0xf0   : > { %v2996_v53 = vadd.f32 %v869_v52, %v529_v51  ;;  %v2206_v54 = vpop.f32.mrf.mxu0 }
  0xf1   : > { %v2261_v55 = vpop.f32.mrf.mxu1 }
  0xf2   : > { %v2998_v56 = vadd.f32 %v2261_v55, %v2206_v54  ;;  %v539_v57 = vpop.f32.mrf.mxu0 }
  0xf3   : > { %v879_v58 = vpop.f32.mrf.mxu1 }
  0xf4   : > { %v3000_v59 = vadd.f32 %v879_v58, %v539_v57  ;;  %v2209_v60 = vpop.f32.mrf.mxu0 }
  0xf5   : > { %v2264_v61 = vpop.f32.mrf.mxu1 }
  0xf6   : > { %v3002_v62 = vadd.f32 %v2264_v61, %v2209_v60  ;;  %v549_v63 = vpop.f32.mrf.mxu0 }
  0xf7   : > { %v889_v0 = vpop.f32.mrf.mxu1 }
  0xf8   : > { %v3004_v1 = vadd.f32 %v889_v0, %v549_v63  ;;  %v2212_v2 = vpop.f32.mrf.mxu0 }
  0xf9   : > { %v2267_v3 = vpop.f32.mrf.mxu1 }
  0xfa   : > { %v3006_v4 = vadd.f32 %v2267_v3, %v2212_v2  ;;  %v559_v5 = vpop.f32.mrf.mxu0 }
  0xfb   : > { %v899_v12 = vpop.f32.mrf.mxu1 }
  0xfc   : > { %v3008_v14 = vadd.f32 %v899_v12, %v559_v5  ;;  %v2215_v6 = vpop.f32.mrf.mxu0 }
  0xfd   : > { %v2270_v7 = vpop.f32.mrf.mxu1 }
  0xfe   : > { %v3010_v8 = vadd.f32 %v2270_v7, %v2215_v6  ;;  %v569_v9 = vpop.f32.mrf.mxu0 }
  0xff   : > { %v909_v10 = vpop.f32.mrf.mxu1 }
 0x100   : > { %v3012_v11 = vadd.f32 %v909_v10, %v569_v9  ;;  %v2218_v15 = vpop.f32.mrf.mxu0 }
 0x101   : > { %v2273_v16 = vpop.f32.mrf.mxu1 }
 0x102   : > { %v3014_v18 = vadd.f32 %v2273_v16, %v2218_v15  ;;  %v579_v19 = vpop.f32.mrf.mxu0 }
 0x103   : > { %v919_v21 = vpop.f32.mrf.mxu1 }
 0x104   : > { %v3016_v22 = vadd.f32 %v919_v21, %v579_v19  ;;  %v2221_v24 = vpop.f32.mrf.mxu0 }
 0x105   : > { %v2276_v25 = vpop.f32.mrf.mxu1 }
 0x106   : > { %v3018_v27 = vadd.f32 %v2276_v25, %v2221_v24  ;;  %v589_v28 = vpop.f32.mrf.mxu0 }
 0x107   : > { %v929_v30 = vpop.f32.mrf.mxu1 }
 0x108   : > { %v3020_v31 = vadd.f32 %v929_v30, %v589_v28  ;;  %v2224_v33 = vpop.f32.mrf.mxu0 }
 0x109   : > { %v2279_v34 = vpop.f32.mrf.mxu1 }
 0x10a   : > { %v3022_v36 = vadd.f32 %v2279_v34, %v2224_v33  ;;  %v599_v37 = vpop.f32.mrf.mxu0  ;;  %v3047_v33 = vld [vmem:[%s3241_s3] ss:$0 sm:$0xff] }
 0x10b   : > { %v939_v39 = vpop.f32.mrf.mxu1 }
 0x10c   : > { %v3024_v40 = vadd.f32 %v939_v39, %v599_v37  ;;  %v2227_v42 = vpop.f32.mrf.mxu0 }
 0x10d   : > { %v2282_v43 = vpop.f32.mrf.mxu1 }
 0x10e   : > { %v3026_v45 = vadd.f32 %v2282_v43, %v2227_v42  ;;  %v609_v46 = vpop.f32.mrf.mxu0 }
 0x10f   : > { %v949_v48 = vpop.f32.mrf.mxu1 }
 0x110   : > { %v3028_v49 = vadd.f32 %v949_v48, %v609_v46  ;;  %v2230_v51 = vpop.f32.mrf.mxu0 }
 0x111   : > { %v2285_v52 = vpop.f32.mrf.mxu1 }
 0x112   : > { %v3030_v54 = vadd.f32 %v2285_v52, %v2230_v51  ;;  %v619_v55 = vpop.f32.mrf.mxu0 }
 0x113   : > { %v959_v57 = vpop.f32.mrf.mxu1 }
 0x114   : > { %v3032_v58 = vadd.f32 %v959_v57, %v619_v55  ;;  %v2233_v60 = vpop.f32.mrf.mxu0 }
 0x115   : > { %v2288_v61 = vpop.f32.mrf.mxu1 }
 0x116   : > { %v3034_v63 = vadd.f32 %v2288_v61, %v2233_v60  ;;  %v629_v0 = vpop.f32.mrf.mxu0 }
 0x117   : > { %v969_v2 = vpop.f32.mrf.mxu1 }
 0x118   : > { %v3036_v3 = vadd.f32 %v969_v2, %v629_v0  ;;  %v2295_v5 = vpop.f32.mrf.mxu0 }
 0x119   : > { %v2350_v12 = vpop.f32.mrf.mxu1 }
 0x11a   : > { %v1297_v6 = vadd.f32 %v2350_v12, %v2295_v5  ;;  %v1053_v7 = vpop.f32.mrf.mxu0 }
 0x11b   : > { %v1291_v9 = vpop.f32.mrf.mxu1 }
 0x11c   : > { %v3038_v10 = vadd.f32 %v1291_v9, %v1053_v7  ;;  %v2298_v15 = vpop.f32.mrf.mxu0  ;;  %v1496_v19 = vrot.slane %v1297_v6, 1 }
 0x11d   : > { %v2353_v16 = vpop.f32.mrf.mxu1 }
 0x11e   : > { %v1495_v21 = vrot.slane %v3038_v10, 1  ;;  %v1307_v24 = vadd.f32 %v2353_v16, %v2298_v15  ;;  %v1063_v25 = vpop.f32.mrf.mxu0 }
 0x11f   : > { %v1301_v28 = vpop.f32.mrf.mxu1 }
 0x120   : > { %v1497_v30 = vsel %vm1494_vm2, %v1495_v21, %v1496_v19  ;;  %v1302_v34 = vadd.f32 %v1301_v28, %v1063_v25  ;;  %v2301_v37 = vpop.f32.mrf.mxu0  ;;  %v1500_v43 = vrot.slane %v1307_v24, 1 }
 0x121   : > { %v1598_v39 = vadd.f32 %v1497_v30, %v2972_v17  ;;  %v2356_v42 = vpop.f32.mrf.mxu1 }
 0x122   : > { %v1498_v46 = vrot.slane %v1302_v34, 1  ;;  %v1317_v48 = vadd.f32 %v2356_v42, %v2301_v37  ;;  %v1073_v51 = vpop.f32.mrf.mxu0 }
 0x123   : > { %v1639_v52 = vadd.f32 %v3047_v33, %v1598_v39  ;;  %v1311_v55 = vpop.f32.mrf.mxu1 }
 0x124   : > { %v1499_v57 = vsel %vm1494_vm2, %v1496_v19, %v1498_v46  ;;  %v1501_v60 = vsel %vm1494_vm2, %v1498_v46, %v1500_v43  ;;  %v1312_v61 = vadd.f32 %v1311_v55, %v1073_v51  ;;  %v2304_v0 = vpop.f32.mrf.mxu0  ;;  %v1504_v6 = vrot.slane %v1317_v48, 1 }
 0x125   : > { %vm1673_vm4 = vcmp.ge.f32.partialorder %v1639_v52, 0.0  ;;  %v1707_v17 = vmul.f32 0.01, %v1639_v52  ;;  %v1599_v2 = vadd.f32 %v1499_v57, %v2970_v13  ;;  %v1600_v5 = vadd.f32 %v1501_v60, %v2976_v23  ;;  %v2359_v12 = vpop.f32.mrf.mxu1 }
 0x126   : > { %v1502_v7 = vrot.slane %v1312_v61, 1  ;;  %v1327_v9 = vadd.f32 %v2359_v12, %v2304_v0  ;;  %v1083_v15 = vpop.f32.mrf.mxu0 }
 0x127   : > { %v1741_v16 = vsel %vm1673_vm4, %v1639_v52, %v1707_v17  ;;  %v1640_v19 = vadd.f32 %v3047_v33, %v1599_v2  ;;  %v1641_v24 = vadd.f32 %v3047_v33, %v1600_v5  ;;  %v1321_v25 = vpop.f32.mrf.mxu1 }
 0x128   : > { %1776 = vst.msk [vmem:[%s3057_s20] sm:$0xff] %vm1775_vm3, %v1741_v16  ;;  %v1503_v28 = vsel %vm1494_vm2, %v1500_v43, %v1502_v7  ;;  %v1505_v30 = vsel %vm1494_vm2, %v1502_v7, %v1504_v6  ;;  %v1322_v13 = vadd.f32 %v1321_v25, %v1083_v15  ;;  %v2307_v23 = vpop.f32.mrf.mxu0  ;;  %v1508_v48 = vrot.slane %v1327_v9, 1 }
 0x129   : > { %vm1674_vm5 = vcmp.ge.f32.partialorder %v1640_v19, 0.0  ;;  %vm1675_vm6 = vcmp.ge.f32.partialorder %v1641_v24, 0.0  ;;  %v1708_v34 = vmul.f32 0.01, %v1640_v19  ;;  %v1709_v37 = vmul.f32 0.01, %v1641_v24  ;;  %v2362_v39 = vpop.f32.mrf.mxu1 }
 0x12a   : > { %v1601_v42 = vadd.f32 %v1503_v28, %v2974_v20  ;;  %v1602_v46 = vadd.f32 %v1505_v30, %v2980_v29  ;;  %v1506_v51 = vrot.slane %v1322_v13, 1  ;;  %v1093_v52 = vpop.f32.mrf.mxu0  ;;  %v1337_v57 = vadd.f32 %v2362_v39, %v2307_v23 }
 0x12b   : > { %v1742_v55 = vsel %vm1674_vm5, %v1640_v19, %v1708_v34  ;;  %v1743_v43 = vsel %vm1675_vm6, %v1641_v24, %v1709_v37  ;;  %v1331_v60 = vpop.f32.mrf.mxu1 }
 0x12c   : > { %1777 = vst.msk [vmem:[%s3057_s20 + $0x8] sm:$0xff] %vm1775_vm3, %v1742_v55  ;;  %1778 = vst.msk [vmem:[%s3057_s20 + $0x10] sm:$0xff] %vm1775_vm3, %v1743_v43  ;;  %v1642_v61 = vadd.f32 %v3047_v33, %v1601_v42  ;;  %v1643_v0 = vadd.f32 %v3047_v33, %v1602_v46  ;;  %v1507_v17 = vsel %vm1494_vm2, %v1504_v6, %v1506_v51  ;;  %v2310_v29 = vpop.f32.mrf.mxu0  ;;  %v1512_v13 = vrot.slane %v1337_v57, 1 }
 0x12d   : > { %v1509_v20 = vsel %vm1494_vm2, %v1506_v51, %v1508_v48  ;;  %v1603_v2 = vadd.f32 %v1507_v17, %v2978_v26  ;;  %v1332_v12 = vadd.f32 %v1331_v60, %v1093_v52  ;;  %v2365_v7 = vpop.f32.mrf.mxu1 }
 0x12e   : > { %v1604_v5 = vadd.f32 %v1509_v20, %v2984_v35  ;;  %vm1676_vm7 = vcmp.ge.f32.partialorder %v1642_v61, 0.0  ;;  %vm1677_vm8 = vcmp.ge.f32.partialorder %v1643_v0, 0.0  ;;  %v1710_v9 = vmul.f32 0.01, %v1642_v61  ;;  %v1103_v16 = vpop.f32.mrf.mxu0 }
 0x12f   : > { %v1711_v15 = vmul.f32 0.01, %v1643_v0  ;;  %v1644_v19 = vadd.f32 %v3047_v33, %v1603_v2  ;;  %v1510_v24 = vrot.slane %v1332_v12, 1  ;;  %v1347_v25 = vadd.f32 %v2365_v7, %v2310_v29  ;;  %v1341_v28 = vpop.f32.mrf.mxu1 }
 0x130   : > { %v1645_v6 = vadd.f32 %v3047_v33, %v1604_v5  ;;  %v1744_v30 = vsel %vm1676_vm7, %v1642_v61, %v1710_v9  ;;  %v1342_v35 = vadd.f32 %v1341_v28, %v1103_v16  ;;  %v2313_v23 = vpop.f32.mrf.mxu0 }
 0x131   : > { %v1745_v26 = vsel %vm1677_vm8, %v1643_v0, %v1711_v15  ;;  %1779 = vst.msk [vmem:[%s3057_s20 + $0x18] sm:$0xff] %vm1775_vm3, %v1744_v30  ;;  %vm1678_vm9 = vcmp.ge.f32.partialorder %v1644_v19, 0.0  ;;  %v1712_v34 = vmul.f32 0.01, %v1644_v19  ;;  %v2368_v39 = vpop.f32.mrf.mxu1  ;;  %v1511_v42 = vsel %vm1494_vm2, %v1508_v48, %v1510_v24 }
 0x132   : > { %1780 = vst.msk [vmem:[%s3057_s20 + $0x20] sm:$0xff] %vm1775_vm3, %v1745_v26  ;;  %vm1679_vm10 = vcmp.ge.f32.partialorder %v1645_v6, 0.0  ;;  %v1713_v37 = vmul.f32 0.01, %v1645_v6  ;;  %v1513_v46 = vsel %vm1494_vm2, %v1510_v24, %v1512_v13  ;;  %v1516_v51 = vrot.slane %v1347_v25, 1  ;;  %v1113_v55 = vpop.f32.mrf.mxu0 }
 0x133   : > { %v1514_v52 = vrot.slane %v1342_v35, 1  ;;  %v1746_v43 = vsel %vm1678_vm9, %v1644_v19, %v1712_v34  ;;  %v1605_v60 = vadd.f32 %v1511_v42, %v2982_v32  ;;  %v1606_v61 = vadd.f32 %v1513_v46, %v2988_v41  ;;  %v1351_v0 = vpop.f32.mrf.mxu1 }
 0x134   : > { %v1747_v57 = vsel %vm1679_vm10, %v1645_v6, %v1713_v37  ;;  %1781 = vst.msk [vmem:[%s3057_s20 + $0x28] sm:$0xff] %vm1775_vm3, %v1746_v43  ;;  %v3095_v20 = vadd.f32 %v2368_v39, %v2313_v23  ;;  %v1352_v29 = vadd.f32 %v1351_v0, %v1113_v55  ;;  %v2316_v2 = vpop.f32.mrf.mxu0 }
 0x135   : > { %1782 = vst.msk [vmem:[%s3057_s20 + $0x30] sm:$0xff] %vm1775_vm3, %v1747_v57  ;;  %v1515_v17 = vsel %vm1494_vm2, %v1512_v13, %v1514_v52  ;;  %v1517_v48 = vsel %vm1494_vm2, %v1514_v52, %v1516_v51  ;;  %v1646_v5 = vadd.f32 %v3047_v33, %v1605_v60  ;;  %v1647_v12 = vadd.f32 %v3047_v33, %v1606_v61  ;;  %v2371_v7 = vpop.f32.mrf.mxu1 }
 0x136   : > { %v1607_v32 = vadd.f32 %v1515_v17, %v2986_v38  ;;  %v1608_v41 = vadd.f32 %v1517_v48, %v2992_v47  ;;  %v1520_v9 = vrot.slane %v3095_v20, 1  ;;  %v1518_v15 = vrot.slane %v1352_v29, 1  ;;  %v1123_v19 = vpop.f32.mrf.mxu0 }
 0x137   : > { %v1367_v16 = vadd.f32 %v2371_v7, %v2316_v2  ;;  %vm1680_vm11 = vcmp.ge.f32.partialorder %v1646_v5, 0.0  ;;  %vm1681_vm12 = vcmp.ge.f32.partialorder %v1647_v12, 0.0  ;;  %v1714_v6 = vmul.f32 0.01, %v1646_v5  ;;  %v1361_v25 = vpop.f32.mrf.mxu1 }
 0x138   : > { %v1715_v24 = vmul.f32 0.01, %v1647_v12  ;;  %v1648_v28 = vadd.f32 %v3047_v33, %v1607_v32  ;;  %v1649_v30 = vadd.f32 %v3047_v33, %v1608_v41  ;;  %v1519_v38 = vsel %vm1494_vm2, %v1516_v51, %v1518_v15  ;;  %v2319_v26 = vpop.f32.mrf.mxu0 }
 0x139   : > { %v1521_v47 = vsel %vm1494_vm2, %v1518_v15, %v1520_v9  ;;  %v1748_v13 = vsel %vm1680_vm11, %v1646_v5, %v1714_v6  ;;  %v1609_v23 = vadd.f32 %v1519_v38, %v2990_v44  ;;  %v2374_v37 = vpop.f32.mrf.mxu1  ;;  %v1362_v55 = vadd.f32 %v1361_v25, %v1123_v19 }
 0x13a   : > { %v1749_v35 = vsel %vm1681_vm12, %v1647_v12, %v1715_v24  ;;  %v1610_v34 = vadd.f32 %v1521_v47, %v2996_v53  ;;  %1783 = vst.msk [vmem:[%s3057_s20 + $0x38] sm:$0xff] %vm1775_vm3, %v1748_v13  ;;  %vm1682_vm13 = vcmp.ge.f32.partialorder %v1648_v28, 0.0  ;;  %vm1683_vm14 = vcmp.ge.f32.partialorder %v1649_v30, 0.0  ;;  %v1133_v46 = vpop.f32.mrf.mxu0 }
 0x13b   : > { %1784 = vst.msk [vmem:[%s3057_s20 + $0x40] sm:$0xff] %vm1775_vm3, %v1749_v35  ;;  %v1716_v39 = vmul.f32 0.01, %v1648_v28  ;;  %v1717_v42 = vmul.f32 0.01, %v1649_v30  ;;  %v1650_v51 = vadd.f32 %v3047_v33, %v1609_v23  ;;  %v1371_v44 = vpop.f32.mrf.mxu1  ;;  %v1377_v57 = vadd.f32 %v2374_v37, %v2319_v26 }
 0x13c   : > { %v1651_v52 = vadd.f32 %v3047_v33, %v1610_v34  ;;  %v1372_v60 = vadd.f32 %v1371_v44, %v1133_v46  ;;  %v2322_v61 = vpop.f32.mrf.mxu0  ;;  %v1524_v20 = vrot.slane %v1367_v16, 1  ;;  %v1522_v29 = vrot.slane %v1362_v55, 1 }
 0x13d   : > { %v1750_v43 = vsel %vm1682_vm13, %v1648_v28, %v1716_v39  ;;  %v1751_v53 = vsel %vm1683_vm14, %v1649_v30, %v1717_v42  ;;  %vm1684_vm15 = vcmp.ge.f32.partialorder %v1650_v51, 0.0  ;;  %v1718_v0 = vmul.f32 0.01, %v1650_v51  ;;  %v2377_v48 = vpop.f32.mrf.mxu1 }
 0x13e   : > { %1785 = vst.msk [vmem:[%s3057_s20 + $0x48] sm:$0xff] %vm1775_vm3, %v1750_v43  ;;  %1786 = vst.msk [vmem:[%s3057_s20 + $0x50] sm:$0xff] %vm1775_vm3, %v1751_v53  ;;  %vm1685_vm0 = vcmp.ge.f32.partialorder %v1651_v52, 0.0  ;;  %v1719_v17 = vmul.f32 0.01, %v1651_v52  ;;  %v1528_v2 = vrot.slane %v1377_v57, 1  ;;  %v1143_v12 = vpop.f32.mrf.mxu0  ;;  %v1387_v7 = vadd.f32 %v2377_v48, %v2322_v61 }
 0x13f   : > { %v1526_v5 = vrot.slane %v1372_v60, 1  ;;  %v1752_v32 = vsel %vm1684_vm15, %v1650_v51, %v1718_v0  ;;  %v1381_v15 = vpop.f32.mrf.mxu1  ;;  %v1523_v19 = vsel %vm1494_vm2, %v1520_v9, %v1522_v29  ;;  %v1525_v6 = vsel %vm1494_vm2, %v1522_v29, %v1524_v20 }
 0x140   : > { %v1753_v41 = vsel %vm1685_vm0, %v1651_v52, %v1719_v17  ;;  %1787 = vst.msk [vmem:[%s3057_s20 + $0x58] sm:$0xff] %vm1775_vm3, %v1752_v32  ;;  %v2325_v25 = vpop.f32.mrf.mxu0  ;;  %v1611_v28 = vadd.f32 %v1523_v19, %v2994_v50  ;;  %v1612_v30 = vadd.f32 %v1525_v6, %v3000_v59  ;;  %v1382_v13 = vadd.f32 %v1381_v15, %v1143_v12 }
 0x141   : > { %1788 = vst.msk [vmem:[%s3057_s20 + $0x60] sm:$0xff] %vm1775_vm3, %v1753_v41  ;;  %v1527_v24 = vsel %vm1494_vm2, %v1524_v20, %v1526_v5  ;;  %v1529_v16 = vsel %vm1494_vm2, %v1526_v5, %v1528_v2  ;;  %v2380_v26 = vpop.f32.mrf.mxu1  ;;  %v1532_v42 = vrot.slane %v1387_v7, 1 }
 0x142   : > { %v1613_v38 = vadd.f32 %v1527_v24, %v2998_v56  ;;  %v1614_v47 = vadd.f32 %v1529_v16, %v3004_v1  ;;  %v1153_v35 = vpop.f32.mrf.mxu0  ;;  %v1652_v9 = vadd.f32 %v3047_v33, %v1611_v28  ;;  %v1653_v23 = vadd.f32 %v3047_v33, %v1612_v30 }
 0x143   : > { %v1391_v39 = vpop.f32.mrf.mxu1  ;;  %v1530_v50 = vrot.slane %v1382_v13, 1  ;;  %v1397_v46 = vadd.f32 %v2380_v26, %v2325_v25 }
 0x144   : > { %v1654_v34 = vadd.f32 %v3047_v33, %v1613_v38  ;;  %v1655_v37 = vadd.f32 %v3047_v33, %v1614_v47  ;;  %v1392_v59 = vadd.f32 %v1391_v39, %v1153_v35  ;;  %v2328_v51 = vpop.f32.mrf.mxu0  ;;  %vm1686_vm1 = vcmp.ge.f32.partialorder %v1652_v9, 0.0 }
 0x145   : > { %vm1687_vm4 = vcmp.ge.f32.partialorder %v1653_v23, 0.0  ;;  %v1720_v56 = vmul.f32 0.01, %v1652_v9  ;;  %v1721_v1 = vmul.f32 0.01, %v1653_v23  ;;  %v2383_v52 = vpop.f32.mrf.mxu1  ;;  %v1531_v60 = vsel %vm1494_vm2, %v1528_v2, %v1530_v50 }
 0x146   : > { %vm1688_vm5 = vcmp.ge.f32.partialorder %v1654_v34, 0.0  ;;  %vm1689_vm6 = vcmp.ge.f32.partialorder %v1655_v37, 0.0  ;;  %v1722_v55 = vmul.f32 0.01, %v1654_v34  ;;  %v1723_v44 = vmul.f32 0.01, %v1655_v37  ;;  %v1163_v43 = vpop.f32.mrf.mxu0 }
 0x147   : > { %v1754_v53 = vsel %vm1686_vm1, %v1652_v9, %v1720_v56  ;;  %v1755_v57 = vsel %vm1687_vm4, %v1653_v23, %v1721_v1  ;;  %v1533_v61 = vsel %vm1494_vm2, %v1530_v50, %v1532_v42  ;;  %v1401_v0 = vpop.f32.mrf.mxu1  ;;  %v1615_v20 = vadd.f32 %v1531_v60, %v3002_v62 }
 0x148   : > { %1789 = vst.msk [vmem:[%s3057_s20 + $0x68] sm:$0xff] %vm1775_vm3, %v1754_v53  ;;  %1790 = vst.msk [vmem:[%s3057_s20 + $0x70] sm:$0xff] %vm1775_vm3, %v1755_v57  ;;  %v1756_v17 = vsel %vm1688_vm5, %v1654_v34, %v1722_v55  ;;  %v1757_v48 = vsel %vm1689_vm6, %v1655_v37, %v1723_v44  ;;  %v1616_v29 = vadd.f32 %v1533_v61, %v3008_v14  ;;  %v2331_v5 = vpop.f32.mrf.mxu0  ;;  %v1536_v12 = vrot.slane %v1397_v46, 1 }
 0x149   : > { %1791 = vst.msk [vmem:[%s3057_s20 + $0x78] sm:$0xff] %vm1775_vm3, %v1756_v17  ;;  %1792 = vst.msk [vmem:[%s3057_s20 + $0x80] sm:$0xff] %vm1775_vm3, %v1757_v48  ;;  %v1534_v2 = vrot.slane %v1392_v59, 1  ;;  %v3146_v32 = vadd.f32 %v2383_v52, %v2328_v51  ;;  %v1402_v41 = vadd.f32 %v1401_v0, %v1163_v43  ;;  %v2386_v7 = vpop.f32.mrf.mxu1  ;;  %v1656_v15 = vadd.f32 %v3047_v33, %v1615_v20 }
 0x14a   : > { %v1657_v19 = vadd.f32 %v3047_v33, %v1616_v29  ;;  %v3150_v6 = vadd.f32 %v2386_v7, %v2331_v5  ;;  %v1173_v62 = vpop.f32.mrf.mxu0 }
 0x14b   : > { %v1535_v14 = vsel %vm1494_vm2, %v1532_v42, %v1534_v2  ;;  %v1537_v24 = vsel %vm1494_vm2, %v1534_v2, %v1536_v12  ;;  %v1540_v16 = vrot.slane %v3146_v32, 1  ;;  %v1538_v25 = vrot.slane %v1402_v41, 1  ;;  %v1411_v28 = vpop.f32.mrf.mxu1 }
 0x14c   : > { %vm1690_vm7 = vcmp.ge.f32.partialorder %v1656_v15, 0.0  ;;  %vm1691_vm8 = vcmp.ge.f32.partialorder %v1657_v19, 0.0  ;;  %v1724_v30 = vmul.f32 0.01, %v1656_v15  ;;  %v1725_v38 = vmul.f32 0.01, %v1657_v19  ;;  %v2334_v47 = vpop.f32.mrf.mxu0 }
 0x14d   : > { %v1617_v26 = vadd.f32 %v1535_v14, %v3006_v4  ;;  %v1618_v13 = vadd.f32 %v1537_v24, %v3012_v11  ;;  %v1539_v35 = vsel %vm1494_vm2, %v1536_v12, %v1538_v25  ;;  %v1541_v9 = vsel %vm1494_vm2, %v1538_v25, %v1540_v16  ;;  %v2389_v23 = vpop.f32.mrf.mxu1 }
 0x14e   : > { %v1758_v34 = vsel %vm1690_vm7, %v1656_v15, %v1724_v30  ;;  %v1759_v37 = vsel %vm1691_vm8, %v1657_v19, %v1725_v38  ;;  %v1619_v39 = vadd.f32 %v1539_v35, %v3010_v8  ;;  %v1620_v42 = vadd.f32 %v1541_v9, %v3016_v22  ;;  %v1183_v50 = vpop.f32.mrf.mxu0 }
 0x14f   : > { %1793 = vst.msk [vmem:[%s3057_s20 + $0x88] sm:$0xff] %vm1775_vm3, %v1758_v34  ;;  %1794 = vst.msk [vmem:[%s3057_s20 + $0x90] sm:$0xff] %vm1775_vm3, %v1759_v37  ;;  %v1658_v4 = vadd.f32 %v3047_v33, %v1617_v26  ;;  %v1659_v11 = vadd.f32 %v3047_v33, %v1618_v13  ;;  %v1544_v46 = vrot.slane %v3150_v6, 1  ;;  %v1412_v59 = vadd.f32 %v1411_v28, %v1173_v62  ;;  %v1421_v51 = vpop.f32.mrf.mxu1 }
 0x150   : > { %v1660_v56 = vadd.f32 %v3047_v33, %v1619_v39  ;;  %v1661_v1 = vadd.f32 %v3047_v33, %v1620_v42  ;;  %v1427_v8 = vadd.f32 %v2389_v23, %v2334_v47  ;;  %v1422_v52 = vadd.f32 %v1421_v51, %v1183_v50  ;;  %v2337_v22 = vpop.f32.mrf.mxu0 }
 0x151   : > { %vm1692_vm9 = vcmp.ge.f32.partialorder %v1658_v4, 0.0  ;;  %vm1693_vm10 = vcmp.ge.f32.partialorder %v1659_v11, 0.0  ;;  %v1726_v55 = vmul.f32 0.01, %v1658_v4  ;;  %v1727_v44 = vmul.f32 0.01, %v1659_v11  ;;  %v2392_v43 = vpop.f32.mrf.mxu1 }
 0x152   : > { %vm1694_vm11 = vcmp.ge.f32.partialorder %v1660_v56, 0.0  ;;  %vm1695_vm12 = vcmp.ge.f32.partialorder %v1661_v1, 0.0  ;;  %v1728_v53 = vmul.f32 0.01, %v1660_v56  ;;  %v1729_v57 = vmul.f32 0.01, %v1661_v1  ;;  %v1193_v60 = vpop.f32.mrf.mxu0 }
 0x153   : > { %v1760_v61 = vsel %vm1692_vm9, %v1658_v4, %v1726_v55  ;;  %v1761_v0 = vsel %vm1693_vm10, %v1659_v11, %v1727_v44  ;;  %v1542_v17 = vrot.slane %v1412_v59, 1  ;;  %v1548_v48 = vrot.slane %v1427_v8, 1  ;;  %v1431_v20 = vpop.f32.mrf.mxu1 }
 0x154   : > { %1795 = vst.msk [vmem:[%s3057_s20 + $0x98] sm:$0xff] %vm1775_vm3, %v1760_v61  ;;  %1796 = vst.msk [vmem:[%s3057_s20 + $0xa0] sm:$0xff] %vm1775_vm3, %v1761_v0  ;;  %v1762_v29 = vsel %vm1694_vm11, %v1660_v56, %v1728_v53  ;;  %v1763_v5 = vsel %vm1695_vm12, %v1661_v1, %v1729_v57  ;;  %v1546_v12 = vrot.slane %v1422_v52, 1  ;;  %v1437_v2 = vadd.f32 %v2392_v43, %v2337_v22  ;;  %v2340_v32 = vpop.f32.mrf.mxu0 }
 0x155   : > { %1797 = vst.msk [vmem:[%s3057_s20 + $0xa8] sm:$0xff] %vm1775_vm3, %v1762_v29  ;;  %1798 = vst.msk [vmem:[%s3057_s20 + $0xb0] sm:$0xff] %vm1775_vm3, %v1763_v5  ;;  %v1543_v41 = vsel %vm1494_vm2, %v1540_v16, %v1542_v17  ;;  %v1545_v7 = vsel %vm1494_vm2, %v1542_v17, %v1544_v46  ;;  %v1432_v15 = vadd.f32 %v1431_v20, %v1193_v60  ;;  %v2395_v19 = vpop.f32.mrf.mxu1 }
 0x156   : > { %v1621_v6 = vadd.f32 %v1543_v41, %v3014_v18  ;;  %v1622_v62 = vadd.f32 %v1545_v7, %v3020_v31  ;;  %v1547_v14 = vsel %vm1494_vm2, %v1544_v46, %v1546_v12  ;;  %v1549_v24 = vsel %vm1494_vm2, %v1546_v12, %v1548_v48  ;;  %v1203_v25 = vpop.f32.mrf.mxu0 }
 0x157   : > { %v1623_v28 = vadd.f32 %v1547_v14, %v3018_v27  ;;  %v1624_v30 = vadd.f32 %v1549_v24, %v3024_v40  ;;  %v1552_v38 = vrot.slane %v1437_v2, 1  ;;  %v1550_v47 = vrot.slane %v1432_v15, 1  ;;  %v1441_v16 = vpop.f32.mrf.mxu1 }
 0x158   : > { %v1662_v26 = vadd.f32 %v3047_v33, %v1621_v6  ;;  %v1663_v13 = vadd.f32 %v3047_v33, %v1622_v62  ;;  %v1447_v35 = vadd.f32 %v2395_v19, %v2340_v32  ;;  %v1442_v18 = vadd.f32 %v1441_v16, %v1203_v25  ;;  %v2343_v9 = vpop.f32.mrf.mxu0 }
 0x159   : > { %v1664_v31 = vadd.f32 %v3047_v33, %v1623_v28  ;;  %v1665_v23 = vadd.f32 %v3047_v33, %v1624_v30  ;;  %v1551_v34 = vsel %vm1494_vm2, %v1548_v48, %v1550_v47  ;;  %v1553_v27 = vsel %vm1494_vm2, %v1550_v47, %v1552_v38  ;;  %v2398_v40 = vpop.f32.mrf.mxu1 }
 0x15a   : > { %vm1696_vm13 = vcmp.ge.f32.partialorder %v1662_v26, 0.0  ;;  %vm1697_vm14 = vcmp.ge.f32.partialorder %v1663_v13, 0.0  ;;  %v1730_v37 = vmul.f32 0.01, %v1662_v26  ;;  %v1731_v39 = vmul.f32 0.01, %v1663_v13  ;;  %v1213_v4 = vpop.f32.mrf.mxu0 }
 0x15b   : > { %vm1698_vm15 = vcmp.ge.f32.partialorder %v1664_v31, 0.0  ;;  %vm1699_vm0 = vcmp.ge.f32.partialorder %v1665_v23, 0.0  ;;  %v1732_v42 = vmul.f32 0.01, %v1664_v31  ;;  %v1733_v50 = vmul.f32 0.01, %v1665_v23  ;;  %v1451_v11 = vpop.f32.mrf.mxu1 }
 0x15c   : > { %v1764_v46 = vsel %vm1696_vm13, %v1662_v26, %v1730_v37  ;;  %v1765_v59 = vsel %vm1697_vm14, %v1663_v13, %v1731_v39  ;;  %v1625_v51 = vadd.f32 %v1551_v34, %v3022_v36  ;;  %v1626_v56 = vadd.f32 %v1553_v27, %v3028_v49 }
 0x15d   : > { %1799 = vst.msk [vmem:[%s3057_s20 + $0xb8] sm:$0xff] %vm1775_vm3, %v1764_v46  ;;  %1800 = vst.msk [vmem:[%s3057_s20 + $0xc0] sm:$0xff] %vm1775_vm3, %v1765_v59  ;;  %v1766_v1 = vsel %vm1698_vm15, %v1664_v31, %v1732_v42  ;;  %v1767_v8 = vsel %vm1699_vm0, %v1665_v23, %v1733_v50  ;;  %v1556_v52 = vrot.slane %v1447_v35, 1  ;;  %v1554_v22 = vrot.slane %v1442_v18, 1 }
 0x15e   : > { %1801 = vst.msk [vmem:[%s3057_s20 + $0xc8] sm:$0xff] %vm1775_vm3, %v1766_v1  ;;  %1802 = vst.msk [vmem:[%s3057_s20 + $0xd0] sm:$0xff] %vm1775_vm3, %v1767_v8  ;;  %v1666_v55 = vadd.f32 %v3047_v33, %v1625_v51  ;;  %v1667_v44 = vadd.f32 %v3047_v33, %v1626_v56  ;;  %v1457_v36 = vadd.f32 %v2398_v40, %v2343_v9 }
 0x15f   : > { %v1452_v49 = vadd.f32 %v1451_v11, %v1213_v4  ;;  %v1555_v43 = vsel %vm1494_vm2, %v1552_v38, %v1554_v22  ;;  %v1557_v53 = vsel %vm1494_vm2, %v1554_v22, %v1556_v52 }
 0x160   : > { %vm1700_vm1 = vcmp.ge.f32.partialorder %v1666_v55, 0.0  ;;  %vm1701_vm4 = vcmp.ge.f32.partialorder %v1667_v44, 0.0  ;;  %v1734_v57 = vmul.f32 0.01, %v1666_v55  ;;  %v1735_v60 = vmul.f32 0.01, %v1667_v44 }
 0x161   : > { %v1627_v61 = vadd.f32 %v1555_v43, %v3026_v45  ;;  %v1628_v0 = vadd.f32 %v1557_v53, %v3032_v58  ;;  %v1560_v17 = vrot.slane %v1457_v36, 1  ;;  %v1558_v48 = vrot.slane %v1452_v49, 1 }
 0x162   : > { %v1768_v20 = vsel %vm1700_vm1, %v1666_v55, %v1734_v57  ;;  %v1769_v29 = vsel %vm1701_vm4, %v1667_v44, %v1735_v60 }
 0x163   : > { %1803 = vst.msk [vmem:[%s3057_s20 + $0xd8] sm:$0xff] %vm1775_vm3, %v1768_v20  ;;  %1804 = vst.msk [vmem:[%s3057_s20 + $0xe0] sm:$0xff] %vm1775_vm3, %v1769_v29  ;;  %v1668_v5 = vadd.f32 %v3047_v33, %v1627_v61  ;;  %v1669_v12 = vadd.f32 %v3047_v33, %v1628_v0  ;;  %v1597_v45 = vsel %vm1494_vm2, %v1560_v17, %v1495_v21 }
 0x164   : > { %v1559_v58 = vsel %vm1494_vm2, %v1556_v52, %v1558_v48  ;;  %v1631_v2 = vadd.f32 %v1597_v45, %v3034_v63  ;;  %v1561_v32 = vsel %vm1494_vm2, %v1558_v48, %v1560_v17 }
 0x165   : > { %v1629_v41 = vadd.f32 %v1559_v58, %v3030_v54  ;;  %vm1702_vm5 = vcmp.ge.f32.partialorder %v1668_v5, 0.0  ;;  %vm1703_vm6 = vcmp.ge.f32.partialorder %v1669_v12, 0.0  ;;  %v1736_v7 = vmul.f32 0.01, %v1668_v5 }
 0x166   : > { %v1737_v15 = vmul.f32 0.01, %v1669_v12  ;;  %v1672_v19 = vadd.f32 %v3047_v33, %v1631_v2  ;;  %v1630_v10 = vadd.f32 %v1561_v32, %v3036_v3 }
 0x167   : > { %v1670_v6 = vadd.f32 %v3047_v33, %v1629_v41  ;;  %v1770_v21 = vsel %vm1702_vm5, %v1668_v5, %v1736_v7 }
 0x168   : > { %v1771_v62 = vsel %vm1703_vm6, %v1669_v12, %v1737_v15  ;;  %1805 = vst.msk [vmem:[%s3057_s20 + $0xe8] sm:$0xff] %vm1775_vm3, %v1770_v21  ;;  %vm1706_vm2 = vcmp.ge.f32.partialorder %v1672_v19, 0.0  ;;  %v1740_v54 = vmul.f32 0.01, %v1672_v19  ;;  %v1671_v63 = vadd.f32 %v3047_v33, %v1630_v10 }
 0x169   : > { %1806 = vst.msk [vmem:[%s3057_s20 + $0xf0] sm:$0xff] %vm1775_vm3, %v1771_v62  ;;  %vm1704_vm7 = vcmp.ge.f32.partialorder %v1670_v6, 0.0  ;;  %v1738_v14 = vmul.f32 0.01, %v1670_v6 }
 0x16a   : > { %v1774_v24 = vsel %vm1706_vm2, %v1672_v19, %v1740_v54  ;;  %vm1705_vm8 = vcmp.ge.f32.partialorder %v1671_v63, 0.0  ;;  %v1739_v25 = vmul.f32 0.01, %v1671_v63 }
 0x16b   : > { %1809 = vst.msk [vmem:[%s3057_s20 + $0x108] sm:$0xff] %vm1775_vm3, %v1774_v24  ;;  %v1772_v3 = vsel %vm1704_vm7, %v1670_v6, %v1738_v14 }
 0x16c   : > { %v1773_v28 = vsel %vm1705_vm8, %v1671_v63, %v1739_v25  ;;  %1807 = vst.msk [vmem:[%s3057_s20 + $0xf8] sm:$0xff] %vm1775_vm3, %v1772_v3 }
 0x16d   : > { %1808 = vst.msk [vmem:[%s3057_s20 + $0x100] sm:$0xff] %vm1775_vm3, %v1773_v28 }
 0x16e PF: > { %s14_s15 = sadd.s32 1, %s2413_s15  }
 0x16f   : > { %p11_p4 = scmp.ge.s32.totalorder %s14_s15, 4  }
 0x171   :  { %13 = sbr.rel (!%p11_p4) target bundleno = 1 (0x1), region = 72 }

// kernel: discriminator_forward.5
= control target key start
LH: loop header
LB: loop body
LE: loop exit
PB: predicated region body
PF: predicated region fallthrough
CT: control target
= control target key end

     0   :  { %vm62_vm0 = vcmask 261120   ;;  %vm819_vm1 = vcmask 1046528   ;;  %vm972_vm2 = vcmask 130048   ;;  %s1831_s2 = inlined_call_operand.vmem [shape: f32[2,2,32,16], index: 2, kind: input, shape index: {}]   ;;  %s1832_s1 = inlined_call_operand.vmem [shape: f32[144,32], index: 1, kind: input, shape index: {}]   ;;  %s1833_s0 = inlined_call_operand.vmem [shape: f32[144,32], index: 0, kind: input, shape index: {}]   ;;  %s1834_s3 = inlined_call_operand.vmem [shape: f32[1,16], index: 3, kind: input, shape index: {}]   ;;  %s1835_s4 = inlined_call_operand.vmem [shape: f32[144,16], index: 4, kind: output, shape index: {}]  }
   0x1   :  { %v998_v0 = vld [vmem:[%s1831_s2 + $0x58] sm:$0xff]  ;;  %v997_v2 = vld [vmem:[%s1831_s2 + $0x50] sm:$0xff]  ;;  %v996_v4 = vld [vmem:[%s1831_s2 + $0x48] sm:$0xff] }
   0x2   :  { %v56_v1 = vld [vmem:[%s1831_s2 + $0x18] sm:$0xff]  ;;  %1168 = vmatprep.subr.mxu0 %v998_v0  ;;  %v55_v3 = vld [vmem:[%s1831_s2 + $0x10] sm:$0xff]  ;;  %v54_v5 = vld [vmem:[%s1831_s2 + $0x8] sm:$0xff] }
   0x3   :  { %1203 = vmatprep.subr.mxu1 %v56_v1  ;;  %1169 = vmatpush3.msra.mxu0 %v998_v0  ;;  %v995_v6 = vld [vmem:[%s1831_s2 + $0x40] sm:$0xff]  ;;  %v1370_v10 = vld [vmem:[%s1832_s1 + $0x8] sm:$0xff]  ;;  %v1042_v12 = vld [vmem:[%s1831_s2 + $0x78] sm:$0xff] }
   0x4   :  { %1204 = vmatpush3.msra.mxu1 %v56_v1  ;;  %1170 = vmatprep.subr.mxu0 %v997_v2  ;;  %v53_v7 = vld [vmem:[%s1831_s2] sm:$0xff]  ;;  %v1375_v11 = vld [vmem:[%s1833_s0 + $0x8] sm:$0xff]  ;;  %v1038_v13 = vld [vmem:[%s1831_s2 + $0x38] sm:$0xff] }
   0x5   :  { %1205 = vmatprep.subr.mxu1 %v55_v3  ;;  %1171 = vmatpush3.msra.mxu0 %v997_v2  ;;  %v1360_v8 = vld [vmem:[%s1832_s1] sm:$0xff]  ;;  %v1394_v14 = vld [vmem:[%s1832_s1 + $0x10] sm:$0xff]  ;;  %v1404_v16 = vld [vmem:[%s1832_s1 + $0x18] sm:$0xff] }
   0x6   :  { %1206 = vmatpush3.msra.mxu1 %v55_v3  ;;  %1172 = vmatprep.subr.mxu0 %v996_v4  ;;  %v1365_v9 = vld [vmem:[%s1833_s0] sm:$0xff]  ;;  %v1399_v15 = vld [vmem:[%s1833_s0 + $0x10] sm:$0xff]  ;;  %v1409_v17 = vld [vmem:[%s1833_s0 + $0x18] sm:$0xff] }
   0x7   :  { %1207 = vmatprep.subr.mxu1 %v54_v5  ;;  %1173 = vmatpush3.msra.mxu0 %v996_v4  ;;  %v1414_v18 = vld [vmem:[%s1832_s1 + $0x20] sm:$0xff]  ;;  %v1041_v20 = vld [vmem:[%s1831_s2 + $0x70] sm:$0xff]  ;;  %v1442_v22 = vld [vmem:[%s1832_s1 + $0x28] sm:$0xff] }
   0x8   :  { %1208 = vmatpush3.msra.mxu1 %v54_v5  ;;  %1174 = vmatprep.subr.mxu0 %v995_v6  ;;  %v1419_v19 = vld [vmem:[%s1833_s0 + $0x20] sm:$0xff]  ;;  %v1037_v21 = vld [vmem:[%s1831_s2 + $0x30] sm:$0xff]  ;;  %v1447_v23 = vld [vmem:[%s1833_s0 + $0x28] sm:$0xff] }
   0x9   :  { %1209 = vmatprep.subr.mxu1 %v53_v7  ;;  %1175 = vmatpush3.msra.mxu0 %v995_v6  ;;  %v1452_v24 = vld [vmem:[%s1832_s1 + $0x30] sm:$0xff]  ;;  %v1040_v26 = vld [vmem:[%s1831_s2 + $0x68] sm:$0xff]  ;;  %v1476_v28 = vld [vmem:[%s1832_s1 + $0x38] sm:$0xff] }
   0xa   :  { %1176 = vmatprep.mubr.msk.f32.mxu0 %vm62_vm0, %v1360_v8  ;;  %1210 = vmatpush3.msra.mxu1 %v53_v7  ;;  %v1457_v25 = vld [vmem:[%s1833_s0 + $0x30] sm:$0xff]  ;;  %v1036_v27 = vld [vmem:[%s1831_s2 + $0x28] sm:$0xff]  ;;  %v1481_v29 = vld [vmem:[%s1833_s0 + $0x38] sm:$0xff] }
   0xb   :  { %1211 = vmatprep.mubr.msk.f32.mxu1 %vm62_vm0, %v1365_v9  ;;  %1177 = vmatmul.mubr.msk.f32.vlgmr.msra.gmra.mxu0 %vm62_vm0, %v1370_v10  ;;  %v1486_v30 = vld [vmem:[%s1832_s1 + $0x40] sm:$0xff]  ;;  %v44_v34 = vld [vmem:[%s1832_s1 + $0x48] sm:$0xff]  ;;  %v45_v36 = vld [vmem:[%s1832_s1 + $0x50] sm:$0xff] }
   0xc   :  { %1212 = vmatmul.mubr.msk.f32.vlgmr.msra.gmra.mxu1 %vm62_vm0, %v1375_v11  ;;  %1238 = vmatprep.subr.mxu0 %v1042_v12  ;;  %v1491_v31 = vld [vmem:[%s1833_s0 + $0x40] sm:$0xff]  ;;  %v26_v35 = vld [vmem:[%s1833_s0 + $0x48] sm:$0xff]  ;;  %v27_v37 = vld [vmem:[%s1833_s0 + $0x50] sm:$0xff] }
   0xd   :  { %1273 = vmatprep.subr.mxu1 %v1038_v13  ;;  %1239 = vmatpush3.msra.mxu0 %v1042_v12  ;;  %v1039_v32 = vld [vmem:[%s1831_s2 + $0x60] sm:$0xff]  ;;  %v46_v38 = vld [vmem:[%s1832_s1 + $0x58] sm:$0xff]  ;;  %v48_v42 = vld [vmem:[%s1832_s1 + $0x68] sm:$0xff] }
   0xe   :  { %1274 = vmatpush3.msra.mxu1 %v1038_v13  ;;  %1179 = vmatprep.mubr.msk.f32.mxu0 %vm62_vm0, %v1394_v14  ;;  %v1035_v33 = vld [vmem:[%s1831_s2 + $0x20] sm:$0xff]  ;;  %v28_v39 = vld [vmem:[%s1833_s0 + $0x58] sm:$0xff]  ;;  %v30_v43 = vld [vmem:[%s1833_s0 + $0x68] sm:$0xff] }
   0xf   :  { %1214 = vmatprep.mubr.msk.f32.mxu1 %vm62_vm0, %v1399_v15  ;;  %1180 = vmatmul.mubr.msk.f32.gmra.mxu0 %vm62_vm0, %v1404_v16  ;;  %v47_v40 = vld [vmem:[%s1832_s1 + $0x60] sm:$0xff]  ;;  %v49_v44 = vld [vmem:[%s1832_s1 + $0x70] sm:$0xff]  ;;  %v50_v46 = vld [vmem:[%s1832_s1 + $0x78] sm:$0xff] }
  0x10   :  { %1215 = vmatmul.mubr.msk.f32.gmra.mxu1 %vm62_vm0, %v1409_v17  ;;  %1182 = vmatprep.mubr.msk.f32.mxu0 %vm62_vm0, %v1414_v18  ;;  %v29_v41 = vld [vmem:[%s1833_s0 + $0x60] sm:$0xff]  ;;  %v31_v45 = vld [vmem:[%s1833_s0 + $0x70] sm:$0xff]  ;;  %v32_v47 = vld [vmem:[%s1833_s0 + $0x78] sm:$0xff] }
  0x11   :  { %1217 = vmatprep.mubr.msk.f32.mxu1 %vm62_vm0, %v1419_v19  ;;  %1240 = vmatprep.subr.mxu0 %v1041_v20  ;;  %v51_v48 = vld [vmem:[%s1832_s1 + $0x80] sm:$0xff]  ;;  %v52_v50 = vld [vmem:[%s1832_s1 + $0x88] sm:$0xff] }
  0x12   :  { %1275 = vmatprep.subr.mxu1 %v1037_v21  ;;  %1241 = vmatpush3.msra.mxu0 %v1041_v20  ;;  %v33_v49 = vld [vmem:[%s1833_s0 + $0x80] sm:$0xff]  ;;  %v34_v51 = vld [vmem:[%s1833_s0 + $0x88] sm:$0xff] }
  0x13   :  { %1276 = vmatpush3.msra.mxu1 %v1037_v21  ;;  %1183 = vmatmul.mubr.msk.f32.gmra.mxu0 %vm62_vm0, %v1442_v22 }
  0x14   :  { %1218 = vmatmul.mubr.msk.f32.gmra.mxu1 %vm62_vm0, %v1447_v23  ;;  %1185 = vmatprep.mubr.msk.f32.mxu0 %vm62_vm0, %v1452_v24 }
  0x15   :  { %1220 = vmatprep.mubr.msk.f32.mxu1 %vm62_vm0, %v1457_v25  ;;  %1242 = vmatprep.subr.mxu0 %v1040_v26 }
  0x16   :  { %1277 = vmatprep.subr.mxu1 %v1036_v27  ;;  %1243 = vmatpush3.msra.mxu0 %v1040_v26 }
  0x17   :  { %1278 = vmatpush3.msra.mxu1 %v1036_v27  ;;  %1186 = vmatmul.mubr.msk.f32.gmra.mxu0 %vm62_vm0, %v1476_v28 }
  0x18   :  { %1221 = vmatmul.mubr.msk.f32.gmra.mxu1 %vm62_vm0, %v1481_v29  ;;  %1188 = vmatprep.mubr.msk.f32.mxu0 %vm62_vm0, %v1486_v30 }
  0x19   :  { %1223 = vmatprep.mubr.msk.f32.mxu1 %vm62_vm0, %v1491_v31  ;;  %1244 = vmatprep.subr.mxu0 %v1039_v32 }
  0x1a   :  { %1279 = vmatprep.subr.mxu1 %v1035_v33  ;;  %1245 = vmatpush3.msra.mxu0 %v1039_v32 }
  0x1b   :  { %1280 = vmatpush3.msra.mxu1 %v1035_v33  ;;  %1189 = vmatmul.mubr.msk.f32.gmra.mxu0 %vm62_vm0, %v44_v34 }
  0x1c   :  { %1224 = vmatmul.mubr.msk.f32.gmra.mxu1 %vm62_vm0, %v26_v35  ;;  %1191 = vmatprep.mubr.msk.f32.mxu0 %vm62_vm0, %v45_v36 }
  0x1d   :  { %1226 = vmatprep.mubr.msk.f32.mxu1 %vm62_vm0, %v27_v37 }
  0x1f   :  { %1192 = vmatmul.mubr.msk.f32.gmra.mxu0 %vm62_vm0, %v46_v38 }
  0x20   :  { %1227 = vmatmul.mubr.msk.f32.gmra.mxu1 %vm62_vm0, %v28_v39  ;;  %1194 = vmatprep.mubr.msk.f32.mxu0 %vm62_vm0, %v47_v40 }
  0x21   :  { %1229 = vmatprep.mubr.msk.f32.mxu1 %vm62_vm0, %v29_v41 }
  0x23   :  { %1195 = vmatmul.mubr.msk.f32.gmra.mxu0 %vm62_vm0, %v48_v42 }
  0x24   :  { %1230 = vmatmul.mubr.msk.f32.gmra.mxu1 %vm62_vm0, %v30_v43  ;;  %1197 = vmatprep.mubr.msk.f32.mxu0 %vm62_vm0, %v49_v44 }
  0x25   :  { %1232 = vmatprep.mubr.msk.f32.mxu1 %vm62_vm0, %v31_v45 }
  0x27   :  { %1198 = vmatmul.mubr.msk.f32.gmra.mxu0 %vm62_vm0, %v50_v46 }
  0x28   :  { %1233 = vmatmul.mubr.msk.f32.gmra.mxu1 %vm62_vm0, %v32_v47  ;;  %1200 = vmatprep.mubr.msk.f32.mxu0 %vm62_vm0, %v51_v48 }
  0x29   :  { %1235 = vmatprep.mubr.msk.f32.mxu1 %vm62_vm0, %v33_v49 }
  0x2b   :  { %1201 = vmatmul.mubr.msk.f32.gmra.mxu0 %vm62_vm0, %v52_v50 }
  0x2c   :  { %1236 = vmatmul.mubr.msk.f32.gmra.mxu1 %vm62_vm0, %v34_v51  ;;  %1246 = vmatprep.mubr.msk.f32.mxu0 %vm62_vm0, %v1360_v8 }
  0x2d   :  { %1281 = vmatprep.mubr.msk.f32.mxu1 %vm62_vm0, %v1365_v9 }
  0x2f   :  { %1247 = vmatmul.mubr.msk.f32.vlgmr.msra.gmra.mxu0 %vm62_vm0, %v1370_v10 }
  0x30   :  { %1282 = vmatmul.mubr.msk.f32.vlgmr.msra.gmra.mxu1 %vm62_vm0, %v1375_v11  ;;  %1249 = vmatprep.mubr.msk.f32.mxu0 %vm62_vm0, %v1394_v14 }
  0x31   :  { %1284 = vmatprep.mubr.msk.f32.mxu1 %vm62_vm0, %v1399_v15 }
  0x33   :  { %1250 = vmatmul.mubr.msk.f32.gmra.mxu0 %vm62_vm0, %v1404_v16 }
  0x34   :  { %1285 = vmatmul.mubr.msk.f32.gmra.mxu1 %vm62_vm0, %v1409_v17  ;;  %1252 = vmatprep.mubr.msk.f32.mxu0 %vm62_vm0, %v1414_v18 }
  0x35   :  { %1287 = vmatprep.mubr.msk.f32.mxu1 %vm62_vm0, %v1419_v19 }
  0x37   :  { %1253 = vmatmul.mubr.msk.f32.gmra.mxu0 %vm62_vm0, %v1442_v22 }
  0x38   :  { %1288 = vmatmul.mubr.msk.f32.gmra.mxu1 %vm62_vm0, %v1447_v23  ;;  %1255 = vmatprep.mubr.msk.f32.mxu0 %vm62_vm0, %v1452_v24 }
  0x39   :  { %1290 = vmatprep.mubr.msk.f32.mxu1 %vm62_vm0, %v1457_v25 }
  0x3b   :  { %1256 = vmatmul.mubr.msk.f32.gmra.mxu0 %vm62_vm0, %v1476_v28 }
  0x3c   :  { %1291 = vmatmul.mubr.msk.f32.gmra.mxu1 %vm62_vm0, %v1481_v29  ;;  %1258 = vmatprep.mubr.msk.f32.mxu0 %vm62_vm0, %v1486_v30 }
  0x3d   :  { %1293 = vmatprep.mubr.msk.f32.mxu1 %vm62_vm0, %v1491_v31 }
  0x3f   :  { %1259 = vmatmul.mubr.msk.f32.gmra.mxu0 %vm62_vm0, %v44_v34 }
  0x40   :  { %1294 = vmatmul.mubr.msk.f32.gmra.mxu1 %vm62_vm0, %v26_v35  ;;  %1261 = vmatprep.mubr.msk.f32.mxu0 %vm62_vm0, %v45_v36 }
  0x41   :  { %1296 = vmatprep.mubr.msk.f32.mxu1 %vm62_vm0, %v27_v37 }
  0x43   :  { %1262 = vmatmul.mubr.msk.f32.gmra.mxu0 %vm62_vm0, %v46_v38 }
  0x44   :  { %1297 = vmatmul.mubr.msk.f32.gmra.mxu1 %vm62_vm0, %v28_v39  ;;  %1264 = vmatprep.mubr.msk.f32.mxu0 %vm62_vm0, %v47_v40  ;;  %v1678_v39 = vld [vmem:[%s1834_s3] ss:$0 sm:$0xff] }
  0x45   :  { %1299 = vmatprep.mubr.msk.f32.mxu1 %vm62_vm0, %v29_v41 }
  0x47   :  { %1265 = vmatmul.mubr.msk.f32.gmra.mxu0 %vm62_vm0, %v48_v42 }
  0x48   :  { %1300 = vmatmul.mubr.msk.f32.gmra.mxu1 %vm62_vm0, %v30_v43  ;;  %1267 = vmatprep.mubr.msk.f32.mxu0 %vm62_vm0, %v49_v44 }
  0x49   :  { %1302 = vmatprep.mubr.msk.f32.mxu1 %vm62_vm0, %v31_v45 }
  0x4b   :  { %1268 = vmatmul.mubr.msk.f32.gmra.mxu0 %vm62_vm0, %v50_v46 }
  0x4c   :  { %1303 = vmatmul.mubr.msk.f32.gmra.mxu1 %vm62_vm0, %v32_v47  ;;  %1270 = vmatprep.mubr.msk.f32.mxu0 %vm62_vm0, %v51_v48 }
  0x4d   :  { %1305 = vmatprep.mubr.msk.f32.mxu1 %vm62_vm0, %v33_v49 }
  0x4f   :  { %1271 = vmatmul.mubr.msk.f32.gmra.mxu0 %vm62_vm0, %v52_v50 }
  0x50   :  { %1306 = vmatmul.mubr.msk.f32.gmra.mxu1 %vm62_vm0, %v34_v51 }
  0xcb   :  { %v1178_v52 = vpop.f32.mrf.mxu0 }
  0xcc   :  { %v1213_v53 = vpop.f32.mrf.mxu1 }
  0xcd   :  { %v183_v54 = vpop.f32.mrf.mxu0  ;;  %v398_v41 = vadd.f32 %v1213_v53, %v1178_v52 }
  0xce   :  { %v392_v55 = vpop.f32.mrf.mxu1 }
  0xcf   :  { %v1181_v56 = vpop.f32.mrf.mxu0  ;;  %v393_v35 = vadd.f32 %v392_v55, %v183_v54 }
  0xd0   :  { %v1216_v57 = vpop.f32.mrf.mxu1 }
  0xd1   :  { %v193_v58 = vpop.f32.mrf.mxu0  ;;  %v408_v42 = vadd.f32 %v1216_v57, %v1181_v56 }
  0xd2   :  { %v402_v59 = vpop.f32.mrf.mxu1 }
  0xd3   :  { %v1184_v60 = vpop.f32.mrf.mxu0  ;;  %v403_v43 = vadd.f32 %v402_v59, %v193_v58 }
  0xd4   :  { %v1219_v61 = vpop.f32.mrf.mxu1 }
  0xd5   :  { %v203_v62 = vpop.f32.mrf.mxu0  ;;  %v418_v47 = vadd.f32 %v1219_v61, %v1184_v60 }
  0xd6   :  { %v412_v63 = vpop.f32.mrf.mxu1 }
  0xd7   :  { %v1187_v0 = vpop.f32.mrf.mxu0  ;;  %v413_v51 = vadd.f32 %v412_v63, %v203_v62 }
  0xd8   :  { %v1222_v1 = vpop.f32.mrf.mxu1 }
  0xd9   :  { %v213_v2 = vpop.f32.mrf.mxu0  ;;  %v1680_v54 = vadd.f32 %v1222_v1, %v1187_v0 }
  0xda   :  { %v422_v3 = vpop.f32.mrf.mxu1 }
  0xdb   :  { %v1190_v4 = vpop.f32.mrf.mxu0  ;;  %v423_v55 = vadd.f32 %v422_v3, %v213_v2 }
  0xdc   :  { %v1225_v5 = vpop.f32.mrf.mxu1 }
  0xdd   :  { %v1633_v6 = vpop.f32.mrf.mxu0 }
  0xde   :  { %v1635_v7 = vpop.f32.mrf.mxu1 }
  0xdf   :  { %v1637_v8 = vpop.f32.mrf.mxu0  ;;  %v1689_v62 = vadd.f32 %v1635_v7, %v1633_v6 }
  0xe0   :  { %v1639_v9 = vpop.f32.mrf.mxu1 }
  0xe1   :  { %v1641_v10 = vpop.f32.mrf.mxu0  ;;  %v1695_v2 = vadd.f32 %v1639_v9, %v1637_v8 }
  0xe2   :  { %v1643_v11 = vpop.f32.mrf.mxu1 }
  0xe3   :  { %v1645_v12 = vpop.f32.mrf.mxu0 }
  0xe4   :  { %v1647_v13 = vpop.f32.mrf.mxu1 }
  0xe5   :  { %v1649_v14 = vpop.f32.mrf.mxu0 }
  0xe6   :  { %v1651_v15 = vpop.f32.mrf.mxu1 }
  0xe7   :  { %v1653_v16 = vpop.f32.mrf.mxu0 }
  0xe8   :  { %v1655_v17 = vpop.f32.mrf.mxu1 }
  0xe9   :  { %v1657_v18 = vpop.f32.mrf.mxu0 }
  0xea   :  { %v1659_v19 = vpop.f32.mrf.mxu1 }
  0xeb   :  { %v1661_v20 = vpop.f32.mrf.mxu0 }
  0xec   :  { %v1663_v21 = vpop.f32.mrf.mxu1 }
  0xed   :  { %v1665_v22 = vpop.f32.mrf.mxu0 }
  0xee   :  { %v1667_v23 = vpop.f32.mrf.mxu1 }
  0xef   :  { %v1248_v24 = vpop.f32.mrf.mxu0 }
  0xf0   :  { %v1283_v25 = vpop.f32.mrf.mxu1 }
  0xf1   :  { %v718_v26 = vadd.f32 %v1283_v25, %v1248_v24  ;;  %v557_v27 = vpop.f32.mrf.mxu0 }
  0xf2   :  { %v712_v28 = vpop.f32.mrf.mxu1 }
  0xf3   :  { %v1669_v29 = vadd.f32 %v712_v28, %v557_v27  ;;  %v1251_v30 = vpop.f32.mrf.mxu0  ;;  %v821_v32 = vrot.slane %v718_v26, 1  ;;  %v1683_v27 = vadd.f32 %v1225_v5, %v1190_v4 }
  0xf4   :  { %v1286_v31 = vpop.f32.mrf.mxu1 }
  0xf5   :  { %v820_v33 = vrot.slane %v1669_v29, 1  ;;  %v728_v34 = vadd.f32 %v1286_v31, %v1251_v30  ;;  %v567_v36 = vpop.f32.mrf.mxu0  ;;  %v1701_v31 = vadd.f32 %v1643_v11, %v1641_v10 }
  0xf6   :  { %v722_v37 = vpop.f32.mrf.mxu1 }
  0xf7   :  { %v822_v38 = vsel %vm819_vm1, %v820_v33, %v821_v32  ;;  %v723_v40 = vadd.f32 %v722_v37, %v567_v36  ;;  %v1254_v45 = vpop.f32.mrf.mxu0  ;;  %v825_v48 = vrot.slane %v728_v34, 1 }
  0xf8   :  { %v875_v44 = vadd.f32 %v822_v38, %v393_v35  ;;  %v1289_v46 = vpop.f32.mrf.mxu1  ;;  %v1712_v38 = vadd.f32 %v1647_v13, %v1645_v12 }
  0xf9   :  { %v823_v49 = vrot.slane %v723_v40, 1  ;;  %v738_v50 = vadd.f32 %v1289_v46, %v1254_v45  ;;  %v577_v25 = vpop.f32.mrf.mxu0 }
  0xfa   :  { %v900_v24 = vadd.f32 %v1678_v39, %v875_v44  ;;  %v732_v26 = vpop.f32.mrf.mxu1 }
  0xfb   :  { %v824_v52 = vsel %vm819_vm1, %v821_v32, %v823_v49  ;;  %v826_v53 = vsel %vm819_vm1, %v823_v49, %v825_v48  ;;  %v733_v56 = vadd.f32 %v732_v26, %v577_v25  ;;  %v1257_v60 = vpop.f32.mrf.mxu0  ;;  %v829_v63 = vrot.slane %v738_v50, 1 }
  0xfc   :  { %vm918_vm3 = vcmp.ge.f32.partialorder %v900_v24, 0.0  ;;  %v936_v57 = vmul.f32 0.01, %v900_v24  ;;  %v876_v58 = vadd.f32 %v824_v52, %v398_v41  ;;  %v877_v59 = vadd.f32 %v826_v53, %v403_v43  ;;  %v1292_v61 = vpop.f32.mrf.mxu1 }
  0xfd   :  { %v827_v0 = vrot.slane %v733_v56, 1  ;;  %v1691_v1 = vadd.f32 %v1292_v61, %v1257_v60  ;;  %v587_v28 = vpop.f32.mrf.mxu0 }
  0xfe   :  { %v954_v3 = vsel %vm918_vm3, %v900_v24, %v936_v57  ;;  %v901_v4 = vadd.f32 %v1678_v39, %v876_v58  ;;  %v902_v5 = vadd.f32 %v1678_v39, %v877_v59  ;;  %v742_v30 = vpop.f32.mrf.mxu1 }
  0xff   :  { %973 = vst.msk [vmem:[%s1835_s4] sm:$0xff] %vm972_vm2, %v954_v3  ;;  %v828_v6 = vsel %vm819_vm1, %v825_v48, %v827_v0  ;;  %v830_v7 = vsel %vm819_vm1, %v827_v0, %v829_v63  ;;  %v743_v8 = vadd.f32 %v742_v30, %v587_v28  ;;  %v1260_v34 = vpop.f32.mrf.mxu0  ;;  %v833_v10 = vrot.slane %v1691_v1, 1 }
 0x100   :  { %vm919_vm4 = vcmp.ge.f32.partialorder %v901_v4, 0.0  ;;  %vm920_vm5 = vcmp.ge.f32.partialorder %v902_v5, 0.0  ;;  %v937_v9 = vmul.f32 0.01, %v901_v4  ;;  %v938_v32 = vmul.f32 0.01, %v902_v5  ;;  %v1295_v35 = vpop.f32.mrf.mxu1 }
 0x101   :  { %v878_v36 = vadd.f32 %v828_v6, %v408_v42  ;;  %v879_v37 = vadd.f32 %v830_v7, %v413_v51  ;;  %v831_v11 = vrot.slane %v743_v8, 1  ;;  %v758_v43 = vadd.f32 %v1295_v35, %v1260_v34  ;;  %v597_v44 = vpop.f32.mrf.mxu0 }
 0x102   :  { %v955_v40 = vsel %vm919_vm4, %v901_v4, %v937_v9  ;;  %v956_v41 = vsel %vm920_vm5, %v902_v5, %v938_v32  ;;  %v752_v45 = vpop.f32.mrf.mxu1  ;;  %v1728_v48 = vadd.f32 %v1651_v15, %v1649_v14 }
 0x103   :  { %974 = vst.msk [vmem:[%s1835_s4 + $0x8] sm:$0xff] %vm972_vm2, %v955_v40  ;;  %975 = vst.msk [vmem:[%s1835_s4 + $0x10] sm:$0xff] %vm972_vm2, %v956_v41  ;;  %v903_v42 = vadd.f32 %v1678_v39, %v878_v36  ;;  %v904_v12 = vadd.f32 %v1678_v39, %v879_v37  ;;  %v832_v13 = vsel %vm819_vm1, %v829_v63, %v831_v11  ;;  %v1263_v24 = vpop.f32.mrf.mxu0  ;;  %v837_v15 = vrot.slane %v758_v43, 1 }
 0x104   :  { %v834_v46 = vsel %vm819_vm1, %v831_v11, %v833_v10  ;;  %v880_v49 = vadd.f32 %v832_v13, %v418_v47  ;;  %v753_v51 = vadd.f32 %v752_v45, %v597_v44  ;;  %v1298_v25 = vpop.f32.mrf.mxu1  ;;  %v468_v43 = vadd.f32 %v1655_v17, %v1653_v16 }
 0x105   :  { %v881_v50 = vadd.f32 %v834_v46, %v423_v55  ;;  %vm921_vm6 = vcmp.ge.f32.partialorder %v903_v42, 0.0  ;;  %vm922_vm7 = vcmp.ge.f32.partialorder %v904_v12, 0.0  ;;  %v939_v26 = vmul.f32 0.01, %v903_v42  ;;  %v607_v59 = vpop.f32.mrf.mxu0 }
 0x106   :  { %v940_v52 = vmul.f32 0.01, %v904_v12  ;;  %v905_v53 = vadd.f32 %v1678_v39, %v880_v49  ;;  %v835_v57 = vrot.slane %v753_v51, 1  ;;  %v768_v58 = vadd.f32 %v1298_v25, %v1263_v24  ;;  %v762_v60 = vpop.f32.mrf.mxu1 }
 0x107   :  { %v906_v56 = vadd.f32 %v1678_v39, %v881_v50  ;;  %v957_v61 = vsel %vm921_vm6, %v903_v42, %v939_v26  ;;  %v763_v47 = vadd.f32 %v762_v60, %v607_v59  ;;  %v1266_v0 = vpop.f32.mrf.mxu0 }
 0x108   :  { %v958_v14 = vsel %vm922_vm7, %v904_v12, %v940_v52  ;;  %976 = vst.msk [vmem:[%s1835_s4 + $0x18] sm:$0xff] %vm972_vm2, %v957_v61  ;;  %vm923_vm8 = vcmp.ge.f32.partialorder %v905_v53, 0.0  ;;  %v941_v55 = vmul.f32 0.01, %v905_v53  ;;  %v1301_v1 = vpop.f32.mrf.mxu1  ;;  %v836_v3 = vsel %vm819_vm1, %v833_v10, %v835_v57 }
 0x109   :  { %977 = vst.msk [vmem:[%s1835_s4 + $0x20] sm:$0xff] %vm972_vm2, %v958_v14  ;;  %vm924_vm9 = vcmp.ge.f32.partialorder %v906_v56, 0.0  ;;  %v942_v63 = vmul.f32 0.01, %v906_v56  ;;  %v838_v4 = vsel %vm819_vm1, %v835_v57, %v837_v15  ;;  %v841_v5 = vrot.slane %v768_v58, 1  ;;  %v617_v9 = vpop.f32.mrf.mxu0 }
 0x10a   :  { %v839_v28 = vrot.slane %v763_v47, 1  ;;  %v959_v30 = vsel %vm923_vm8, %v905_v53, %v941_v55  ;;  %v882_v7 = vadd.f32 %v836_v3, %v1680_v54  ;;  %v883_v8 = vadd.f32 %v838_v4, %v1689_v62  ;;  %v772_v32 = vpop.f32.mrf.mxu1 }
 0x10b   :  { %v960_v6 = vsel %vm924_vm9, %v906_v56, %v942_v63  ;;  %978 = vst.msk [vmem:[%s1835_s4 + $0x28] sm:$0xff] %vm972_vm2, %v959_v30  ;;  %v778_v36 = vadd.f32 %v1301_v1, %v1266_v0  ;;  %v773_v54 = vadd.f32 %v772_v32, %v617_v9  ;;  %v1269_v40 = vpop.f32.mrf.mxu0  ;;  %v478_v3 = vadd.f32 %v1663_v21, %v1661_v20 }
 0x10c   :  { %979 = vst.msk [vmem:[%s1835_s4 + $0x30] sm:$0xff] %vm972_vm2, %v960_v6  ;;  %v840_v34 = vsel %vm819_vm1, %v837_v15, %v839_v28  ;;  %v842_v35 = vsel %vm819_vm1, %v839_v28, %v841_v5  ;;  %v907_v62 = vadd.f32 %v1678_v39, %v882_v7  ;;  %v908_v37 = vadd.f32 %v1678_v39, %v883_v8  ;;  %v1304_v41 = vpop.f32.mrf.mxu1 }
 0x10d   :  { %v884_v10 = vadd.f32 %v840_v34, %v1683_v27  ;;  %v885_v11 = vadd.f32 %v842_v35, %v1701_v31  ;;  %v845_v44 = vrot.slane %v778_v36, 1  ;;  %v843_v45 = vrot.slane %v773_v54, 1  ;;  %v627_v46 = vpop.f32.mrf.mxu0 }
 0x10e   :  { %v788_v42 = vadd.f32 %v1304_v41, %v1269_v40  ;;  %vm925_vm10 = vcmp.ge.f32.partialorder %v907_v62, 0.0  ;;  %vm926_vm11 = vcmp.ge.f32.partialorder %v908_v37, 0.0  ;;  %v943_v12 = vmul.f32 0.01, %v907_v62  ;;  %v782_v49 = vpop.f32.mrf.mxu1 }
 0x10f   :  { %v944_v13 = vmul.f32 0.01, %v908_v37  ;;  %v909_v50 = vadd.f32 %v1678_v39, %v884_v10  ;;  %v910_v27 = vadd.f32 %v1678_v39, %v885_v11  ;;  %v844_v31 = vsel %vm819_vm1, %v841_v5, %v843_v45  ;;  %v1272_v26 = vpop.f32.mrf.mxu0 }
 0x110   :  { %v846_v51 = vsel %vm819_vm1, %v843_v45, %v845_v44  ;;  %v961_v24 = vsel %vm925_vm10, %v907_v62, %v943_v12  ;;  %v886_v16 = vadd.f32 %v844_v31, %v1695_v2  ;;  %v1307_v52 = vpop.f32.mrf.mxu1  ;;  %v463_v2 = vadd.f32 %v1659_v19, %v1657_v18 }
 0x111   :  { %v962_v25 = vsel %vm926_vm11, %v908_v37, %v944_v13  ;;  %v887_v17 = vadd.f32 %v846_v51, %v1728_v48  ;;  %980 = vst.msk [vmem:[%s1835_s4 + $0x38] sm:$0xff] %vm972_vm2, %v961_v24  ;;  %vm927_vm12 = vcmp.ge.f32.partialorder %v909_v50, 0.0  ;;  %vm928_vm13 = vcmp.ge.f32.partialorder %v910_v27, 0.0  ;;  %v637_v59 = vpop.f32.mrf.mxu0 }
 0x112   :  { %981 = vst.msk [vmem:[%s1835_s4 + $0x40] sm:$0xff] %vm972_vm2, %v962_v25  ;;  %v945_v53 = vmul.f32 0.01, %v909_v50  ;;  %v946_v56 = vmul.f32 0.01, %v910_v27  ;;  %v911_v48 = vadd.f32 %v1678_v39, %v886_v16  ;;  %v783_v58 = vadd.f32 %v782_v49, %v627_v46  ;;  %v792_v60 = vpop.f32.mrf.mxu1 }
 0x113   :  { %v912_v57 = vadd.f32 %v1678_v39, %v887_v17  ;;  %v798_v15 = vadd.f32 %v1307_v52, %v1272_v26  ;;  %v793_v47 = vadd.f32 %v792_v60, %v637_v59  ;;  %v849_v55 = vrot.slane %v788_v42, 1 }
 0x114   :  { %v963_v61 = vsel %vm927_vm12, %v909_v50, %v945_v53  ;;  %v964_v14 = vsel %vm928_vm13, %v910_v27, %v946_v56  ;;  %vm929_vm14 = vcmp.ge.f32.partialorder %v911_v48, 0.0  ;;  %v947_v18 = vmul.f32 0.01, %v911_v48 }
 0x115   :  { %982 = vst.msk [vmem:[%s1835_s4 + $0x48] sm:$0xff] %vm972_vm2, %v963_v61  ;;  %983 = vst.msk [vmem:[%s1835_s4 + $0x50] sm:$0xff] %vm972_vm2, %v964_v14  ;;  %vm930_vm15 = vcmp.ge.f32.partialorder %v912_v57, 0.0  ;;  %v948_v19 = vmul.f32 0.01, %v912_v57  ;;  %v847_v63 = vrot.slane %v783_v58, 1  ;;  %v473_v4 = vadd.f32 %v1667_v23, %v1665_v22 }
 0x116   :  { %v853_v0 = vrot.slane %v798_v15, 1  ;;  %v851_v1 = vrot.slane %v793_v47, 1  ;;  %v965_v5 = vsel %vm929_vm14, %v911_v48, %v947_v18 }
 0x117   :  { %v966_v28 = vsel %vm930_vm15, %v912_v57, %v948_v19  ;;  %984 = vst.msk [vmem:[%s1835_s4 + $0x58] sm:$0xff] %vm972_vm2, %v965_v5  ;;  %v848_v30 = vsel %vm819_vm1, %v845_v44, %v847_v63  ;;  %v850_v6 = vsel %vm819_vm1, %v847_v63, %v849_v55 }
 0x118   :  { %985 = vst.msk [vmem:[%s1835_s4 + $0x60] sm:$0xff] %vm972_vm2, %v966_v28  ;;  %v874_v20 = vsel %vm819_vm1, %v853_v0, %v820_v33  ;;  %v852_v21 = vsel %vm819_vm1, %v849_v55, %v851_v1  ;;  %v888_v22 = vadd.f32 %v848_v30, %v1712_v38  ;;  %v889_v23 = vadd.f32 %v850_v6, %v463_v2 }
 0x119   :  { %v892_v7 = vadd.f32 %v874_v20, %v478_v3  ;;  %v854_v8 = vsel %vm819_vm1, %v851_v1, %v853_v0  ;;  %v890_v9 = vadd.f32 %v852_v21, %v468_v43 }
 0x11a   :  { %v891_v32 = vadd.f32 %v854_v8, %v473_v4  ;;  %v913_v34 = vadd.f32 %v1678_v39, %v888_v22  ;;  %v914_v35 = vadd.f32 %v1678_v39, %v889_v23 }
 0x11b   :  { %v917_v36 = vadd.f32 %v1678_v39, %v892_v7  ;;  %v915_v29 = vadd.f32 %v1678_v39, %v890_v9 }
 0x11c   :  { %v916_v33 = vadd.f32 %v1678_v39, %v891_v32  ;;  %vm931_vm0 = vcmp.ge.f32.partialorder %v913_v34, 0.0  ;;  %vm932_vm3 = vcmp.ge.f32.partialorder %v914_v35, 0.0  ;;  %v949_v54 = vmul.f32 0.01, %v913_v34 }
 0x11d   :  { %v950_v38 = vmul.f32 0.01, %v914_v35  ;;  %vm935_vm4 = vcmp.ge.f32.partialorder %v917_v36, 0.0  ;;  %v953_v62 = vmul.f32 0.01, %v917_v36  ;;  %vm933_vm5 = vcmp.ge.f32.partialorder %v915_v29, 0.0 }
 0x11e   :  { %vm934_vm1 = vcmp.ge.f32.partialorder %v916_v33, 0.0  ;;  %v967_v37 = vsel %vm931_vm0, %v913_v34, %v949_v54  ;;  %v951_v11 = vmul.f32 0.01, %v915_v29  ;;  %v952_v40 = vmul.f32 0.01, %v916_v33 }
 0x11f   :  { %v968_v10 = vsel %vm932_vm3, %v914_v35, %v950_v38  ;;  %986 = vst.msk [vmem:[%s1835_s4 + $0x68] sm:$0xff] %vm972_vm2, %v967_v37  ;;  %v971_v39 = vsel %vm935_vm4, %v917_v36, %v953_v62 }
 0x120   :  { %987 = vst.msk [vmem:[%s1835_s4 + $0x70] sm:$0xff] %vm972_vm2, %v968_v10  ;;  %990 = vst.msk [vmem:[%s1835_s4 + $0x88] sm:$0xff] %vm972_vm2, %v971_v39  ;;  %v969_v41 = vsel %vm933_vm5, %v915_v29, %v951_v11  ;;  %v970_v43 = vsel %vm934_vm1, %v916_v33, %v952_v40 }
 0x121   :  { %988 = vst.msk [vmem:[%s1835_s4 + $0x78] sm:$0xff] %vm972_vm2, %v969_v41  ;;  %989 = vst.msk [vmem:[%s1835_s4 + $0x80] sm:$0xff] %vm972_vm2, %v970_v43 }

// kernel: discriminator_forward.6
= control target key start
LH: loop header
LB: loop body
LE: loop exit
PB: predicated region body
PF: predicated region fallthrough
CT: control target
= control target key end

     0   :  { %v740_v0 = vmov 0.0   ;;  %vm44_vm0 = vcmask 523264   ;;  %vm741_vm1 = vmmov 0   ;;  %vm458_vm2 = vcmask 1046528   ;;  %s1029_s2 = inlined_call_operand.vmem [shape: f32[2,2,64,32], index: 2, kind: input, shape index: {}]   ;;  %s1030_s1 = inlined_call_operand.vmem [shape: f32[40,64], index: 1, kind: input, shape index: {}]   ;;  %s1031_s0 = inlined_call_operand.vmem [shape: f32[40,64], index: 0, kind: input, shape index: {}]   ;;  %s1032_s3 = inlined_call_operand.vmem [shape: f32[1,32], index: 3, kind: input, shape index: {}]   ;;  %s1033_s4 = inlined_call_operand.vmem [shape: f32[40,32], index: 4, kind: output, shape index: {}]  }
   0x1   :  { %614 = vmatprep.subr.mxu0 %v740_v0  ;;  %645 = vmatprep.subr.mxu1 %v740_v0  ;;  %v524_v1 = vld [vmem:[%s1029_s2 + $0xb8] sm:$0xff]  ;;  %v523_v3 = vld [vmem:[%s1029_s2 + $0xb0] sm:$0xff]  ;;  %v522_v5 = vld [vmem:[%s1029_s2 + $0xa8] sm:$0xff]  ;;  %vm507_vm4 = vcmask 261120  }
   0x2   :  { %v34_v2 = vld [vmem:[%s1029_s2 + $0x38] sm:$0xff]  ;;  %615 = vmatpush3.msra.mxu0 %v524_v1  ;;  %v33_v4 = vld [vmem:[%s1029_s2 + $0x30] sm:$0xff]  ;;  %v32_v6 = vld [vmem:[%s1029_s2 + $0x28] sm:$0xff]  ;;  %630 = vmatprep.mubr.msk.f32.mxu0 %vm741_vm1, %v740_v0 }
   0x3   :  { %646 = vmatpush3.msra.mxu1 %v34_v2  ;;  %616 = vmatprep.subr.mxu0 %v740_v0  ;;  %v521_v7 = vld [vmem:[%s1029_s2 + $0xa0] sm:$0xff]  ;;  %v520_v9 = vld [vmem:[%s1029_s2 + $0x98] sm:$0xff]  ;;  %v519_v11 = vld [vmem:[%s1029_s2 + $0x90] sm:$0xff] }
   0x4   :  { %647 = vmatprep.subr.mxu1 %v740_v0  ;;  %617 = vmatpush3.msra.mxu0 %v523_v3  ;;  %v31_v8 = vld [vmem:[%s1029_s2 + $0x20] sm:$0xff]  ;;  %v30_v10 = vld [vmem:[%s1029_s2 + $0x18] sm:$0xff]  ;;  %v29_v12 = vld [vmem:[%s1029_s2 + $0x10] sm:$0xff] }
   0x5   :  { %648 = vmatpush3.msra.mxu1 %v33_v4  ;;  %618 = vmatprep.subr.mxu0 %v740_v0  ;;  %v518_v13 = vld [vmem:[%s1029_s2 + $0x88] sm:$0xff]  ;;  %v517_v15 = vld [vmem:[%s1029_s2 + $0x80] sm:$0xff]  ;;  %v550_v19 = vld [vmem:[%s1029_s2 + $0xf8] sm:$0xff] }
   0x6   :  { %649 = vmatprep.subr.mxu1 %v740_v0  ;;  %619 = vmatpush3.msra.mxu0 %v522_v5  ;;  %v28_v14 = vld [vmem:[%s1029_s2 + $0x8] sm:$0xff]  ;;  %v27_v16 = vld [vmem:[%s1029_s2] sm:$0xff]  ;;  %v542_v20 = vld [vmem:[%s1029_s2 + $0x78] sm:$0xff] }
   0x7   :  { %650 = vmatpush3.msra.mxu1 %v32_v6  ;;  %620 = vmatprep.subr.mxu0 %v740_v0  ;;  %v834_v17 = vld [vmem:[%s1030_s1] sm:$0xff]  ;;  %v860_v21 = vld [vmem:[%s1030_s1 + $0x8] sm:$0xff]  ;;  %v549_v23 = vld [vmem:[%s1029_s2 + $0xf0] sm:$0xff] }
   0x8   :  { %651 = vmatprep.subr.mxu1 %v740_v0  ;;  %621 = vmatpush3.msra.mxu0 %v521_v7  ;;  %v839_v18 = vld [vmem:[%s1031_s0] sm:$0xff]  ;;  %v865_v22 = vld [vmem:[%s1031_s0 + $0x8] sm:$0xff]  ;;  %v541_v24 = vld [vmem:[%s1029_s2 + $0x70] sm:$0xff] }
   0x9   :  { %652 = vmatpush3.msra.mxu1 %v31_v8  ;;  %622 = vmatprep.subr.mxu0 %v740_v0  ;;  %v548_v25 = vld [vmem:[%s1029_s2 + $0xe8] sm:$0xff]  ;;  %v24_v27 = vld [vmem:[%s1030_s1 + $0x10] sm:$0xff]  ;;  %v547_v29 = vld [vmem:[%s1029_s2 + $0xe0] sm:$0xff] }
   0xa   :  { %653 = vmatprep.subr.mxu1 %v740_v0  ;;  %623 = vmatpush3.msra.mxu0 %v520_v9  ;;  %v540_v26 = vld [vmem:[%s1029_s2 + $0x68] sm:$0xff]  ;;  %v19_v28 = vld [vmem:[%s1031_s0 + $0x10] sm:$0xff]  ;;  %v539_v30 = vld [vmem:[%s1029_s2 + $0x60] sm:$0xff] }
   0xb   :  { %654 = vmatpush3.msra.mxu1 %v30_v10  ;;  %624 = vmatprep.subr.mxu0 %v740_v0  ;;  %v546_v31 = vld [vmem:[%s1029_s2 + $0xd8] sm:$0xff]  ;;  %v545_v35 = vld [vmem:[%s1029_s2 + $0xd0] sm:$0xff]  ;;  %v26_v37 = vld [vmem:[%s1030_s1 + $0x20] sm:$0xff] }
   0xc   :  { %655 = vmatprep.subr.mxu1 %v740_v0  ;;  %625 = vmatpush3.msra.mxu0 %v519_v11  ;;  %v538_v32 = vld [vmem:[%s1029_s2 + $0x58] sm:$0xff]  ;;  %v537_v36 = vld [vmem:[%s1029_s2 + $0x50] sm:$0xff]  ;;  %v21_v38 = vld [vmem:[%s1031_s0 + $0x20] sm:$0xff] }
   0xd   :  { %656 = vmatpush3.msra.mxu1 %v29_v12  ;;  %626 = vmatprep.subr.mxu0 %v740_v0  ;;  %v25_v33 = vld [vmem:[%s1030_s1 + $0x18] sm:$0xff]  ;;  %v544_v39 = vld [vmem:[%s1029_s2 + $0xc8] sm:$0xff]  ;;  %v543_v41 = vld [vmem:[%s1029_s2 + $0xc0] sm:$0xff] }
   0xe   :  { %657 = vmatprep.subr.mxu1 %v740_v0  ;;  %627 = vmatpush3.msra.mxu0 %v518_v13  ;;  %v20_v34 = vld [vmem:[%s1031_s0 + $0x18] sm:$0xff]  ;;  %v536_v40 = vld [vmem:[%s1029_s2 + $0x48] sm:$0xff]  ;;  %v535_v42 = vld [vmem:[%s1029_s2 + $0x40] sm:$0xff] }
   0xf   :  { %658 = vmatpush3.msra.mxu1 %v28_v14  ;;  %628 = vmatprep.subr.mxu0 %v740_v0 }
  0x10   :  { %659 = vmatprep.subr.mxu1 %v740_v0  ;;  %629 = vmatpush3.msra.mxu0 %v517_v15  ;;  %v561_v15 = vld [vmem:[%s1032_s3] ss:$0 sm:$0xff] }
  0x11   :  { %660 = vmatpush3.msra.mxu1 %v27_v16  ;;  %661 = vmatprep.mubr.msk.f32.mxu1 %vm741_vm1, %v740_v0 }
  0x12   :  { %631 = vmatmul.mubr.msk.f32.vlgmr.msra.gmra.mxu0 %vm44_vm0, %v834_v17  ;;  %662 = vmatmul.mubr.msk.f32.vlgmr.msra.gmra.mxu1 %vm44_vm0, %v839_v18 }
  0x13   :  { %676 = vmatprep.subr.mxu0 %v740_v0  ;;  %707 = vmatprep.subr.mxu1 %v740_v0 }
  0x14   :  { %677 = vmatpush3.msra.mxu0 %v550_v19  ;;  %708 = vmatpush3.msra.mxu1 %v542_v20 }
  0x15   :  { %633 = vmatprep.mubr.msk.f32.mxu0 %vm741_vm1, %v740_v0  ;;  %664 = vmatprep.mubr.msk.f32.mxu1 %vm741_vm1, %v740_v0 }
  0x16   :  { %678 = vmatprep.subr.mxu0 %v740_v0  ;;  %709 = vmatprep.subr.mxu1 %v740_v0 }
  0x17   :  { %634 = vmatmul.mubr.msk.f32.gmra.mxu0 %vm44_vm0, %v860_v21  ;;  %665 = vmatmul.mubr.msk.f32.gmra.mxu1 %vm44_vm0, %v865_v22 }
  0x18   :  { %679 = vmatpush3.msra.mxu0 %v549_v23  ;;  %710 = vmatpush3.msra.mxu1 %v541_v24 }
  0x19   :  { %680 = vmatprep.subr.mxu0 %v740_v0  ;;  %711 = vmatprep.subr.mxu1 %v740_v0 }
  0x1a   :  { %681 = vmatpush3.msra.mxu0 %v548_v25  ;;  %712 = vmatpush3.msra.mxu1 %v540_v26 }
  0x1b   :  { %636 = vmatprep.mubr.msk.f32.mxu0 %vm741_vm1, %v740_v0  ;;  %667 = vmatprep.mubr.msk.f32.mxu1 %vm741_vm1, %v740_v0 }
  0x1c   :  { %637 = vmatmul.mubr.msk.f32.gmra.mxu0 %vm44_vm0, %v24_v27  ;;  %668 = vmatmul.mubr.msk.f32.gmra.mxu1 %vm44_vm0, %v19_v28 }
  0x1d   :  { %682 = vmatprep.subr.mxu0 %v740_v0  ;;  %713 = vmatprep.subr.mxu1 %v740_v0 }
  0x1e   :  { %683 = vmatpush3.msra.mxu0 %v547_v29  ;;  %714 = vmatpush3.msra.mxu1 %v539_v30 }
  0x1f   :  { %684 = vmatprep.subr.mxu0 %v740_v0  ;;  %715 = vmatprep.subr.mxu1 %v740_v0 }
  0x20   :  { %639 = vmatprep.mubr.msk.f32.mxu0 %vm741_vm1, %v740_v0  ;;  %670 = vmatprep.mubr.msk.f32.mxu1 %vm741_vm1, %v740_v0 }
  0x21   :  { %685 = vmatpush3.msra.mxu0 %v546_v31  ;;  %716 = vmatpush3.msra.mxu1 %v538_v32 }
  0x22   :  { %640 = vmatmul.mubr.msk.f32.gmra.mxu0 %vm44_vm0, %v25_v33  ;;  %671 = vmatmul.mubr.msk.f32.gmra.mxu1 %vm44_vm0, %v20_v34 }
  0x23   :  { %686 = vmatprep.subr.mxu0 %v740_v0  ;;  %717 = vmatprep.subr.mxu1 %v740_v0 }
  0x24   :  { %687 = vmatpush3.msra.mxu0 %v545_v35  ;;  %718 = vmatpush3.msra.mxu1 %v537_v36 }
  0x25   :  { %642 = vmatprep.mubr.msk.f32.mxu0 %vm741_vm1, %v740_v0  ;;  %673 = vmatprep.mubr.msk.f32.mxu1 %vm741_vm1, %v740_v0 }
  0x26   :  { %688 = vmatprep.subr.mxu0 %v740_v0  ;;  %719 = vmatprep.subr.mxu1 %v740_v0 }
  0x27   :  { %643 = vmatmul.mubr.msk.f32.gmra.mxu0 %vm44_vm0, %v26_v37  ;;  %674 = vmatmul.mubr.msk.f32.gmra.mxu1 %vm44_vm0, %v21_v38 }
  0x28   :  { %689 = vmatpush3.msra.mxu0 %v544_v39  ;;  %720 = vmatpush3.msra.mxu1 %v536_v40 }
  0x29   :  { %690 = vmatprep.subr.mxu0 %v740_v0  ;;  %721 = vmatprep.subr.mxu1 %v740_v0 }
  0x2a   :  { %691 = vmatpush3.msra.mxu0 %v543_v41  ;;  %692 = vmatprep.mubr.msk.f32.mxu0 %vm741_vm1, %v740_v0 }
  0x2b   :  { %722 = vmatpush3.msra.mxu1 %v535_v42  ;;  %723 = vmatprep.mubr.msk.f32.mxu1 %vm741_vm1, %v740_v0 }
  0x2c   :  { %693 = vmatmul.mubr.msk.f32.vlgmr.msra.gmra.mxu0 %vm44_vm0, %v834_v17  ;;  %724 = vmatmul.mubr.msk.f32.vlgmr.msra.gmra.mxu1 %vm44_vm0, %v839_v18 }
  0x2d   :  { %695 = vmatprep.mubr.msk.f32.mxu0 %vm741_vm1, %v740_v0  ;;  %726 = vmatprep.mubr.msk.f32.mxu1 %vm741_vm1, %v740_v0 }
  0x30   :  { %696 = vmatmul.mubr.msk.f32.gmra.mxu0 %vm44_vm0, %v860_v21  ;;  %727 = vmatmul.mubr.msk.f32.gmra.mxu1 %vm44_vm0, %v865_v22 }
  0x31   :  { %698 = vmatprep.mubr.msk.f32.mxu0 %vm741_vm1, %v740_v0  ;;  %729 = vmatprep.mubr.msk.f32.mxu1 %vm741_vm1, %v740_v0 }
  0x34   :  { %699 = vmatmul.mubr.msk.f32.gmra.mxu0 %vm44_vm0, %v24_v27  ;;  %730 = vmatmul.mubr.msk.f32.gmra.mxu1 %vm44_vm0, %v19_v28 }
  0x35   :  { %701 = vmatprep.mubr.msk.f32.mxu0 %vm741_vm1, %v740_v0  ;;  %732 = vmatprep.mubr.msk.f32.mxu1 %vm741_vm1, %v740_v0 }
  0x38   :  { %702 = vmatmul.mubr.msk.f32.gmra.mxu0 %vm44_vm0, %v25_v33  ;;  %733 = vmatmul.mubr.msk.f32.gmra.mxu1 %vm44_vm0, %v20_v34 }
  0x39   :  { %704 = vmatprep.mubr.msk.f32.mxu0 %vm741_vm1, %v740_v0  ;;  %735 = vmatprep.mubr.msk.f32.mxu1 %vm741_vm1, %v740_v0 }
  0x3c   :  { %705 = vmatmul.mubr.msk.f32.gmra.mxu0 %vm44_vm0, %v26_v37  ;;  %736 = vmatmul.mubr.msk.f32.gmra.mxu1 %vm44_vm0, %v21_v38 }
  0xd2   :  { %v126_v43 = vpop.f32.mrf.mxu0  ;;  %v231_v44 = vpop.f32.mrf.mxu1 }
  0xd3   :  { %v232_v11 = vadd.f32 %v231_v44, %v126_v43 }
  0xd4   :  { %v632_v45 = vpop.f32.mrf.mxu0  ;;  %v663_v46 = vpop.f32.mrf.mxu1 }
  0xd7   :  { %v131_v47 = vpop.f32.mrf.mxu0  ;;  %v236_v48 = vpop.f32.mrf.mxu1 }
  0xd8   :  { %v237_v21 = vadd.f32 %v236_v48, %v131_v47 }
  0xd9   :  { %v635_v49 = vpop.f32.mrf.mxu0  ;;  %v666_v50 = vpop.f32.mrf.mxu1 }
  0xdc   :  { %v136_v51 = vpop.f32.mrf.mxu0  ;;  %v241_v52 = vpop.f32.mrf.mxu1 }
  0xdd   :  { %v242_v32 = vadd.f32 %v241_v52, %v136_v51 }
  0xde   :  { %v638_v53 = vpop.f32.mrf.mxu0  ;;  %v669_v54 = vpop.f32.mrf.mxu1 }
  0xe2   :  { %v141_v55 = vpop.f32.mrf.mxu0  ;;  %v246_v56 = vpop.f32.mrf.mxu1 }
  0xe3   :  { %v247_v44 = vadd.f32 %v246_v56, %v141_v55 }
  0xe4   :  { %v641_v57 = vpop.f32.mrf.mxu0  ;;  %v672_v58 = vpop.f32.mrf.mxu1 }
  0xe7   :  { %v146_v59 = vpop.f32.mrf.mxu0  ;;  %v251_v60 = vpop.f32.mrf.mxu1 }
  0xe8   :  { %v252_v45 = vadd.f32 %v251_v60, %v146_v59 }
  0xe9   :  { %v644_v61 = vpop.f32.mrf.mxu0  ;;  %v675_v62 = vpop.f32.mrf.mxu1 }
  0xec   :  { %v339_v63 = vpop.f32.mrf.mxu0  ;;  %v429_v0 = vpop.f32.mrf.mxu1 }
  0xed   :  { %v430_v3 = vadd.f32 %v429_v0, %v339_v63 }
  0xee   :  { %v694_v1 = vpop.f32.mrf.mxu0  ;;  %v725_v2 = vpop.f32.mrf.mxu1 }
  0xef   :  { %v459_v9 = vrot.slane %v430_v3, 1 }
  0xf0   :  { %v344_v4 = vpop.f32.mrf.mxu0  ;;  %v434_v5 = vpop.f32.mrf.mxu1 }
  0xf1   :  { %v435_v6 = vadd.f32 %v434_v5, %v344_v4 }
  0xf2   :  { %v697_v7 = vpop.f32.mrf.mxu0  ;;  %v728_v8 = vpop.f32.mrf.mxu1 }
  0xf3   :  { %v460_v10 = vrot.slane %v435_v6, 1 }
  0xf4   :  { %v349_v12 = vpop.f32.mrf.mxu0  ;;  %v439_v13 = vpop.f32.mrf.mxu1 }
  0xf5   :  { %v461_v14 = vsel %vm458_vm2, %v459_v9, %v460_v10  ;;  %v440_v16 = vadd.f32 %v439_v13, %v349_v12 }
  0xf6   :  { %v475_v17 = vadd.f32 %v461_v14, %v232_v11  ;;  %v700_v18 = vpop.f32.mrf.mxu0  ;;  %v731_v19 = vpop.f32.mrf.mxu1 }
  0xf7   :  { %v462_v20 = vrot.slane %v440_v16, 1 }
  0xf8   :  { %v487_v22 = vadd.f32 %v561_v15, %v475_v17  ;;  %v354_v23 = vpop.f32.mrf.mxu0  ;;  %v444_v24 = vpop.f32.mrf.mxu1 }
  0xf9   :  { %v463_v25 = vsel %vm458_vm2, %v460_v10, %v462_v20  ;;  %v445_v26 = vadd.f32 %v444_v24, %v354_v23 }
  0xfa   :  { %vm492_vm3 = vcmp.ge.f32.partialorder %v487_v22, 0.0  ;;  %v497_v27 = vmul.f32 0.01, %v487_v22  ;;  %v476_v28 = vadd.f32 %v463_v25, %v237_v21  ;;  %v703_v29 = vpop.f32.mrf.mxu0  ;;  %v734_v30 = vpop.f32.mrf.mxu1 }
  0xfb   :  { %v464_v31 = vrot.slane %v445_v26, 1 }
  0xfc   :  { %v502_v33 = vsel %vm492_vm3, %v487_v22, %v497_v27  ;;  %v488_v34 = vadd.f32 %v561_v15, %v476_v28  ;;  %v359_v35 = vpop.f32.mrf.mxu0  ;;  %v449_v36 = vpop.f32.mrf.mxu1 }
  0xfd   :  { %508 = vst.msk [vmem:[%s1033_s4] sm:$0xff] %vm507_vm4, %v502_v33  ;;  %v465_v37 = vsel %vm458_vm2, %v462_v20, %v464_v31  ;;  %v450_v38 = vadd.f32 %v449_v36, %v359_v35 }
  0xfe   :  { %vm493_vm5 = vcmp.ge.f32.partialorder %v488_v34, 0.0  ;;  %v498_v39 = vmul.f32 0.01, %v488_v34  ;;  %v477_v40 = vadd.f32 %v465_v37, %v242_v32  ;;  %v706_v41 = vpop.f32.mrf.mxu0  ;;  %v737_v42 = vpop.f32.mrf.mxu1 }
  0xff   :  { %v466_v43 = vrot.slane %v450_v38, 1 }
 0x100   :  { %v503_v46 = vsel %vm493_vm5, %v488_v34, %v498_v39  ;;  %v489_v47 = vadd.f32 %v561_v15, %v477_v40 }
 0x101   :  { %509 = vst.msk [vmem:[%s1033_s4 + $0x8] sm:$0xff] %vm507_vm4, %v503_v46  ;;  %v467_v48 = vsel %vm458_vm2, %v464_v31, %v466_v43  ;;  %v474_v49 = vsel %vm458_vm2, %v466_v43, %v459_v9 }
 0x102   :  { %vm494_vm6 = vcmp.ge.f32.partialorder %v489_v47, 0.0  ;;  %v499_v50 = vmul.f32 0.01, %v489_v47  ;;  %v478_v51 = vadd.f32 %v467_v48, %v247_v44  ;;  %v479_v52 = vadd.f32 %v474_v49, %v252_v45 }
 0x104   :  { %v504_v53 = vsel %vm494_vm6, %v489_v47, %v499_v50  ;;  %v490_v54 = vadd.f32 %v561_v15, %v478_v51  ;;  %v491_v57 = vadd.f32 %v561_v15, %v479_v52 }
 0x105   :  { %510 = vst.msk [vmem:[%s1033_s4 + $0x10] sm:$0xff] %vm507_vm4, %v504_v53 }
 0x106   :  { %vm495_vm7 = vcmp.ge.f32.partialorder %v490_v54, 0.0  ;;  %vm496_vm8 = vcmp.ge.f32.partialorder %v491_v57, 0.0  ;;  %v500_v55 = vmul.f32 0.01, %v490_v54  ;;  %v501_v56 = vmul.f32 0.01, %v491_v57 }
 0x108   :  { %v505_v58 = vsel %vm495_vm7, %v490_v54, %v500_v55  ;;  %v506_v59 = vsel %vm496_vm8, %v491_v57, %v501_v56 }
 0x109   :  { %511 = vst.msk [vmem:[%s1033_s4 + $0x18] sm:$0xff] %vm507_vm4, %v505_v58  ;;  %512 = vst.msk [vmem:[%s1033_s4 + $0x20] sm:$0xff] %vm507_vm4, %v506_v59 }

// kernel: discriminator_forward.7
= control target key start
LH: loop header
LB: loop body
LE: loop exit
PB: predicated region body
PF: predicated region fallthrough
CT: control target
= control target key end

     0   :  { %vm44_vm0 = vcmask 261120   ;;  %vm707_vm1 = vcmask 1046528   ;;  %vm1045_vm2 = vcmask 1045504   ;;  %vm1071_vm3 = vcmask 7168   ;;  %s1816_s3 = inlined_call_operand.vmem [shape: f32[3,3,32,1], index: 3, kind: input, shape index: {}]   ;;  %s1817_s1 = inlined_call_operand.vmem [shape: f32[48,32], index: 1, kind: input, shape index: {}]   ;;  %s1818_s0 = inlined_call_operand.vmem [shape: f32[48,32], index: 0, kind: input, shape index: {}]   ;;  %s1819_s2 = inlined_call_operand.vmem [shape: f32[48,32], index: 2, kind: input, shape index: {}]   ;;  %s1820_s4 = inlined_call_operand.vmem [shape: f32[48,1], index: 4, kind: output, shape index: {}]  }
   0x1   :  { %v1085_v0 = vld [vmem:[%s1816_s3 + $0x78] sm:$0xff]  ;;  %v1084_v1 = vld [vmem:[%s1816_s3 + $0x70] sm:$0xff]  ;;  %v1083_v2 = vld [vmem:[%s1816_s3 + $0x68] sm:$0xff] }
   0x2   :  { %1258 = vmatprep.subr.mxu0 %v1085_v0  ;;  %1411 = vmatprep.subr.mxu1 %v1085_v0  ;;  %v1082_v3 = vld [vmem:[%s1816_s3 + $0x60] sm:$0xff]  ;;  %v1469_v6 = vld [vmem:[%s1817_s1 + $0x8] sm:$0xff]  ;;  %v38_v8 = vld [vmem:[%s1816_s3 + $0x18] sm:$0xff] }
   0x3   :  { %1259 = vmatpush3.msra.mxu0 %v1085_v0  ;;  %1415 = vmatpush3.msra.mxu1 %v1085_v0  ;;  %v1459_v4 = vld [vmem:[%s1817_s1] sm:$0xff]  ;;  %v1474_v7 = vld [vmem:[%s1817_s1 + $0x28] sm:$0xff]  ;;  %v1101_v9 = vld [vmem:[%s1816_s3 + $0xd8] sm:$0xff] }
   0x4   :  { %1260 = vmatprep.subr.mxu0 %v1084_v1  ;;  %1412 = vmatprep.subr.mxu1 %v1084_v1  ;;  %v1464_v5 = vld [vmem:[%s1817_s1 + $0x20] sm:$0xff]  ;;  %v37_v10 = vld [vmem:[%s1816_s3 + $0x10] sm:$0xff]  ;;  %v36_v13 = vld [vmem:[%s1816_s3 + $0x8] sm:$0xff] }
   0x5   :  { %1261 = vmatpush3.msra.mxu0 %v1084_v1  ;;  %1416 = vmatpush3.msra.mxu1 %v1084_v1  ;;  %v1100_v11 = vld [vmem:[%s1816_s3 + $0xd0] sm:$0xff]  ;;  %v1507_v14 = vld [vmem:[%s1817_s1 + $0x18] sm:$0xff]  ;;  %v1099_v15 = vld [vmem:[%s1816_s3 + $0xc8] sm:$0xff] }
   0x6   :  { %1262 = vmatprep.subr.mxu0 %v1083_v2  ;;  %1413 = vmatprep.subr.mxu1 %v1083_v2  ;;  %v1499_v12 = vld [vmem:[%s1817_s1 + $0x10] sm:$0xff]  ;;  %v35_v16 = vld [vmem:[%s1816_s3] sm:$0xff]  ;;  %v1535_v20 = vld [vmem:[%s1818_s0 + $0x8] sm:$0xff] }
   0x7   :  { %1263 = vmatpush3.msra.mxu0 %v1083_v2  ;;  %1417 = vmatpush3.msra.mxu1 %v1083_v2  ;;  %v1098_v17 = vld [vmem:[%s1816_s3 + $0xc0] sm:$0xff]  ;;  %v1540_v21 = vld [vmem:[%s1819_s2 + $0x8] sm:$0xff]  ;;  %v1115_v22 = vld [vmem:[%s1816_s3 + $0x98] sm:$0xff] }
   0x8   :  { %1264 = vmatprep.subr.mxu0 %v1082_v3  ;;  %1414 = vmatprep.subr.mxu1 %v1082_v3  ;;  %v1525_v18 = vld [vmem:[%s1818_s0] sm:$0xff]  ;;  %v1111_v23 = vld [vmem:[%s1816_s3 + $0x38] sm:$0xff]  ;;  %v1555_v24 = vld [vmem:[%s1818_s0 + $0x10] sm:$0xff] }
   0x9   :  { %1265 = vmatpush3.msra.mxu0 %v1082_v3  ;;  %1418 = vmatpush3.msra.mxu1 %v1082_v3  ;;  %v1530_v19 = vld [vmem:[%s1819_s2] sm:$0xff]  ;;  %v1564_v25 = vld [vmem:[%s1819_s2 + $0x10] sm:$0xff]  ;;  %v1572_v27 = vld [vmem:[%s1818_s0 + $0x18] sm:$0xff] }
   0xa   :  { %1266 = vmatprep.mubr.msk.f32.mxu0 %vm44_vm0, %v1459_v4  ;;  %1272 = vmatprep.mubr.msk.f32.mxu1 %vm44_vm0, %v1464_v5  ;;  %v1114_v26 = vld [vmem:[%s1816_s3 + $0x90] sm:$0xff]  ;;  %v1579_v28 = vld [vmem:[%s1819_s2 + $0x18] sm:$0xff]  ;;  %v1113_v30 = vld [vmem:[%s1816_s3 + $0x88] sm:$0xff] }
   0xb   :  { %1267 = vmatmul.mubr.msk.f32.vlgmr.msra.gmra.mxu0 %vm44_vm0, %v1469_v6  ;;  %1273 = vmatmul.mubr.msk.f32.vlgmr.msra.gmra.mxu1 %vm44_vm0, %v1474_v7  ;;  %v1110_v29 = vld [vmem:[%s1816_s3 + $0x30] sm:$0xff]  ;;  %v1594_v31 = vld [vmem:[%s1818_s0 + $0x20] sm:$0xff]  ;;  %v1606_v33 = vld [vmem:[%s1818_s0 + $0x28] sm:$0xff] }
   0xc   :  { %1275 = vmatprep.subr.mxu1 %v38_v8  ;;  %1292 = vmatprep.subr.mxu0 %v1101_v9  ;;  %v1601_v32 = vld [vmem:[%s1819_s2 + $0x20] sm:$0xff]  ;;  %v1611_v34 = vld [vmem:[%s1819_s2 + $0x28] sm:$0xff]  ;;  %v1131_v38 = vld [vmem:[%s1816_s3 + $0xf8] sm:$0xff] }
   0xd   :  { %1276 = vmatpush3.msra.mxu1 %v38_v8  ;;  %1293 = vmatpush3.msra.mxu0 %v1101_v9  ;;  %v1109_v35 = vld [vmem:[%s1816_s3 + $0x28] sm:$0xff]  ;;  %v1112_v36 = vld [vmem:[%s1816_s3 + $0x80] sm:$0xff]  ;;  %v1145_v39 = vld [vmem:[%s1816_s3 + $0xb8] sm:$0xff] }
   0xe   :  { %1277 = vmatprep.subr.mxu1 %v37_v10  ;;  %1294 = vmatprep.subr.mxu0 %v1100_v11  ;;  %v1108_v37 = vld [vmem:[%s1816_s3 + $0x20] sm:$0xff]  ;;  %v1130_v40 = vld [vmem:[%s1816_s3 + $0xf0] sm:$0xff]  ;;  %v1129_v42 = vld [vmem:[%s1816_s3 + $0xe8] sm:$0xff] }
   0xf   :  { %1269 = vmatprep.mubr.msk.f32.mxu0 %vm44_vm0, %v1499_v12  ;;  %1278 = vmatpush3.msra.mxu1 %v37_v10  ;;  %v1144_v41 = vld [vmem:[%s1816_s3 + $0xb0] sm:$0xff]  ;;  %v1143_v43 = vld [vmem:[%s1816_s3 + $0xa8] sm:$0xff]  ;;  %v1128_v44 = vld [vmem:[%s1816_s3 + $0xe0] sm:$0xff] }
  0x10   :  { %1295 = vmatpush3.msra.mxu0 %v1100_v11  ;;  %1279 = vmatprep.subr.mxu1 %v36_v13  ;;  %v1142_v45 = vld [vmem:[%s1816_s3 + $0xa0] sm:$0xff]  ;;  %v1141_v46 = vld [vmem:[%s1816_s3 + $0x58] sm:$0xff]  ;;  %v1140_v48 = vld [vmem:[%s1816_s3 + $0x50] sm:$0xff] }
  0x11   :  { %1270 = vmatmul.mubr.msk.f32.gmra.mxu0 %vm44_vm0, %v1507_v14  ;;  %1296 = vmatprep.subr.mxu0 %v1099_v15  ;;  %v1161_v47 = vld [vmem:[%s1816_s3 + $0x118] sm:$0xff]  ;;  %v1160_v49 = vld [vmem:[%s1816_s3 + $0x110] sm:$0xff]  ;;  %v1139_v50 = vld [vmem:[%s1816_s3 + $0x48] sm:$0xff] }
  0x12   :  { %1280 = vmatpush3.msra.mxu1 %v36_v13  ;;  %1297 = vmatpush3.msra.mxu0 %v1099_v15  ;;  %v1159_v51 = vld [vmem:[%s1816_s3 + $0x108] sm:$0xff]  ;;  %v1138_v52 = vld [vmem:[%s1816_s3 + $0x40] sm:$0xff] }
  0x13   :  { %1281 = vmatprep.subr.mxu1 %v35_v16  ;;  %1298 = vmatprep.subr.mxu0 %v1098_v17  ;;  %v1158_v53 = vld [vmem:[%s1816_s3 + $0x100] sm:$0xff] }
  0x14   :  { %1282 = vmatpush3.msra.mxu1 %v35_v16  ;;  %1283 = vmatprep.mubr.msk.f32.mxu1 %vm44_vm0, %v1525_v18 }
  0x15   :  { %1299 = vmatpush3.msra.mxu0 %v1098_v17  ;;  %1300 = vmatprep.mubr.msk.f32.mxu0 %vm44_vm0, %v1530_v19 }
  0x16   :  { %1284 = vmatmul.mubr.msk.f32.vlgmr.msra.gmra.mxu1 %vm44_vm0, %v1535_v20  ;;  %1301 = vmatmul.mubr.msk.f32.vlgmr.msra.gmra.mxu0 %vm44_vm0, %v1540_v21 }
  0x17   :  { %1309 = vmatprep.subr.mxu1 %v1115_v22  ;;  %1326 = vmatprep.subr.mxu0 %v1111_v23 }
  0x18   :  { %1310 = vmatpush3.msra.mxu1 %v1115_v22  ;;  %1286 = vmatprep.mubr.msk.f32.mxu1 %vm44_vm0, %v1555_v24 }
  0x19   :  { %1303 = vmatprep.mubr.msk.f32.mxu0 %vm44_vm0, %v1564_v25  ;;  %1311 = vmatprep.subr.mxu1 %v1114_v26 }
  0x1a   :  { %1327 = vmatpush3.msra.mxu0 %v1111_v23  ;;  %1287 = vmatmul.mubr.msk.f32.gmra.mxu1 %vm44_vm0, %v1572_v27 }
  0x1b   :  { %1304 = vmatmul.mubr.msk.f32.gmra.mxu0 %vm44_vm0, %v1579_v28  ;;  %1312 = vmatpush3.msra.mxu1 %v1114_v26 }
  0x1c   :  { %1328 = vmatprep.subr.mxu0 %v1110_v29  ;;  %1313 = vmatprep.subr.mxu1 %v1113_v30 }
  0x1d   :  { %1329 = vmatpush3.msra.mxu0 %v1110_v29  ;;  %1289 = vmatprep.mubr.msk.f32.mxu1 %vm44_vm0, %v1594_v31 }
  0x1e   :  { %1306 = vmatprep.mubr.msk.f32.mxu0 %vm44_vm0, %v1601_v32  ;;  %1314 = vmatpush3.msra.mxu1 %v1113_v30 }
  0x1f   :  { %1290 = vmatmul.mubr.msk.f32.gmra.mxu1 %vm44_vm0, %v1606_v33  ;;  %1307 = vmatmul.mubr.msk.f32.gmra.mxu0 %vm44_vm0, %v1611_v34 }
  0x20   :  { %1330 = vmatprep.subr.mxu0 %v1109_v35  ;;  %1315 = vmatprep.subr.mxu1 %v1112_v36 }
  0x21   :  { %1331 = vmatpush3.msra.mxu0 %v1109_v35  ;;  %1316 = vmatpush3.msra.mxu1 %v1112_v36 }
  0x22   :  { %1332 = vmatprep.subr.mxu0 %v1108_v37  ;;  %1317 = vmatprep.mubr.msk.f32.mxu1 %vm44_vm0, %v1459_v4 }
  0x23   :  { %1333 = vmatpush3.msra.mxu0 %v1108_v37  ;;  %1334 = vmatprep.mubr.msk.f32.mxu0 %vm44_vm0, %v1525_v18 }
  0x24   :  { %1318 = vmatmul.mubr.msk.f32.vlgmr.msra.gmra.mxu1 %vm44_vm0, %v1469_v6  ;;  %1335 = vmatmul.mubr.msk.f32.vlgmr.msra.gmra.mxu0 %vm44_vm0, %v1535_v20 }
  0x25   :  { %1343 = vmatprep.subr.mxu1 %v1131_v38  ;;  %1360 = vmatprep.subr.mxu0 %v1145_v39 }
  0x26   :  { %1344 = vmatpush3.msra.mxu1 %v1131_v38  ;;  %1320 = vmatprep.mubr.msk.f32.mxu1 %vm44_vm0, %v1499_v12 }
  0x27   :  { %1337 = vmatprep.mubr.msk.f32.mxu0 %vm44_vm0, %v1555_v24  ;;  %1345 = vmatprep.subr.mxu1 %v1130_v40 }
  0x28   :  { %1361 = vmatpush3.msra.mxu0 %v1145_v39  ;;  %1321 = vmatmul.mubr.msk.f32.gmra.mxu1 %vm44_vm0, %v1507_v14 }
  0x29   :  { %1338 = vmatmul.mubr.msk.f32.gmra.mxu0 %vm44_vm0, %v1572_v27  ;;  %1346 = vmatpush3.msra.mxu1 %v1130_v40 }
  0x2a   :  { %1362 = vmatprep.subr.mxu0 %v1144_v41  ;;  %1347 = vmatprep.subr.mxu1 %v1129_v42 }
  0x2b   :  { %1363 = vmatpush3.msra.mxu0 %v1144_v41  ;;  %1323 = vmatprep.mubr.msk.f32.mxu1 %vm44_vm0, %v1464_v5 }
  0x2c   :  { %1340 = vmatprep.mubr.msk.f32.mxu0 %vm44_vm0, %v1594_v31  ;;  %1348 = vmatpush3.msra.mxu1 %v1129_v42 }
  0x2d   :  { %1324 = vmatmul.mubr.msk.f32.gmra.mxu1 %vm44_vm0, %v1474_v7  ;;  %1341 = vmatmul.mubr.msk.f32.gmra.mxu0 %vm44_vm0, %v1606_v33 }
  0x2e   :  { %1364 = vmatprep.subr.mxu0 %v1143_v43  ;;  %1349 = vmatprep.subr.mxu1 %v1128_v44 }
  0x2f   :  { %1365 = vmatpush3.msra.mxu0 %v1143_v43  ;;  %1350 = vmatpush3.msra.mxu1 %v1128_v44 }
  0x30   :  { %1351 = vmatprep.mubr.msk.f32.mxu1 %vm44_vm0, %v1530_v19  ;;  %1366 = vmatprep.subr.mxu0 %v1142_v45 }
  0x31   :  { %1352 = vmatmul.mubr.msk.f32.vlgmr.msra.gmra.mxu1 %vm44_vm0, %v1540_v21  ;;  %1367 = vmatpush3.msra.mxu0 %v1142_v45 }
  0x32   :  { %1368 = vmatprep.mubr.msk.f32.mxu0 %vm44_vm0, %v1459_v4  ;;  %1377 = vmatprep.subr.mxu1 %v1141_v46 }
  0x33   :  { %1369 = vmatmul.mubr.msk.f32.vlgmr.msra.gmra.mxu0 %vm44_vm0, %v1469_v6  ;;  %1378 = vmatpush3.msra.mxu1 %v1141_v46 }
  0x34   :  { %1394 = vmatprep.subr.mxu0 %v1161_v47  ;;  %1354 = vmatprep.mubr.msk.f32.mxu1 %vm44_vm0, %v1564_v25 }
  0x35   :  { %1379 = vmatprep.subr.mxu1 %v1140_v48  ;;  %1395 = vmatpush3.msra.mxu0 %v1161_v47 }
  0x36   :  { %1355 = vmatmul.mubr.msk.f32.gmra.mxu1 %vm44_vm0, %v1579_v28  ;;  %1371 = vmatprep.mubr.msk.f32.mxu0 %vm44_vm0, %v1499_v12 }
  0x37   :  { %1380 = vmatpush3.msra.mxu1 %v1140_v48  ;;  %1372 = vmatmul.mubr.msk.f32.gmra.mxu0 %vm44_vm0, %v1507_v14 }
  0x38   :  { %1396 = vmatprep.subr.mxu0 %v1160_v49  ;;  %1381 = vmatprep.subr.mxu1 %v1139_v50 }
  0x39   :  { %1397 = vmatpush3.msra.mxu0 %v1160_v49  ;;  %1357 = vmatprep.mubr.msk.f32.mxu1 %vm44_vm0, %v1601_v32 }
  0x3a   :  { %1382 = vmatpush3.msra.mxu1 %v1139_v50  ;;  %1374 = vmatprep.mubr.msk.f32.mxu0 %vm44_vm0, %v1464_v5 }
  0x3b   :  { %1358 = vmatmul.mubr.msk.f32.gmra.mxu1 %vm44_vm0, %v1611_v34  ;;  %1398 = vmatprep.subr.mxu0 %v1159_v51 }
  0x3c   :  { %1375 = vmatmul.mubr.msk.f32.gmra.mxu0 %vm44_vm0, %v1474_v7  ;;  %1383 = vmatprep.subr.mxu1 %v1138_v52 }
  0x3d   :  { %1399 = vmatpush3.msra.mxu0 %v1159_v51  ;;  %1384 = vmatpush3.msra.mxu1 %v1138_v52 }
  0x3e   :  { %1385 = vmatprep.mubr.msk.f32.mxu1 %vm44_vm0, %v1525_v18  ;;  %1400 = vmatprep.subr.mxu0 %v1158_v53 }
  0x3f   :  { %1386 = vmatmul.mubr.msk.f32.vlgmr.msra.gmra.mxu1 %vm44_vm0, %v1535_v20  ;;  %1401 = vmatpush3.msra.mxu0 %v1158_v53 }
  0x40   :  { %1402 = vmatprep.mubr.msk.f32.mxu0 %vm44_vm0, %v1530_v19  ;;  %1388 = vmatprep.mubr.msk.f32.mxu1 %vm44_vm0, %v1555_v24 }
  0x41   :  { %1403 = vmatmul.mubr.msk.f32.vlgmr.msra.gmra.mxu0 %vm44_vm0, %v1540_v21 }
  0x42   :  { %1405 = vmatprep.mubr.msk.f32.mxu0 %vm44_vm0, %v1564_v25 }
  0x43   :  { %1389 = vmatmul.mubr.msk.f32.gmra.mxu1 %vm44_vm0, %v1572_v27 }
  0x44   :  { %1391 = vmatprep.mubr.msk.f32.mxu1 %vm44_vm0, %v1594_v31 }
  0x45   :  { %1406 = vmatmul.mubr.msk.f32.gmra.mxu0 %vm44_vm0, %v1579_v28 }
  0x46   :  { %1408 = vmatprep.mubr.msk.f32.mxu0 %vm44_vm0, %v1601_v32 }
  0x47   :  { %1392 = vmatmul.mubr.msk.f32.gmra.mxu1 %vm44_vm0, %v1606_v33 }
  0x49   :  { %1409 = vmatmul.mubr.msk.f32.gmra.mxu0 %vm44_vm0, %v1611_v34 }
  0xcb   :  { %v1268_v54 = vpop.f32.mrf.mxu0  ;;  %v1750_v56 = vpop.f32.mrf.mxu1 }
  0xcd   :  { %v129_v55 = vpop.f32.mrf.mxu0  ;;  %v1754_v59 = vpop.f32.mrf.mxu1 }
  0xd1   :  { %v1271_v57 = vpop.f32.mrf.mxu0 }
  0xd3   :  { %v1752_v58 = vpop.f32.mrf.mxu0 }
  0xd6   :  { %v1285_v60 = vpop.f32.mrf.mxu1  ;;  %v1302_v61 = vpop.f32.mrf.mxu0 }
  0xd7   :  { %v248_v37 = vadd.f32 %v1285_v60, %v1268_v54 }
  0xd8   :  { %v242_v62 = vpop.f32.mrf.mxu1  ;;  %v1756_v63 = vpop.f32.mrf.mxu0 }
  0xd9   :  { %v243_v42 = vadd.f32 %v242_v62, %v129_v55 }
  0xda   :  { %v1288_v0 = vpop.f32.mrf.mxu1 }
  0xdb   :  { %v1758_v1 = vpop.f32.mrf.mxu0  ;;  %v258_v45 = vadd.f32 %v1288_v0, %v1271_v57  ;;  %v389_v62 = vadd.f32 %v1756_v63, %v243_v42 }
  0xdc   :  { %v252_v2 = vpop.f32.mrf.mxu1 }
  0xdd   :  { %v1760_v3 = vpop.f32.mrf.mxu0  ;;  %v253_v54 = vadd.f32 %v252_v2, %v1752_v58 }
  0xdf   :  { %v1762_v4 = vpop.f32.mrf.mxu1  ;;  %v1764_v5 = vpop.f32.mrf.mxu0 }
  0xe1   :  { %v1766_v6 = vpop.f32.mrf.mxu1  ;;  %v1768_v7 = vpop.f32.mrf.mxu0 }
  0xe4   :  { %v1319_v8 = vpop.f32.mrf.mxu1  ;;  %v1336_v9 = vpop.f32.mrf.mxu0 }
  0xe5   :  { %v572_v30 = vadd.f32 %v1336_v9, %v1319_v8  ;;  %v390_v8 = vadd.f32 %v1302_v61, %v248_v37 }
  0xe6   :  { %v471_v10 = vpop.f32.mrf.mxu1  ;;  %v566_v11 = vpop.f32.mrf.mxu0 }
  0xe7   :  { %v567_v28 = vadd.f32 %v566_v11, %v471_v10 }
  0xe8   :  { %v1322_v12 = vpop.f32.mrf.mxu1 }
  0xe9   :  { %v1339_v13 = vpop.f32.mrf.mxu0 }
  0xea   :  { %v481_v14 = vpop.f32.mrf.mxu1  ;;  %v582_v38 = vadd.f32 %v1339_v13, %v1322_v12  ;;  %v392_v12 = vadd.f32 %v1758_v1, %v258_v45  ;;  %v268_v13 = vadd.f32 %v1762_v4, %v1750_v56 }
  0xeb   :  { %v576_v15 = vpop.f32.mrf.mxu0 }
  0xec   :  { %v577_v33 = vadd.f32 %v576_v15, %v481_v14 }
  0xed   :  { %v1325_v16 = vpop.f32.mrf.mxu1  ;;  %v1342_v17 = vpop.f32.mrf.mxu0 }
  0xee   :  { %v592_v39 = vadd.f32 %v1342_v17, %v1325_v16 }
  0xef   :  { %v491_v18 = vpop.f32.mrf.mxu1  ;;  %v586_v19 = vpop.f32.mrf.mxu0 }
  0xf0   :  { %v587_v46 = vadd.f32 %v586_v19, %v491_v18  ;;  %v391_v19 = vadd.f32 %v1760_v3, %v253_v54 }
  0xf1   :  { %v1353_v20 = vpop.f32.mrf.mxu1 }
  0xf2   :  { %v696_v35 = vadd.f32 %v1353_v20, %v572_v30 }
  0xf3   :  { %v1370_v21 = vpop.f32.mrf.mxu0  ;;  %v666_v22 = vpop.f32.mrf.mxu1 }
  0xf4   :  { %v695_v31 = vadd.f32 %v666_v22, %v567_v28  ;;  %v709_v51 = vrot.slane %v696_v35, 1 }
  0xf5   :  { %v809_v23 = vpop.f32.mrf.mxu0 }
  0xf6   :  { %v1356_v24 = vpop.f32.mrf.mxu1  ;;  %v708_v43 = vrot.slane %v695_v31, 1 }
  0xf7   :  { %v1373_v25 = vpop.f32.mrf.mxu0  ;;  %v698_v47 = vadd.f32 %v1356_v24, %v582_v38 }
  0xf8   :  { %v676_v26 = vpop.f32.mrf.mxu1  ;;  %v710_v57 = vsel %vm707_vm1, %v708_v43, %v709_v51 }
  0xf9   :  { %v819_v27 = vpop.f32.mrf.mxu0  ;;  %v697_v40 = vadd.f32 %v676_v26, %v577_v33  ;;  %v713_v14 = vrot.slane %v698_v47, 1  ;;  %v727_v63 = vadd.f32 %v710_v57, %v389_v62  ;;  %v263_v26 = vadd.f32 %v1766_v6, %v1754_v59 }
  0xfb   :  { %v1359_v29 = vpop.f32.mrf.mxu1  ;;  %v711_v60 = vrot.slane %v697_v40, 1 }
  0xfc   :  { %v1376_v32 = vpop.f32.mrf.mxu0  ;;  %v700_v48 = vadd.f32 %v1359_v29, %v592_v39 }
  0xfd   :  { %v686_v34 = vpop.f32.mrf.mxu1  ;;  %v712_v20 = vsel %vm707_vm1, %v709_v51, %v711_v60  ;;  %v714_v1 = vsel %vm707_vm1, %v711_v60, %v713_v14 }
  0xfe   :  { %v829_v36 = vpop.f32.mrf.mxu0  ;;  %v699_v9 = vadd.f32 %v686_v34, %v587_v46  ;;  %v717_v15 = vrot.slane %v700_v48, 1  ;;  %v728_v35 = vadd.f32 %v712_v20, %v390_v8  ;;  %v729_v37 = vadd.f32 %v714_v1, %v391_v19 }
  0xff   :  { %v1387_v41 = vpop.f32.mrf.mxu1 }
 0x100   :  { %v910_v44 = vadd.f32 %v1387_v41, %v1370_v21  ;;  %v715_v21 = vrot.slane %v699_v9, 1 }
 0x101   :  { %v1404_v49 = vpop.f32.mrf.mxu0  ;;  %v904_v50 = vpop.f32.mrf.mxu1 }
 0x102   :  { %v1034_v52 = vadd.f32 %v1404_v49, %v910_v44  ;;  %v905_v53 = vadd.f32 %v904_v50, %v809_v23  ;;  %v716_v38 = vsel %vm707_vm1, %v713_v14, %v715_v21 }
 0x103   :  { %v1004_v10 = vpop.f32.mrf.mxu0  ;;  %v1390_v55 = vpop.f32.mrf.mxu1  ;;  %v730_v46 = vadd.f32 %v716_v38, %v392_v12 }
 0x104   :  { %v1033_v0 = vadd.f32 %v1004_v10, %v905_v53  ;;  %v920_v11 = vadd.f32 %v1390_v55, %v1373_v25  ;;  %v1047_v58 = vrot.slane %v1034_v52, 2  ;;  %v394_v25 = vadd.f32 %v1764_v5, %v268_v13 }
 0x105   :  { %v1407_v61 = vpop.f32.mrf.mxu0  ;;  %v914_v16 = vpop.f32.mrf.mxu1 }
 0x106   :  { %v1046_v2 = vrot.slane %v1033_v0, 2  ;;  %v1036_v17 = vadd.f32 %v1407_v61, %v920_v11  ;;  %v915_v18 = vadd.f32 %v914_v16, %v819_v27  ;;  %v726_v27 = vsel %vm707_vm1, %v717_v15, %v708_v43 }
 0x107   :  { %v1014_v22 = vpop.f32.mrf.mxu0  ;;  %v1393_v23 = vpop.f32.mrf.mxu1  ;;  %v732_v41 = vadd.f32 %v726_v27, %v394_v25 }
 0x108   :  { %v1048_v56 = vsel %vm1045_vm2, %v1046_v2, %v1047_v58  ;;  %v1035_v4 = vadd.f32 %v1014_v22, %v915_v18  ;;  %v930_v24 = vadd.f32 %v1393_v23, %v1376_v32  ;;  %v1051_v30 = vrot.slane %v1036_v17, 2 }
 0x109   :  { %v1065_v3 = vadd.f32 %v1048_v56, %v727_v63  ;;  %v1410_v28 = vpop.f32.mrf.mxu0  ;;  %v924_v29 = vpop.f32.mrf.mxu1  ;;  %v718_v32 = vsel %vm707_vm1, %v715_v21, %v717_v15 }
 0x10a   :  { %v1049_v31 = vrot.slane %v1035_v4, 2  ;;  %v1038_v33 = vadd.f32 %v1410_v28, %v930_v24  ;;  %v925_v34 = vadd.f32 %v924_v29, %v829_v36  ;;  %v393_v36 = vadd.f32 %v1768_v7, %v263_v26 }
 0x10b   :  { %1072 = vst.msk [vmem:[%s1820_s4] sm:$0xff] %vm1071_vm3, %v1065_v3  ;;  %v1024_v59 = vpop.f32.mrf.mxu0 }
 0x10c   :  { %v1050_v5 = vsel %vm1045_vm2, %v1047_v58, %v1049_v31  ;;  %v1052_v6 = vsel %vm1045_vm2, %v1049_v31, %v1051_v30  ;;  %v1055_v39 = vrot.slane %v1038_v33, 2  ;;  %v1037_v40 = vadd.f32 %v1024_v59, %v925_v34 }
 0x10d   :  { %v1066_v42 = vadd.f32 %v1050_v5, %v728_v35  ;;  %v1067_v43 = vadd.f32 %v1052_v6, %v729_v37  ;;  %v731_v47 = vadd.f32 %v718_v32, %v393_v36 }
 0x10e   :  { %v1064_v44 = vsel %vm1045_vm2, %v1055_v39, %v1046_v2  ;;  %v1053_v45 = vrot.slane %v1037_v40, 2 }
 0x10f   :  { %1073 = vst.msk [vmem:[%s1820_s4 + $0x8] sm:$0xff] %vm1071_vm3, %v1066_v42  ;;  %1074 = vst.msk [vmem:[%s1820_s4 + $0x10] sm:$0xff] %vm1071_vm3, %v1067_v43  ;;  %v1070_v48 = vadd.f32 %v1064_v44, %v732_v41 }
 0x110   :  { %v1054_v7 = vsel %vm1045_vm2, %v1051_v30, %v1053_v45  ;;  %v1056_v49 = vsel %vm1045_vm2, %v1053_v45, %v1055_v39 }
 0x111   :  { %1077 = vst.msk [vmem:[%s1820_s4 + $0x28] sm:$0xff] %vm1071_vm3, %v1070_v48  ;;  %v1068_v50 = vadd.f32 %v1054_v7, %v730_v46  ;;  %v1069_v51 = vadd.f32 %v1056_v49, %v731_v47 }
 0x113   :  { %1075 = vst.msk [vmem:[%s1820_s4 + $0x18] sm:$0xff] %vm1071_vm3, %v1068_v50  ;;  %1076 = vst.msk [vmem:[%s1820_s4 + $0x20] sm:$0xff] %vm1071_vm3, %v1069_v51 }

</bundles_post_ra>
